<compile_context>
chip_gen: v7x
topology: tpu7x:2x2x1
jax: 0.10.0
libtpu: 0.0.40
codegen_flags: <defaults>
</compile_context>

<pallas_src>
import functools

import jax
import jax.numpy as jnp
from jax.experimental import pallas as pl
from jax.experimental.pallas import tpu as pltpu

EPS = 1e-5
SUBLANE = 8


# ------------------------------- fused kernel --------------------------------

def _attention_branch_kernel(x_ref, m_ref, wr_ref, br_ref, wo_ref, bo_ref, o_ref, *, W):
    """Fused forward pass for one tile of B_TILE images.

    x_ref:  (1, CP, BHW)   activations, channels on sublanes, B_TILE*H*W on lanes
    m_ref:  (9, CP, BHW)   precomputed 3x3 border masks (f32, VMEM-resident)
    wr_ref: (8, CP, 9*CP)  stacked residual-block conv weights (BN folded, bf16)
    br_ref: (8, CP, 1)     stacked residual-block conv biases (f32)
    wo_ref: (1, 9*CP)      sigmoid-head conv weight (bf16)
    bo_ref: (1, 1)         sigmoid-head conv bias (f32)
    o_ref:  (1, 1, BHW)    output attention mask (lane-dense slab)
    """
    BHW = x_ref.shape[2]
    f32 = jnp.float32
    bf16 = jnp.bfloat16

    # Static lane shifts for the 9 taps of a 3x3 "same" conv.  Shifts are modulo
    # the whole lane-batched slab (B_TILE*H*W); any wrap across image boundaries
    # lands only on positions that the precomputed border masks zero out.
    shifts = [(-(dy * W + dx)) % BHW for dy in (-1, 0, 1) for dx in (-1, 0, 1)]

    def im2col(a):
        # a: (CP, BHW) f32 -> (9*CP, BHW) bf16 patch matrix, built in-register
        # with XLU rolls (overlaps with MXU/VPU work), masked, cast once per tap.
        taps = []
        for t in range(9):
            s = a if shifts[t] == 0 else pltpu.roll(a, shifts[t], 1)
            if t != 4:                      # center tap never crosses a border
                s = s * m_ref[t]
            taps.append(s.astype(bf16))
        return jnp.concatenate(taps, axis=0)

    def conv3x3(a, w_flat, b):
        # One lane-dense bf16 MXU matmul with f32 accumulation:
        # (Cout, 9*CP) @ (9*CP, BHW) -> (Cout, BHW).
        return jnp.dot(w_flat, im2col(a), preferred_element_type=f32) + b

    act = x_ref[0].astype(f32)                                       # (CP, BHW)
    for blk in range(4):                                             # 4 residual blocks
        h = jnp.maximum(conv3x3(act, wr_ref[2 * blk], br_ref[2 * blk]), 0.0)
        act = jnp.maximum(
            conv3x3(h, wr_ref[2 * blk + 1], br_ref[2 * blk + 1]) + act, 0.0)

    out = jax.nn.sigmoid(conv3x3(act, wo_ref[...], bo_ref[...]))     # (1, BHW)
    o_ref[0] = out.astype(o_ref.dtype)


# ------------------------------ kernel wrapper --------------------------------

def _border_masks(H, W, b_tile, CP):
    """(9, CP, b_tile*H*W) f32 validity masks for the 9 taps of a 3x3 SAME conv."""
    HW = H * W
    pix = jnp.arange(b_tile * HW, dtype=jnp.int32) % HW
    row = pix // W
    col = pix % W
    masks = []
    for dy in (-1, 0, 1):
        for dx in (-1, 0, 1):
            valid = ((row + dy >= 0) & (row + dy < H) &
                     (col + dx >= 0) & (col + dx < W)).astype(jnp.float32)
            masks.append(jnp.broadcast_to(valid[None, :], (CP, b_tile * HW)))
    return jnp.stack(masks)


def attention_branch(x_nchw, packed, *, num_tiles=None):
    """Forward pass. Input NCHW (N, C, H, W) -> output NCHW (N, 1, H, W).

    num_tiles: number of grid steps; batch is split into num_tiles lane-batched
    slabs of B_TILE images each.  Default min(N, 2) keeps >=2 "parallel" steps so
    both v7x TensorCores are used; on single-core v5e/v6e pass num_tiles=1 to
    collapse the whole batch into a single step.
    """
    N, C, H, W = x_nchw.shape
    w_res, b_res = packed["w_res"], packed["b_res"]
    w_out, b_out = packed["w_out"], packed["b_out"]
    CP = w_res.shape[1]
    HW = H * W

    if num_tiles is None:
        num_tiles = min(N, 2)
    b_tile = -(-N // num_tiles)
    n_pad = num_tiles * b_tile
    BHW = b_tile * HW

    # NCHW -> (num_tiles, CP, B_TILE*HW): channels on sublanes (padded to 8, free),
    # images concatenated along the lane axis.  Single host-side reshape/pad.
    x = x_nchw.reshape(N, C, HW).astype(jnp.float32)
    if n_pad != N:
        x = jnp.pad(x, ((0, n_pad - N), (0, 0), (0, 0)))
    if CP != C:
        x = jnp.pad(x, ((0, 0), (0, CP - C), (0, 0)))
    x = x.reshape(num_tiles, b_tile, CP, HW).transpose(0, 2, 1, 3).reshape(
        num_tiles, CP, BHW)

    masks = _border_masks(H, W, b_tile, CP)          # hoisted out of the kernel body

    const = lambda shape: pl.BlockSpec(              # constant index map: DMA'd once,
        shape,                                       # VMEM-resident, single-buffered
        (lambda n: (0,) * len(shape)),
        pipeline_mode=pl.Buffered(1))

    kernel = functools.partial(_attention_branch_kernel, W=W)
    out = pl.pallas_call(
        kernel,
        out_shape=jax.ShapeDtypeStruct((num_tiles, 1, BHW), jnp.float32),
        grid=(num_tiles,),
        in_specs=[
            pl.BlockSpec((1, CP, BHW), lambda n: (n, 0, 0)),
            const(masks.shape),
            const(w_res.shape),
            const(b_res.shape),
            const(w_out.shape),
            const(b_out.shape),
        ],
        out_specs=pl.BlockSpec((1, 1, BHW), lambda n: (n, 0, 0)),
        compiler_params=pltpu.CompilerParams(
            dimension_semantics=("parallel",)),      # v7x: tiles shard across TCs
    )(x, masks, w_res, b_res, w_out, b_out)

    out = out.reshape(n_pad, 1, H, W)
    if n_pad != N:
        out = out[:N]
    return out


# --------------------------- parameter construction ---------------------------

def _fold_bn(w, b, gamma, beta, mean, var):
    """Fold inference-mode BatchNorm into conv weight/bias (HWIO layout)."""
    s = gamma / jnp.sqrt(var + EPS)                   # (Cout,)
    w_f = w * s.reshape(1, 1, 1, -1)
    b_f = (b - mean) * s + beta
    return w_f.astype(jnp.float32), b_f.astype(jnp.float32)


def _init_conv_bn(key, cin, cout):
    kw, kb, kg, kbe, km, kv = jax.random.split(key, 6)
    w = 0.1 * jax.random.normal(kw, (3, 3, cin, cout), jnp.float32)
    b = 0.05 * jax.random.normal(kb, (cout,), jnp.float32)
    gamma = 1.0 + 0.1 * jax.random.normal(kg, (cout,), jnp.float32)
    beta = 0.05 * jax.random.normal(kbe, (cout,), jnp.float32)
    mean = 0.05 * jax.random.normal(km, (cout,), jnp.float32)
    var = 0.5 + jnp.abs(jax.random.normal(kv, (cout,), jnp.float32))
    return _fold_bn(w, b, gamma, beta, mean, var)


def init_params(key, filters):
    params = {"res": [], "out": None}
    keys = jax.random.split(key, 9)
    for i in range(4):
        w1, b1 = _init_conv_bn(keys[2 * i], filters, filters)
        w2, b2 = _init_conv_bn(keys[2 * i + 1], filters, filters)
        params["res"].append({"w1": w1, "b1": b1, "w2": w2, "b2": b2})
    params["out"] = _init_conv_bn(keys[8], filters, 1)
    return params


def pack_params(params, filters):
    """Pack BN-folded HWIO conv params into the fused kernel's stacked layout.

    Weights are stored in bf16 (MXU-native operands); biases stay f32 and are
    added to the f32 accumulator.
    """
    C = filters
    CP = -(-C // SUBLANE) * SUBLANE                   # pad channels to sublane tile

    def flat_w(w_hwio, cout_pad):
        cin, cout = w_hwio.shape[2], w_hwio.shape[3]
        wp = jnp.zeros((3, 3, CP, cout_pad), jnp.float32)
        wp = wp.at[:, :, :cin, :cout].set(w_hwio)
        # (3,3,CP,coutp) -> (9*CP, coutp) -> (coutp, 9*CP); column t*CP+ci pairs
        # with the kernel's im2col tap t = (dy+1)*3 + (dx+1), input channel ci.
        return wp.reshape(9 * CP, cout_pad).T

    w_list, b_list = [], []
    for p in params["res"]:
        for w, b in ((p["w1"], p["b1"]), (p["w2"], p["b2"])):
            w_list.append(flat_w(w, CP))
            b_list.append(jnp.zeros((CP, 1), jnp.float32).at[:C, 0].set(b))
    w_out_hwio, b_out = params["out"]
    return {
        "w_res": jnp.stack(w_list).astype(jnp.bfloat16),    # (8, CP, 9*CP) bf16
        "b_res": jnp.stack(b_list),                          # (8, CP, 1)    f32
        "w_out": flat_w(w_out_hwio, 1).astype(jnp.bfloat16), # (1, 9*CP)     bf16
        "b_out": b_out.reshape(1, 1),                        # (1, 1)        f32
    }


# ------------------------- pure-JAX reference (check) -------------------------

def _conv3x3_ref(x, w_hwio, b):
    y = jax.lax.conv_general_dilated(
        x, w_hwio, window_strides=(1, 1), padding="SAME",
        dimension_numbers=("NCHW", "HWIO", "NCHW"),
        precision=jax.lax.Precision.HIGHEST)
    return y + b.reshape(1, -1, 1, 1)


def reference_forward(x_nchw, params):
    x = x_nchw.astype(jnp.float32)
    for p in params["res"]:
        h = jnp.maximum(_conv3x3_ref(x, p["w1"], p["b1"]), 0.0)
        x = jnp.maximum(_conv3x3_ref(h, p["w2"], p["b2"]) + x, 0.0)
    w_o, b_o = params["out"]
    return jax.nn.sigmoid(_conv3x3_ref(x, w_o, b_o))


# ----------------------------------- main --------------------------------------

if __name__ == "__main__":
    key = jax.random.PRNGKey(0)
    k_par, k_x = jax.random.split(key)

    N, F, H, W = 2, 4, 16, 16
    params = init_params(k_par, F)
    packed = pack_params(params, F)
    x = jax.random.normal(k_x, (N, F, H, W), jnp.float32)   # NCHW like PyTorch

    out = jax.jit(attention_branch)(x, packed)
    out = jax.block_until_ready(out)

    assert out.shape == (N, 1, H, W), out.shape
    assert bool(jnp.all(jnp.isfinite(out)))
    assert bool(jnp.all((out >= 0.0) & (out <= 1.0)))       # sigmoid output range

    # Numerical check against a pure-JAX f32 reference (bf16 conv operands with
    # f32 accumulation stay well inside this tolerance).
    ref = reference_forward(x, params)
    max_err = float(jnp.max(jnp.abs(out - ref)))
    assert max_err < 2e-2, max_err

    print("KERNEL_OK")
</pallas_src>

<mosaic_0001>
module attributes {stable_mosaic.version = 11 : i64} {
  func.func @_attention_branch_kernel(%arg0: i32, %arg1: memref<1x8x256xf32, #tpu.memory_space<vmem>>, %arg2: memref<9x8x256xf32, #tpu.memory_space<vmem>>, %arg3: memref<8x8x72xbf16, #tpu.memory_space<vmem>>, %arg4: memref<8x8x1xf32, #tpu.memory_space<vmem>>, %arg5: memref<1x72xbf16, #tpu.memory_space<vmem>>, %arg6: memref<1x1xf32, #tpu.memory_space<vmem>>, %arg7: memref<1x1x256xf32, #tpu.memory_space<vmem>>) attributes {dimension_semantics = [#tpu.dimension_semantics<parallel>], iteration_bounds = array<i64: 2>, scalar_prefetch = 0 : i64, scratch_operands = 0 : i64, tpu.core_type = #tpu.core_type<tc>, window_params = [{transform_indices = @transform_0, window_bounds = array<i64: 1, 8, 256>}, {pipeline_mode = #tpu.pipeline_mode<synchronous>, transform_indices = @transform_1, window_bounds = array<i64: 9, 8, 256>}, {pipeline_mode = #tpu.pipeline_mode<synchronous>, transform_indices = @transform_2, window_bounds = array<i64: 8, 8, 72>}, {pipeline_mode = #tpu.pipeline_mode<synchronous>, transform_indices = @transform_3, window_bounds = array<i64: 8, 8, 1>}, {pipeline_mode = #tpu.pipeline_mode<synchronous>, transform_indices = @transform_4, window_bounds = array<i64: 1, 72>}, {pipeline_mode = #tpu.pipeline_mode<synchronous>, transform_indices = @transform_5, window_bounds = array<i64: 1, 1>}, {transform_indices = @transform_6, window_bounds = array<i64: 1, 1, 256>}]} {
    %c0 = arith.constant 0 : index
    %c0_0 = arith.constant 0 : index
    %c0_1 = arith.constant 0 : index
    %0 = vector.load %arg1[%c0, %c0_0, %c0_1] : memref<1x8x256xf32, #tpu.memory_space<vmem>>, vector<1x8x256xf32>
    %1 = vector.shape_cast %0 : vector<1x8x256xf32> to vector<8x256xf32>
    %c0_2 = arith.constant 0 : index
    %c0_3 = arith.constant 0 : index
    %c0_4 = arith.constant 0 : index
    %2 = vector.load %arg3[%c0_2, %c0_3, %c0_4] : memref<8x8x72xbf16, #tpu.memory_space<vmem>>, vector<1x8x72xbf16>
    %3 = vector.shape_cast %2 : vector<1x8x72xbf16> to vector<8x72xbf16>
    %c0_5 = arith.constant 0 : index
    %c0_6 = arith.constant 0 : index
    %c0_7 = arith.constant 0 : index
    %4 = vector.load %arg4[%c0_5, %c0_6, %c0_7] : memref<8x8x1xf32, #tpu.memory_space<vmem>>, vector<1x8x1xf32>
    %5 = vector.shape_cast %4 : vector<1x8x1xf32> to vector<8x1xf32>
    %c17_i32 = arith.constant 17 : i32
    %6 = tpu.dynamic_rotate %1 by %c17_i32 dim 1 : vector<8x256xf32>, i32 -> vector<8x256xf32>
    %c0_8 = arith.constant 0 : index
    %c0_9 = arith.constant 0 : index
    %c0_10 = arith.constant 0 : index
    %7 = vector.load %arg2[%c0_8, %c0_9, %c0_10] : memref<9x8x256xf32, #tpu.memory_space<vmem>>, vector<1x8x256xf32>
    %8 = vector.shape_cast %7 : vector<1x8x256xf32> to vector<8x256xf32>
    %9 = arith.mulf %6, %8 : vector<8x256xf32>
    %10 = arith.truncf %9 : vector<8x256xf32> to vector<8x256xbf16>
    %c16_i32 = arith.constant 16 : i32
    %11 = tpu.dynamic_rotate %1 by %c16_i32 dim 1 : vector<8x256xf32>, i32 -> vector<8x256xf32>
    %c1 = arith.constant 1 : index
    %c0_11 = arith.constant 0 : index
    %c0_12 = arith.constant 0 : index
    %12 = vector.load %arg2[%c1, %c0_11, %c0_12] : memref<9x8x256xf32, #tpu.memory_space<vmem>>, vector<1x8x256xf32>
    %13 = vector.shape_cast %12 : vector<1x8x256xf32> to vector<8x256xf32>
    %14 = arith.mulf %11, %13 : vector<8x256xf32>
    %15 = arith.truncf %14 : vector<8x256xf32> to vector<8x256xbf16>
    %c15_i32 = arith.constant 15 : i32
    %16 = tpu.dynamic_rotate %1 by %c15_i32 dim 1 : vector<8x256xf32>, i32 -> vector<8x256xf32>
    %c2 = arith.constant 2 : index
    %c0_13 = arith.constant 0 : index
    %c0_14 = arith.constant 0 : index
    %17 = vector.load %arg2[%c2, %c0_13, %c0_14] : memref<9x8x256xf32, #tpu.memory_space<vmem>>, vector<1x8x256xf32>
    %18 = vector.shape_cast %17 : vector<1x8x256xf32> to vector<8x256xf32>
    %19 = arith.mulf %16, %18 : vector<8x256xf32>
    %20 = arith.truncf %19 : vector<8x256xf32> to vector<8x256xbf16>
    %c1_i32 = arith.constant 1 : i32
    %21 = tpu.dynamic_rotate %1 by %c1_i32 dim 1 : vector<8x256xf32>, i32 -> vector<8x256xf32>
    %c3 = arith.constant 3 : index
    %c0_15 = arith.constant 0 : index
    %c0_16 = arith.constant 0 : index
    %22 = vector.load %arg2[%c3, %c0_15, %c0_16] : memref<9x8x256xf32, #tpu.memory_space<vmem>>, vector<1x8x256xf32>
    %23 = vector.shape_cast %22 : vector<1x8x256xf32> to vector<8x256xf32>
    %24 = arith.mulf %21, %23 : vector<8x256xf32>
    %25 = arith.truncf %24 : vector<8x256xf32> to vector<8x256xbf16>
    %26 = arith.truncf %1 : vector<8x256xf32> to vector<8x256xbf16>
    %c255_i32 = arith.constant 255 : i32
    %27 = tpu.dynamic_rotate %1 by %c255_i32 dim 1 : vector<8x256xf32>, i32 -> vector<8x256xf32>
    %c5 = arith.constant 5 : index
    %c0_17 = arith.constant 0 : index
    %c0_18 = arith.constant 0 : index
    %28 = vector.load %arg2[%c5, %c0_17, %c0_18] : memref<9x8x256xf32, #tpu.memory_space<vmem>>, vector<1x8x256xf32>
    %29 = vector.shape_cast %28 : vector<1x8x256xf32> to vector<8x256xf32>
    %30 = arith.mulf %27, %29 : vector<8x256xf32>
    %31 = arith.truncf %30 : vector<8x256xf32> to vector<8x256xbf16>
    %c241_i32 = arith.constant 241 : i32
    %32 = tpu.dynamic_rotate %1 by %c241_i32 dim 1 : vector<8x256xf32>, i32 -> vector<8x256xf32>
    %c6 = arith.constant 6 : index
    %c0_19 = arith.constant 0 : index
    %c0_20 = arith.constant 0 : index
    %33 = vector.load %arg2[%c6, %c0_19, %c0_20] : memref<9x8x256xf32, #tpu.memory_space<vmem>>, vector<1x8x256xf32>
    %34 = vector.shape_cast %33 : vector<1x8x256xf32> to vector<8x256xf32>
    %35 = arith.mulf %32, %34 : vector<8x256xf32>
    %36 = arith.truncf %35 : vector<8x256xf32> to vector<8x256xbf16>
    %c240_i32 = arith.constant 240 : i32
    %37 = tpu.dynamic_rotate %1 by %c240_i32 dim 1 : vector<8x256xf32>, i32 -> vector<8x256xf32>
    %c7 = arith.constant 7 : index
    %c0_21 = arith.constant 0 : index
    %c0_22 = arith.constant 0 : index
    %38 = vector.load %arg2[%c7, %c0_21, %c0_22] : memref<9x8x256xf32, #tpu.memory_space<vmem>>, vector<1x8x256xf32>
    %39 = vector.shape_cast %38 : vector<1x8x256xf32> to vector<8x256xf32>
    %40 = arith.mulf %37, %39 : vector<8x256xf32>
    %41 = arith.truncf %40 : vector<8x256xf32> to vector<8x256xbf16>
    %c239_i32 = arith.constant 239 : i32
    %42 = tpu.dynamic_rotate %1 by %c239_i32 dim 1 : vector<8x256xf32>, i32 -> vector<8x256xf32>
    %c8 = arith.constant 8 : index
    %c0_23 = arith.constant 0 : index
    %c0_24 = arith.constant 0 : index
    %43 = vector.load %arg2[%c8, %c0_23, %c0_24] : memref<9x8x256xf32, #tpu.memory_space<vmem>>, vector<1x8x256xf32>
    %44 = vector.shape_cast %43 : vector<1x8x256xf32> to vector<8x256xf32>
    %45 = arith.mulf %42, %44 : vector<8x256xf32>
    %46 = arith.truncf %45 : vector<8x256xf32> to vector<8x256xbf16>
    %47 = tpu.concatenate %10, %15, %20, %25, %26, %31, %36, %41, %46 in 0 : vector<8x256xbf16>, vector<8x256xbf16>, vector<8x256xbf16>, vector<8x256xbf16>, vector<8x256xbf16>, vector<8x256xbf16>, vector<8x256xbf16>, vector<8x256xbf16>, vector<8x256xbf16> -> vector<72x256xbf16>
    %cst = arith.constant dense<0.000000e+00> : vector<8x256xf32>
    %48 = tpu.matmul %3, %47, %cst {dimension_numbers = #tpu.dot_dimension_numbers<[1], [0], [0], [1], [0, 0, 1, 1], [], []>} : vector<8x72xbf16>, vector<72x256xbf16>, vector<8x256xf32> -> vector<8x256xf32>
    %49 = vector.broadcast %5 : vector<8x1xf32> to vector<8x256xf32>
    %50 = arith.addf %48, %49 : vector<8x256xf32>
    %cst_25 = arith.constant 0.000000e+00 : f32
    %51 = vector.broadcast %cst_25 : f32 to vector<8x256xf32>
    %52 = arith.maximumf %50, %51 : vector<8x256xf32>
    %c1_26 = arith.constant 1 : index
    %c0_27 = arith.constant 0 : index
    %c0_28 = arith.constant 0 : index
    %53 = vector.load %arg3[%c1_26, %c0_27, %c0_28] : memref<8x8x72xbf16, #tpu.memory_space<vmem>>, vector<1x8x72xbf16>
    %54 = vector.shape_cast %53 : vector<1x8x72xbf16> to vector<8x72xbf16>
    %c1_29 = arith.constant 1 : index
    %c0_30 = arith.constant 0 : index
    %c0_31 = arith.constant 0 : index
    %55 = vector.load %arg4[%c1_29, %c0_30, %c0_31] : memref<8x8x1xf32, #tpu.memory_space<vmem>>, vector<1x8x1xf32>
    %56 = vector.shape_cast %55 : vector<1x8x1xf32> to vector<8x1xf32>
    %c17_i32_32 = arith.constant 17 : i32
    %57 = tpu.dynamic_rotate %52 by %c17_i32_32 dim 1 : vector<8x256xf32>, i32 -> vector<8x256xf32>
    %c0_33 = arith.constant 0 : index
    %c0_34 = arith.constant 0 : index
    %c0_35 = arith.constant 0 : index
    %58 = vector.load %arg2[%c0_33, %c0_34, %c0_35] : memref<9x8x256xf32, #tpu.memory_space<vmem>>, vector<1x8x256xf32>
    %59 = vector.shape_cast %58 : vector<1x8x256xf32> to vector<8x256xf32>
    %60 = arith.mulf %57, %59 : vector<8x256xf32>
    %61 = arith.truncf %60 : vector<8x256xf32> to vector<8x256xbf16>
    %c16_i32_36 = arith.constant 16 : i32
    %62 = tpu.dynamic_rotate %52 by %c16_i32_36 dim 1 : vector<8x256xf32>, i32 -> vector<8x256xf32>
    %c1_37 = arith.constant 1 : index
    %c0_38 = arith.constant 0 : index
    %c0_39 = arith.constant 0 : index
    %63 = vector.load %arg2[%c1_37, %c0_38, %c0_39] : memref<9x8x256xf32, #tpu.memory_space<vmem>>, vector<1x8x256xf32>
    %64 = vector.shape_cast %63 : vector<1x8x256xf32> to vector<8x256xf32>
    %65 = arith.mulf %62, %64 : vector<8x256xf32>
    %66 = arith.truncf %65 : vector<8x256xf32> to vector<8x256xbf16>
    %c15_i32_40 = arith.constant 15 : i32
    %67 = tpu.dynamic_rotate %52 by %c15_i32_40 dim 1 : vector<8x256xf32>, i32 -> vector<8x256xf32>
    %c2_41 = arith.constant 2 : index
    %c0_42 = arith.constant 0 : index
    %c0_43 = arith.constant 0 : index
    %68 = vector.load %arg2[%c2_41, %c0_42, %c0_43] : memref<9x8x256xf32, #tpu.memory_space<vmem>>, vector<1x8x256xf32>
    %69 = vector.shape_cast %68 : vector<1x8x256xf32> to vector<8x256xf32>
    %70 = arith.mulf %67, %69 : vector<8x256xf32>
    %71 = arith.truncf %70 : vector<8x256xf32> to vector<8x256xbf16>
    %c1_i32_44 = arith.constant 1 : i32
    %72 = tpu.dynamic_rotate %52 by %c1_i32_44 dim 1 : vector<8x256xf32>, i32 -> vector<8x256xf32>
    %c3_45 = arith.constant 3 : index
    %c0_46 = arith.constant 0 : index
    %c0_47 = arith.constant 0 : index
    %73 = vector.load %arg2[%c3_45, %c0_46, %c0_47] : memref<9x8x256xf32, #tpu.memory_space<vmem>>, vector<1x8x256xf32>
    %74 = vector.shape_cast %73 : vector<1x8x256xf32> to vector<8x256xf32>
    %75 = arith.mulf %72, %74 : vector<8x256xf32>
    %76 = arith.truncf %75 : vector<8x256xf32> to vector<8x256xbf16>
    %77 = arith.truncf %52 : vector<8x256xf32> to vector<8x256xbf16>
    %c255_i32_48 = arith.constant 255 : i32
    %78 = tpu.dynamic_rotate %52 by %c255_i32_48 dim 1 : vector<8x256xf32>, i32 -> vector<8x256xf32>
    %c5_49 = arith.constant 5 : index
    %c0_50 = arith.constant 0 : index
    %c0_51 = arith.constant 0 : index
    %79 = vector.load %arg2[%c5_49, %c0_50, %c0_51] : memref<9x8x256xf32, #tpu.memory_space<vmem>>, vector<1x8x256xf32>
    %80 = vector.shape_cast %79 : vector<1x8x256xf32> to vector<8x256xf32>
    %81 = arith.mulf %78, %80 : vector<8x256xf32>
    %82 = arith.truncf %81 : vector<8x256xf32> to vector<8x256xbf16>
    %c241_i32_52 = arith.constant 241 : i32
    %83 = tpu.dynamic_rotate %52 by %c241_i32_52 dim 1 : vector<8x256xf32>, i32 -> vector<8x256xf32>
    %c6_53 = arith.constant 6 : index
    %c0_54 = arith.constant 0 : index
    %c0_55 = arith.constant 0 : index
    %84 = vector.load %arg2[%c6_53, %c0_54, %c0_55] : memref<9x8x256xf32, #tpu.memory_space<vmem>>, vector<1x8x256xf32>
    %85 = vector.shape_cast %84 : vector<1x8x256xf32> to vector<8x256xf32>
    %86 = arith.mulf %83, %85 : vector<8x256xf32>
    %87 = arith.truncf %86 : vector<8x256xf32> to vector<8x256xbf16>
    %c240_i32_56 = arith.constant 240 : i32
    %88 = tpu.dynamic_rotate %52 by %c240_i32_56 dim 1 : vector<8x256xf32>, i32 -> vector<8x256xf32>
    %c7_57 = arith.constant 7 : index
    %c0_58 = arith.constant 0 : index
    %c0_59 = arith.constant 0 : index
    %89 = vector.load %arg2[%c7_57, %c0_58, %c0_59] : memref<9x8x256xf32, #tpu.memory_space<vmem>>, vector<1x8x256xf32>
    %90 = vector.shape_cast %89 : vector<1x8x256xf32> to vector<8x256xf32>
    %91 = arith.mulf %88, %90 : vector<8x256xf32>
    %92 = arith.truncf %91 : vector<8x256xf32> to vector<8x256xbf16>
    %c239_i32_60 = arith.constant 239 : i32
    %93 = tpu.dynamic_rotate %52 by %c239_i32_60 dim 1 : vector<8x256xf32>, i32 -> vector<8x256xf32>
    %c8_61 = arith.constant 8 : index
    %c0_62 = arith.constant 0 : index
    %c0_63 = arith.constant 0 : index
    %94 = vector.load %arg2[%c8_61, %c0_62, %c0_63] : memref<9x8x256xf32, #tpu.memory_space<vmem>>, vector<1x8x256xf32>
    %95 = vector.shape_cast %94 : vector<1x8x256xf32> to vector<8x256xf32>
    %96 = arith.mulf %93, %95 : vector<8x256xf32>
    %97 = arith.truncf %96 : vector<8x256xf32> to vector<8x256xbf16>
    %98 = tpu.concatenate %61, %66, %71, %76, %77, %82, %87, %92, %97 in 0 : vector<8x256xbf16>, vector<8x256xbf16>, vector<8x256xbf16>, vector<8x256xbf16>, vector<8x256xbf16>, vector<8x256xbf16>, vector<8x256xbf16>, vector<8x256xbf16>, vector<8x256xbf16> -> vector<72x256xbf16>
    %cst_64 = arith.constant dense<0.000000e+00> : vector<8x256xf32>
    %99 = tpu.matmul %54, %98, %cst_64 {dimension_numbers = #tpu.dot_dimension_numbers<[1], [0], [0], [1], [0, 0, 1, 1], [], []>} : vector<8x72xbf16>, vector<72x256xbf16>, vector<8x256xf32> -> vector<8x256xf32>
    %100 = vector.broadcast %56 : vector<8x1xf32> to vector<8x256xf32>
    %101 = arith.addf %99, %100 : vector<8x256xf32>
    %102 = arith.addf %101, %1 : vector<8x256xf32>
    %cst_65 = arith.constant 0.000000e+00 : f32
    %103 = vector.broadcast %cst_65 : f32 to vector<8x256xf32>
    %104 = arith.maximumf %102, %103 : vector<8x256xf32>
    %c2_66 = arith.constant 2 : index
    %c0_67 = arith.constant 0 : index
    %c0_68 = arith.constant 0 : index
    %105 = vector.load %arg3[%c2_66, %c0_67, %c0_68] : memref<8x8x72xbf16, #tpu.memory_space<vmem>>, vector<1x8x72xbf16>
    %106 = vector.shape_cast %105 : vector<1x8x72xbf16> to vector<8x72xbf16>
    %c2_69 = arith.constant 2 : index
    %c0_70 = arith.constant 0 : index
    %c0_71 = arith.constant 0 : index
    %107 = vector.load %arg4[%c2_69, %c0_70, %c0_71] : memref<8x8x1xf32, #tpu.memory_space<vmem>>, vector<1x8x1xf32>
    %108 = vector.shape_cast %107 : vector<1x8x1xf32> to vector<8x1xf32>
    %c17_i32_72 = arith.constant 17 : i32
    %109 = tpu.dynamic_rotate %104 by %c17_i32_72 dim 1 : vector<8x256xf32>, i32 -> vector<8x256xf32>
    %c0_73 = arith.constant 0 : index
    %c0_74 = arith.constant 0 : index
    %c0_75 = arith.constant 0 : index
    %110 = vector.load %arg2[%c0_73, %c0_74, %c0_75] : memref<9x8x256xf32, #tpu.memory_space<vmem>>, vector<1x8x256xf32>
    %111 = vector.shape_cast %110 : vector<1x8x256xf32> to vector<8x256xf32>
    %112 = arith.mulf %109, %111 : vector<8x256xf32>
    %113 = arith.truncf %112 : vector<8x256xf32> to vector<8x256xbf16>
    %c16_i32_76 = arith.constant 16 : i32
    %114 = tpu.dynamic_rotate %104 by %c16_i32_76 dim 1 : vector<8x256xf32>, i32 -> vector<8x256xf32>
    %c1_77 = arith.constant 1 : index
    %c0_78 = arith.constant 0 : index
    %c0_79 = arith.constant 0 : index
    %115 = vector.load %arg2[%c1_77, %c0_78, %c0_79] : memref<9x8x256xf32, #tpu.memory_space<vmem>>, vector<1x8x256xf32>
    %116 = vector.shape_cast %115 : vector<1x8x256xf32> to vector<8x256xf32>
    %117 = arith.mulf %114, %116 : vector<8x256xf32>
    %118 = arith.truncf %117 : vector<8x256xf32> to vector<8x256xbf16>
    %c15_i32_80 = arith.constant 15 : i32
    %119 = tpu.dynamic_rotate %104 by %c15_i32_80 dim 1 : vector<8x256xf32>, i32 -> vector<8x256xf32>
    %c2_81 = arith.constant 2 : index
    %c0_82 = arith.constant 0 : index
    %c0_83 = arith.constant 0 : index
    %120 = vector.load %arg2[%c2_81, %c0_82, %c0_83] : memref<9x8x256xf32, #tpu.memory_space<vmem>>, vector<1x8x256xf32>
    %121 = vector.shape_cast %120 : vector<1x8x256xf32> to vector<8x256xf32>
    %122 = arith.mulf %119, %121 : vector<8x256xf32>
    %123 = arith.truncf %122 : vector<8x256xf32> to vector<8x256xbf16>
    %c1_i32_84 = arith.constant 1 : i32
    %124 = tpu.dynamic_rotate %104 by %c1_i32_84 dim 1 : vector<8x256xf32>, i32 -> vector<8x256xf32>
    %c3_85 = arith.constant 3 : index
    %c0_86 = arith.constant 0 : index
    %c0_87 = arith.constant 0 : index
    %125 = vector.load %arg2[%c3_85, %c0_86, %c0_87] : memref<9x8x256xf32, #tpu.memory_space<vmem>>, vector<1x8x256xf32>
    %126 = vector.shape_cast %125 : vector<1x8x256xf32> to vector<8x256xf32>
    %127 = arith.mulf %124, %126 : vector<8x256xf32>
    %128 = arith.truncf %127 : vector<8x256xf32> to vector<8x256xbf16>
    %129 = arith.truncf %104 : vector<8x256xf32> to vector<8x256xbf16>
    %c255_i32_88 = arith.constant 255 : i32
    %130 = tpu.dynamic_rotate %104 by %c255_i32_88 dim 1 : vector<8x256xf32>, i32 -> vector<8x256xf32>
    %c5_89 = arith.constant 5 : index
    %c0_90 = arith.constant 0 : index
    %c0_91 = arith.constant 0 : index
    %131 = vector.load %arg2[%c5_89, %c0_90, %c0_91] : memref<9x8x256xf32, #tpu.memory_space<vmem>>, vector<1x8x256xf32>
    %132 = vector.shape_cast %131 : vector<1x8x256xf32> to vector<8x256xf32>
    %133 = arith.mulf %130, %132 : vector<8x256xf32>
    %134 = arith.truncf %133 : vector<8x256xf32> to vector<8x256xbf16>
    %c241_i32_92 = arith.constant 241 : i32
    %135 = tpu.dynamic_rotate %104 by %c241_i32_92 dim 1 : vector<8x256xf32>, i32 -> vector<8x256xf32>
    %c6_93 = arith.constant 6 : index
    %c0_94 = arith.constant 0 : index
    %c0_95 = arith.constant 0 : index
    %136 = vector.load %arg2[%c6_93, %c0_94, %c0_95] : memref<9x8x256xf32, #tpu.memory_space<vmem>>, vector<1x8x256xf32>
    %137 = vector.shape_cast %136 : vector<1x8x256xf32> to vector<8x256xf32>
    %138 = arith.mulf %135, %137 : vector<8x256xf32>
    %139 = arith.truncf %138 : vector<8x256xf32> to vector<8x256xbf16>
    %c240_i32_96 = arith.constant 240 : i32
    %140 = tpu.dynamic_rotate %104 by %c240_i32_96 dim 1 : vector<8x256xf32>, i32 -> vector<8x256xf32>
    %c7_97 = arith.constant 7 : index
    %c0_98 = arith.constant 0 : index
    %c0_99 = arith.constant 0 : index
    %141 = vector.load %arg2[%c7_97, %c0_98, %c0_99] : memref<9x8x256xf32, #tpu.memory_space<vmem>>, vector<1x8x256xf32>
    %142 = vector.shape_cast %141 : vector<1x8x256xf32> to vector<8x256xf32>
    %143 = arith.mulf %140, %142 : vector<8x256xf32>
    %144 = arith.truncf %143 : vector<8x256xf32> to vector<8x256xbf16>
    %c239_i32_100 = arith.constant 239 : i32
    %145 = tpu.dynamic_rotate %104 by %c239_i32_100 dim 1 : vector<8x256xf32>, i32 -> vector<8x256xf32>
    %c8_101 = arith.constant 8 : index
    %c0_102 = arith.constant 0 : index
    %c0_103 = arith.constant 0 : index
    %146 = vector.load %arg2[%c8_101, %c0_102, %c0_103] : memref<9x8x256xf32, #tpu.memory_space<vmem>>, vector<1x8x256xf32>
    %147 = vector.shape_cast %146 : vector<1x8x256xf32> to vector<8x256xf32>
    %148 = arith.mulf %145, %147 : vector<8x256xf32>
    %149 = arith.truncf %148 : vector<8x256xf32> to vector<8x256xbf16>
    %150 = tpu.concatenate %113, %118, %123, %128, %129, %134, %139, %144, %149 in 0 : vector<8x256xbf16>, vector<8x256xbf16>, vector<8x256xbf16>, vector<8x256xbf16>, vector<8x256xbf16>, vector<8x256xbf16>, vector<8x256xbf16>, vector<8x256xbf16>, vector<8x256xbf16> -> vector<72x256xbf16>
    %cst_104 = arith.constant dense<0.000000e+00> : vector<8x256xf32>
    %151 = tpu.matmul %106, %150, %cst_104 {dimension_numbers = #tpu.dot_dimension_numbers<[1], [0], [0], [1], [0, 0, 1, 1], [], []>} : vector<8x72xbf16>, vector<72x256xbf16>, vector<8x256xf32> -> vector<8x256xf32>
    %152 = vector.broadcast %108 : vector<8x1xf32> to vector<8x256xf32>
    %153 = arith.addf %151, %152 : vector<8x256xf32>
    %cst_105 = arith.constant 0.000000e+00 : f32
    %154 = vector.broadcast %cst_105 : f32 to vector<8x256xf32>
    %155 = arith.maximumf %153, %154 : vector<8x256xf32>
    %c3_106 = arith.constant 3 : index
    %c0_107 = arith.constant 0 : index
    %c0_108 = arith.constant 0 : index
    %156 = vector.load %arg3[%c3_106, %c0_107, %c0_108] : memref<8x8x72xbf16, #tpu.memory_space<vmem>>, vector<1x8x72xbf16>
    %157 = vector.shape_cast %156 : vector<1x8x72xbf16> to vector<8x72xbf16>
    %c3_109 = arith.constant 3 : index
    %c0_110 = arith.constant 0 : index
    %c0_111 = arith.constant 0 : index
    %158 = vector.load %arg4[%c3_109, %c0_110, %c0_111] : memref<8x8x1xf32, #tpu.memory_space<vmem>>, vector<1x8x1xf32>
    %159 = vector.shape_cast %158 : vector<1x8x1xf32> to vector<8x1xf32>
    %c17_i32_112 = arith.constant 17 : i32
    %160 = tpu.dynamic_rotate %155 by %c17_i32_112 dim 1 : vector<8x256xf32>, i32 -> vector<8x256xf32>
    %c0_113 = arith.constant 0 : index
    %c0_114 = arith.constant 0 : index
    %c0_115 = arith.constant 0 : index
    %161 = vector.load %arg2[%c0_113, %c0_114, %c0_115] : memref<9x8x256xf32, #tpu.memory_space<vmem>>, vector<1x8x256xf32>
    %162 = vector.shape_cast %161 : vector<1x8x256xf32> to vector<8x256xf32>
    %163 = arith.mulf %160, %162 : vector<8x256xf32>
    %164 = arith.truncf %163 : vector<8x256xf32> to vector<8x256xbf16>
    %c16_i32_116 = arith.constant 16 : i32
    %165 = tpu.dynamic_rotate %155 by %c16_i32_116 dim 1 : vector<8x256xf32>, i32 -> vector<8x256xf32>
    %c1_117 = arith.constant 1 : index
    %c0_118 = arith.constant 0 : index
    %c0_119 = arith.constant 0 : index
    %166 = vector.load %arg2[%c1_117, %c0_118, %c0_119] : memref<9x8x256xf32, #tpu.memory_space<vmem>>, vector<1x8x256xf32>
    %167 = vector.shape_cast %166 : vector<1x8x256xf32> to vector<8x256xf32>
    %168 = arith.mulf %165, %167 : vector<8x256xf32>
    %169 = arith.truncf %168 : vector<8x256xf32> to vector<8x256xbf16>
    %c15_i32_120 = arith.constant 15 : i32
    %170 = tpu.dynamic_rotate %155 by %c15_i32_120 dim 1 : vector<8x256xf32>, i32 -> vector<8x256xf32>
    %c2_121 = arith.constant 2 : index
    %c0_122 = arith.constant 0 : index
    %c0_123 = arith.constant 0 : index
    %171 = vector.load %arg2[%c2_121, %c0_122, %c0_123] : memref<9x8x256xf32, #tpu.memory_space<vmem>>, vector<1x8x256xf32>
    %172 = vector.shape_cast %171 : vector<1x8x256xf32> to vector<8x256xf32>
    %173 = arith.mulf %170, %172 : vector<8x256xf32>
    %174 = arith.truncf %173 : vector<8x256xf32> to vector<8x256xbf16>
    %c1_i32_124 = arith.constant 1 : i32
    %175 = tpu.dynamic_rotate %155 by %c1_i32_124 dim 1 : vector<8x256xf32>, i32 -> vector<8x256xf32>
    %c3_125 = arith.constant 3 : index
    %c0_126 = arith.constant 0 : index
    %c0_127 = arith.constant 0 : index
    %176 = vector.load %arg2[%c3_125, %c0_126, %c0_127] : memref<9x8x256xf32, #tpu.memory_space<vmem>>, vector<1x8x256xf32>
    %177 = vector.shape_cast %176 : vector<1x8x256xf32> to vector<8x256xf32>
    %178 = arith.mulf %175, %177 : vector<8x256xf32>
    %179 = arith.truncf %178 : vector<8x256xf32> to vector<8x256xbf16>
    %180 = arith.truncf %155 : vector<8x256xf32> to vector<8x256xbf16>
    %c255_i32_128 = arith.constant 255 : i32
    %181 = tpu.dynamic_rotate %155 by %c255_i32_128 dim 1 : vector<8x256xf32>, i32 -> vector<8x256xf32>
    %c5_129 = arith.constant 5 : index
    %c0_130 = arith.constant 0 : index
    %c0_131 = arith.constant 0 : index
    %182 = vector.load %arg2[%c5_129, %c0_130, %c0_131] : memref<9x8x256xf32, #tpu.memory_space<vmem>>, vector<1x8x256xf32>
    %183 = vector.shape_cast %182 : vector<1x8x256xf32> to vector<8x256xf32>
    %184 = arith.mulf %181, %183 : vector<8x256xf32>
    %185 = arith.truncf %184 : vector<8x256xf32> to vector<8x256xbf16>
    %c241_i32_132 = arith.constant 241 : i32
    %186 = tpu.dynamic_rotate %155 by %c241_i32_132 dim 1 : vector<8x256xf32>, i32 -> vector<8x256xf32>
    %c6_133 = arith.constant 6 : index
    %c0_134 = arith.constant 0 : index
    %c0_135 = arith.constant 0 : index
    %187 = vector.load %arg2[%c6_133, %c0_134, %c0_135] : memref<9x8x256xf32, #tpu.memory_space<vmem>>, vector<1x8x256xf32>
    %188 = vector.shape_cast %187 : vector<1x8x256xf32> to vector<8x256xf32>
    %189 = arith.mulf %186, %188 : vector<8x256xf32>
    %190 = arith.truncf %189 : vector<8x256xf32> to vector<8x256xbf16>
    %c240_i32_136 = arith.constant 240 : i32
    %191 = tpu.dynamic_rotate %155 by %c240_i32_136 dim 1 : vector<8x256xf32>, i32 -> vector<8x256xf32>
    %c7_137 = arith.constant 7 : index
    %c0_138 = arith.constant 0 : index
    %c0_139 = arith.constant 0 : index
    %192 = vector.load %arg2[%c7_137, %c0_138, %c0_139] : memref<9x8x256xf32, #tpu.memory_space<vmem>>, vector<1x8x256xf32>
    %193 = vector.shape_cast %192 : vector<1x8x256xf32> to vector<8x256xf32>
    %194 = arith.mulf %191, %193 : vector<8x256xf32>
    %195 = arith.truncf %194 : vector<8x256xf32> to vector<8x256xbf16>
    %c239_i32_140 = arith.constant 239 : i32
    %196 = tpu.dynamic_rotate %155 by %c239_i32_140 dim 1 : vector<8x256xf32>, i32 -> vector<8x256xf32>
    %c8_141 = arith.constant 8 : index
    %c0_142 = arith.constant 0 : index
    %c0_143 = arith.constant 0 : index
    %197 = vector.load %arg2[%c8_141, %c0_142, %c0_143] : memref<9x8x256xf32, #tpu.memory_space<vmem>>, vector<1x8x256xf32>
    %198 = vector.shape_cast %197 : vector<1x8x256xf32> to vector<8x256xf32>
    %199 = arith.mulf %196, %198 : vector<8x256xf32>
    %200 = arith.truncf %199 : vector<8x256xf32> to vector<8x256xbf16>
    %201 = tpu.concatenate %164, %169, %174, %179, %180, %185, %190, %195, %200 in 0 : vector<8x256xbf16>, vector<8x256xbf16>, vector<8x256xbf16>, vector<8x256xbf16>, vector<8x256xbf16>, vector<8x256xbf16>, vector<8x256xbf16>, vector<8x256xbf16>, vector<8x256xbf16> -> vector<72x256xbf16>
    %cst_144 = arith.constant dense<0.000000e+00> : vector<8x256xf32>
    %202 = tpu.matmul %157, %201, %cst_144 {dimension_numbers = #tpu.dot_dimension_numbers<[1], [0], [0], [1], [0, 0, 1, 1], [], []>} : vector<8x72xbf16>, vector<72x256xbf16>, vector<8x256xf32> -> vector<8x256xf32>
    %203 = vector.broadcast %159 : vector<8x1xf32> to vector<8x256xf32>
    %204 = arith.addf %202, %203 : vector<8x256xf32>
    %205 = arith.addf %204, %104 : vector<8x256xf32>
    %cst_145 = arith.constant 0.000000e+00 : f32
    %206 = vector.broadcast %cst_145 : f32 to vector<8x256xf32>
    %207 = arith.maximumf %205, %206 : vector<8x256xf32>
    %c4 = arith.constant 4 : index
    %c0_146 = arith.constant 0 : index
    %c0_147 = arith.constant 0 : index
    %208 = vector.load %arg3[%c4, %c0_146, %c0_147] : memref<8x8x72xbf16, #tpu.memory_space<vmem>>, vector<1x8x72xbf16>
    %209 = vector.shape_cast %208 : vector<1x8x72xbf16> to vector<8x72xbf16>
    %c4_148 = arith.constant 4 : index
    %c0_149 = arith.constant 0 : index
    %c0_150 = arith.constant 0 : index
    %210 = vector.load %arg4[%c4_148, %c0_149, %c0_150] : memref<8x8x1xf32, #tpu.memory_space<vmem>>, vector<1x8x1xf32>
    %211 = vector.shape_cast %210 : vector<1x8x1xf32> to vector<8x1xf32>
    %c17_i32_151 = arith.constant 17 : i32
    %212 = tpu.dynamic_rotate %207 by %c17_i32_151 dim 1 : vector<8x256xf32>, i32 -> vector<8x256xf32>
    %c0_152 = arith.constant 0 : index
    %c0_153 = arith.constant 0 : index
    %c0_154 = arith.constant 0 : index
    %213 = vector.load %arg2[%c0_152, %c0_153, %c0_154] : memref<9x8x256xf32, #tpu.memory_space<vmem>>, vector<1x8x256xf32>
    %214 = vector.shape_cast %213 : vector<1x8x256xf32> to vector<8x256xf32>
    %215 = arith.mulf %212, %214 : vector<8x256xf32>
    %216 = arith.truncf %215 : vector<8x256xf32> to vector<8x256xbf16>
    %c16_i32_155 = arith.constant 16 : i32
    %217 = tpu.dynamic_rotate %207 by %c16_i32_155 dim 1 : vector<8x256xf32>, i32 -> vector<8x256xf32>
    %c1_156 = arith.constant 1 : index
    %c0_157 = arith.constant 0 : index
    %c0_158 = arith.constant 0 : index
    %218 = vector.load %arg2[%c1_156, %c0_157, %c0_158] : memref<9x8x256xf32, #tpu.memory_space<vmem>>, vector<1x8x256xf32>
    %219 = vector.shape_cast %218 : vector<1x8x256xf32> to vector<8x256xf32>
    %220 = arith.mulf %217, %219 : vector<8x256xf32>
    %221 = arith.truncf %220 : vector<8x256xf32> to vector<8x256xbf16>
    %c15_i32_159 = arith.constant 15 : i32
    %222 = tpu.dynamic_rotate %207 by %c15_i32_159 dim 1 : vector<8x256xf32>, i32 -> vector<8x256xf32>
    %c2_160 = arith.constant 2 : index
    %c0_161 = arith.constant 0 : index
    %c0_162 = arith.constant 0 : index
    %223 = vector.load %arg2[%c2_160, %c0_161, %c0_162] : memref<9x8x256xf32, #tpu.memory_space<vmem>>, vector<1x8x256xf32>
    %224 = vector.shape_cast %223 : vector<1x8x256xf32> to vector<8x256xf32>
    %225 = arith.mulf %222, %224 : vector<8x256xf32>
    %226 = arith.truncf %225 : vector<8x256xf32> to vector<8x256xbf16>
    %c1_i32_163 = arith.constant 1 : i32
    %227 = tpu.dynamic_rotate %207 by %c1_i32_163 dim 1 : vector<8x256xf32>, i32 -> vector<8x256xf32>
    %c3_164 = arith.constant 3 : index
    %c0_165 = arith.constant 0 : index
    %c0_166 = arith.constant 0 : index
    %228 = vector.load %arg2[%c3_164, %c0_165, %c0_166] : memref<9x8x256xf32, #tpu.memory_space<vmem>>, vector<1x8x256xf32>
    %229 = vector.shape_cast %228 : vector<1x8x256xf32> to vector<8x256xf32>
    %230 = arith.mulf %227, %229 : vector<8x256xf32>
    %231 = arith.truncf %230 : vector<8x256xf32> to vector<8x256xbf16>
    %232 = arith.truncf %207 : vector<8x256xf32> to vector<8x256xbf16>
    %c255_i32_167 = arith.constant 255 : i32
    %233 = tpu.dynamic_rotate %207 by %c255_i32_167 dim 1 : vector<8x256xf32>, i32 -> vector<8x256xf32>
    %c5_168 = arith.constant 5 : index
    %c0_169 = arith.constant 0 : index
    %c0_170 = arith.constant 0 : index
    %234 = vector.load %arg2[%c5_168, %c0_169, %c0_170] : memref<9x8x256xf32, #tpu.memory_space<vmem>>, vector<1x8x256xf32>
    %235 = vector.shape_cast %234 : vector<1x8x256xf32> to vector<8x256xf32>
    %236 = arith.mulf %233, %235 : vector<8x256xf32>
    %237 = arith.truncf %236 : vector<8x256xf32> to vector<8x256xbf16>
    %c241_i32_171 = arith.constant 241 : i32
    %238 = tpu.dynamic_rotate %207 by %c241_i32_171 dim 1 : vector<8x256xf32>, i32 -> vector<8x256xf32>
    %c6_172 = arith.constant 6 : index
    %c0_173 = arith.constant 0 : index
    %c0_174 = arith.constant 0 : index
    %239 = vector.load %arg2[%c6_172, %c0_173, %c0_174] : memref<9x8x256xf32, #tpu.memory_space<vmem>>, vector<1x8x256xf32>
    %240 = vector.shape_cast %239 : vector<1x8x256xf32> to vector<8x256xf32>
    %241 = arith.mulf %238, %240 : vector<8x256xf32>
    %242 = arith.truncf %241 : vector<8x256xf32> to vector<8x256xbf16>
    %c240_i32_175 = arith.constant 240 : i32
    %243 = tpu.dynamic_rotate %207 by %c240_i32_175 dim 1 : vector<8x256xf32>, i32 -> vector<8x256xf32>
    %c7_176 = arith.constant 7 : index
    %c0_177 = arith.constant 0 : index
    %c0_178 = arith.constant 0 : index
    %244 = vector.load %arg2[%c7_176, %c0_177, %c0_178] : memref<9x8x256xf32, #tpu.memory_space<vmem>>, vector<1x8x256xf32>
    %245 = vector.shape_cast %244 : vector<1x8x256xf32> to vector<8x256xf32>
    %246 = arith.mulf %243, %245 : vector<8x256xf32>
    %247 = arith.truncf %246 : vector<8x256xf32> to vector<8x256xbf16>
    %c239_i32_179 = arith.constant 239 : i32
    %248 = tpu.dynamic_rotate %207 by %c239_i32_179 dim 1 : vector<8x256xf32>, i32 -> vector<8x256xf32>
    %c8_180 = arith.constant 8 : index
    %c0_181 = arith.constant 0 : index
    %c0_182 = arith.constant 0 : index
    %249 = vector.load %arg2[%c8_180, %c0_181, %c0_182] : memref<9x8x256xf32, #tpu.memory_space<vmem>>, vector<1x8x256xf32>
    %250 = vector.shape_cast %249 : vector<1x8x256xf32> to vector<8x256xf32>
    %251 = arith.mulf %248, %250 : vector<8x256xf32>
    %252 = arith.truncf %251 : vector<8x256xf32> to vector<8x256xbf16>
    %253 = tpu.concatenate %216, %221, %226, %231, %232, %237, %242, %247, %252 in 0 : vector<8x256xbf16>, vector<8x256xbf16>, vector<8x256xbf16>, vector<8x256xbf16>, vector<8x256xbf16>, vector<8x256xbf16>, vector<8x256xbf16>, vector<8x256xbf16>, vector<8x256xbf16> -> vector<72x256xbf16>
    %cst_183 = arith.constant dense<0.000000e+00> : vector<8x256xf32>
    %254 = tpu.matmul %209, %253, %cst_183 {dimension_numbers = #tpu.dot_dimension_numbers<[1], [0], [0], [1], [0, 0, 1, 1], [], []>} : vector<8x72xbf16>, vector<72x256xbf16>, vector<8x256xf32> -> vector<8x256xf32>
    %255 = vector.broadcast %211 : vector<8x1xf32> to vector<8x256xf32>
    %256 = arith.addf %254, %255 : vector<8x256xf32>
    %cst_184 = arith.constant 0.000000e+00 : f32
    %257 = vector.broadcast %cst_184 : f32 to vector<8x256xf32>
    %258 = arith.maximumf %256, %257 : vector<8x256xf32>
    %c5_185 = arith.constant 5 : index
    %c0_186 = arith.constant 0 : index
    %c0_187 = arith.constant 0 : index
    %259 = vector.load %arg3[%c5_185, %c0_186, %c0_187] : memref<8x8x72xbf16, #tpu.memory_space<vmem>>, vector<1x8x72xbf16>
    %260 = vector.shape_cast %259 : vector<1x8x72xbf16> to vector<8x72xbf16>
    %c5_188 = arith.constant 5 : index
    %c0_189 = arith.constant 0 : index
    %c0_190 = arith.constant 0 : index
    %261 = vector.load %arg4[%c5_188, %c0_189, %c0_190] : memref<8x8x1xf32, #tpu.memory_space<vmem>>, vector<1x8x1xf32>
    %262 = vector.shape_cast %261 : vector<1x8x1xf32> to vector<8x1xf32>
    %c17_i32_191 = arith.constant 17 : i32
    %263 = tpu.dynamic_rotate %258 by %c17_i32_191 dim 1 : vector<8x256xf32>, i32 -> vector<8x256xf32>
    %c0_192 = arith.constant 0 : index
    %c0_193 = arith.constant 0 : index
    %c0_194 = arith.constant 0 : index
    %264 = vector.load %arg2[%c0_192, %c0_193, %c0_194] : memref<9x8x256xf32, #tpu.memory_space<vmem>>, vector<1x8x256xf32>
    %265 = vector.shape_cast %264 : vector<1x8x256xf32> to vector<8x256xf32>
    %266 = arith.mulf %263, %265 : vector<8x256xf32>
    %267 = arith.truncf %266 : vector<8x256xf32> to vector<8x256xbf16>
    %c16_i32_195 = arith.constant 16 : i32
    %268 = tpu.dynamic_rotate %258 by %c16_i32_195 dim 1 : vector<8x256xf32>, i32 -> vector<8x256xf32>
    %c1_196 = arith.constant 1 : index
    %c0_197 = arith.constant 0 : index
    %c0_198 = arith.constant 0 : index
    %269 = vector.load %arg2[%c1_196, %c0_197, %c0_198] : memref<9x8x256xf32, #tpu.memory_space<vmem>>, vector<1x8x256xf32>
    %270 = vector.shape_cast %269 : vector<1x8x256xf32> to vector<8x256xf32>
    %271 = arith.mulf %268, %270 : vector<8x256xf32>
    %272 = arith.truncf %271 : vector<8x256xf32> to vector<8x256xbf16>
    %c15_i32_199 = arith.constant 15 : i32
    %273 = tpu.dynamic_rotate %258 by %c15_i32_199 dim 1 : vector<8x256xf32>, i32 -> vector<8x256xf32>
    %c2_200 = arith.constant 2 : index
    %c0_201 = arith.constant 0 : index
    %c0_202 = arith.constant 0 : index
    %274 = vector.load %arg2[%c2_200, %c0_201, %c0_202] : memref<9x8x256xf32, #tpu.memory_space<vmem>>, vector<1x8x256xf32>
    %275 = vector.shape_cast %274 : vector<1x8x256xf32> to vector<8x256xf32>
    %276 = arith.mulf %273, %275 : vector<8x256xf32>
    %277 = arith.truncf %276 : vector<8x256xf32> to vector<8x256xbf16>
    %c1_i32_203 = arith.constant 1 : i32
    %278 = tpu.dynamic_rotate %258 by %c1_i32_203 dim 1 : vector<8x256xf32>, i32 -> vector<8x256xf32>
    %c3_204 = arith.constant 3 : index
    %c0_205 = arith.constant 0 : index
    %c0_206 = arith.constant 0 : index
    %279 = vector.load %arg2[%c3_204, %c0_205, %c0_206] : memref<9x8x256xf32, #tpu.memory_space<vmem>>, vector<1x8x256xf32>
    %280 = vector.shape_cast %279 : vector<1x8x256xf32> to vector<8x256xf32>
    %281 = arith.mulf %278, %280 : vector<8x256xf32>
    %282 = arith.truncf %281 : vector<8x256xf32> to vector<8x256xbf16>
    %283 = arith.truncf %258 : vector<8x256xf32> to vector<8x256xbf16>
    %c255_i32_207 = arith.constant 255 : i32
    %284 = tpu.dynamic_rotate %258 by %c255_i32_207 dim 1 : vector<8x256xf32>, i32 -> vector<8x256xf32>
    %c5_208 = arith.constant 5 : index
    %c0_209 = arith.constant 0 : index
    %c0_210 = arith.constant 0 : index
    %285 = vector.load %arg2[%c5_208, %c0_209, %c0_210] : memref<9x8x256xf32, #tpu.memory_space<vmem>>, vector<1x8x256xf32>
    %286 = vector.shape_cast %285 : vector<1x8x256xf32> to vector<8x256xf32>
    %287 = arith.mulf %284, %286 : vector<8x256xf32>
    %288 = arith.truncf %287 : vector<8x256xf32> to vector<8x256xbf16>
    %c241_i32_211 = arith.constant 241 : i32
    %289 = tpu.dynamic_rotate %258 by %c241_i32_211 dim 1 : vector<8x256xf32>, i32 -> vector<8x256xf32>
    %c6_212 = arith.constant 6 : index
    %c0_213 = arith.constant 0 : index
    %c0_214 = arith.constant 0 : index
    %290 = vector.load %arg2[%c6_212, %c0_213, %c0_214] : memref<9x8x256xf32, #tpu.memory_space<vmem>>, vector<1x8x256xf32>
    %291 = vector.shape_cast %290 : vector<1x8x256xf32> to vector<8x256xf32>
    %292 = arith.mulf %289, %291 : vector<8x256xf32>
    %293 = arith.truncf %292 : vector<8x256xf32> to vector<8x256xbf16>
    %c240_i32_215 = arith.constant 240 : i32
    %294 = tpu.dynamic_rotate %258 by %c240_i32_215 dim 1 : vector<8x256xf32>, i32 -> vector<8x256xf32>
    %c7_216 = arith.constant 7 : index
    %c0_217 = arith.constant 0 : index
    %c0_218 = arith.constant 0 : index
    %295 = vector.load %arg2[%c7_216, %c0_217, %c0_218] : memref<9x8x256xf32, #tpu.memory_space<vmem>>, vector<1x8x256xf32>
    %296 = vector.shape_cast %295 : vector<1x8x256xf32> to vector<8x256xf32>
    %297 = arith.mulf %294, %296 : vector<8x256xf32>
    %298 = arith.truncf %297 : vector<8x256xf32> to vector<8x256xbf16>
    %c239_i32_219 = arith.constant 239 : i32
    %299 = tpu.dynamic_rotate %258 by %c239_i32_219 dim 1 : vector<8x256xf32>, i32 -> vector<8x256xf32>
    %c8_220 = arith.constant 8 : index
    %c0_221 = arith.constant 0 : index
    %c0_222 = arith.constant 0 : index
    %300 = vector.load %arg2[%c8_220, %c0_221, %c0_222] : memref<9x8x256xf32, #tpu.memory_space<vmem>>, vector<1x8x256xf32>
    %301 = vector.shape_cast %300 : vector<1x8x256xf32> to vector<8x256xf32>
    %302 = arith.mulf %299, %301 : vector<8x256xf32>
    %303 = arith.truncf %302 : vector<8x256xf32> to vector<8x256xbf16>
    %304 = tpu.concatenate %267, %272, %277, %282, %283, %288, %293, %298, %303 in 0 : vector<8x256xbf16>, vector<8x256xbf16>, vector<8x256xbf16>, vector<8x256xbf16>, vector<8x256xbf16>, vector<8x256xbf16>, vector<8x256xbf16>, vector<8x256xbf16>, vector<8x256xbf16> -> vector<72x256xbf16>
    %cst_223 = arith.constant dense<0.000000e+00> : vector<8x256xf32>
    %305 = tpu.matmul %260, %304, %cst_223 {dimension_numbers = #tpu.dot_dimension_numbers<[1], [0], [0], [1], [0, 0, 1, 1], [], []>} : vector<8x72xbf16>, vector<72x256xbf16>, vector<8x256xf32> -> vector<8x256xf32>
    %306 = vector.broadcast %262 : vector<8x1xf32> to vector<8x256xf32>
    %307 = arith.addf %305, %306 : vector<8x256xf32>
    %308 = arith.addf %307, %207 : vector<8x256xf32>
    %cst_224 = arith.constant 0.000000e+00 : f32
    %309 = vector.broadcast %cst_224 : f32 to vector<8x256xf32>
    %310 = arith.maximumf %308, %309 : vector<8x256xf32>
    %c6_225 = arith.constant 6 : index
    %c0_226 = arith.constant 0 : index
    %c0_227 = arith.constant 0 : index
    %311 = vector.load %arg3[%c6_225, %c0_226, %c0_227] : memref<8x8x72xbf16, #tpu.memory_space<vmem>>, vector<1x8x72xbf16>
    %312 = vector.shape_cast %311 : vector<1x8x72xbf16> to vector<8x72xbf16>
    %c6_228 = arith.constant 6 : index
    %c0_229 = arith.constant 0 : index
    %c0_230 = arith.constant 0 : index
    %313 = vector.load %arg4[%c6_228, %c0_229, %c0_230] : memref<8x8x1xf32, #tpu.memory_space<vmem>>, vector<1x8x1xf32>
    %314 = vector.shape_cast %313 : vector<1x8x1xf32> to vector<8x1xf32>
    %c17_i32_231 = arith.constant 17 : i32
    %315 = tpu.dynamic_rotate %310 by %c17_i32_231 dim 1 : vector<8x256xf32>, i32 -> vector<8x256xf32>
    %c0_232 = arith.constant 0 : index
    %c0_233 = arith.constant 0 : index
    %c0_234 = arith.constant 0 : index
    %316 = vector.load %arg2[%c0_232, %c0_233, %c0_234] : memref<9x8x256xf32, #tpu.memory_space<vmem>>, vector<1x8x256xf32>
    %317 = vector.shape_cast %316 : vector<1x8x256xf32> to vector<8x256xf32>
    %318 = arith.mulf %315, %317 : vector<8x256xf32>
    %319 = arith.truncf %318 : vector<8x256xf32> to vector<8x256xbf16>
    %c16_i32_235 = arith.constant 16 : i32
    %320 = tpu.dynamic_rotate %310 by %c16_i32_235 dim 1 : vector<8x256xf32>, i32 -> vector<8x256xf32>
    %c1_236 = arith.constant 1 : index
    %c0_237 = arith.constant 0 : index
    %c0_238 = arith.constant 0 : index
    %321 = vector.load %arg2[%c1_236, %c0_237, %c0_238] : memref<9x8x256xf32, #tpu.memory_space<vmem>>, vector<1x8x256xf32>
    %322 = vector.shape_cast %321 : vector<1x8x256xf32> to vector<8x256xf32>
    %323 = arith.mulf %320, %322 : vector<8x256xf32>
    %324 = arith.truncf %323 : vector<8x256xf32> to vector<8x256xbf16>
    %c15_i32_239 = arith.constant 15 : i32
    %325 = tpu.dynamic_rotate %310 by %c15_i32_239 dim 1 : vector<8x256xf32>, i32 -> vector<8x256xf32>
    %c2_240 = arith.constant 2 : index
    %c0_241 = arith.constant 0 : index
    %c0_242 = arith.constant 0 : index
    %326 = vector.load %arg2[%c2_240, %c0_241, %c0_242] : memref<9x8x256xf32, #tpu.memory_space<vmem>>, vector<1x8x256xf32>
    %327 = vector.shape_cast %326 : vector<1x8x256xf32> to vector<8x256xf32>
    %328 = arith.mulf %325, %327 : vector<8x256xf32>
    %329 = arith.truncf %328 : vector<8x256xf32> to vector<8x256xbf16>
    %c1_i32_243 = arith.constant 1 : i32
    %330 = tpu.dynamic_rotate %310 by %c1_i32_243 dim 1 : vector<8x256xf32>, i32 -> vector<8x256xf32>
    %c3_244 = arith.constant 3 : index
    %c0_245 = arith.constant 0 : index
    %c0_246 = arith.constant 0 : index
    %331 = vector.load %arg2[%c3_244, %c0_245, %c0_246] : memref<9x8x256xf32, #tpu.memory_space<vmem>>, vector<1x8x256xf32>
    %332 = vector.shape_cast %331 : vector<1x8x256xf32> to vector<8x256xf32>
    %333 = arith.mulf %330, %332 : vector<8x256xf32>
    %334 = arith.truncf %333 : vector<8x256xf32> to vector<8x256xbf16>
    %335 = arith.truncf %310 : vector<8x256xf32> to vector<8x256xbf16>
    %c255_i32_247 = arith.constant 255 : i32
    %336 = tpu.dynamic_rotate %310 by %c255_i32_247 dim 1 : vector<8x256xf32>, i32 -> vector<8x256xf32>
    %c5_248 = arith.constant 5 : index
    %c0_249 = arith.constant 0 : index
    %c0_250 = arith.constant 0 : index
    %337 = vector.load %arg2[%c5_248, %c0_249, %c0_250] : memref<9x8x256xf32, #tpu.memory_space<vmem>>, vector<1x8x256xf32>
    %338 = vector.shape_cast %337 : vector<1x8x256xf32> to vector<8x256xf32>
    %339 = arith.mulf %336, %338 : vector<8x256xf32>
    %340 = arith.truncf %339 : vector<8x256xf32> to vector<8x256xbf16>
    %c241_i32_251 = arith.constant 241 : i32
    %341 = tpu.dynamic_rotate %310 by %c241_i32_251 dim 1 : vector<8x256xf32>, i32 -> vector<8x256xf32>
    %c6_252 = arith.constant 6 : index
    %c0_253 = arith.constant 0 : index
    %c0_254 = arith.constant 0 : index
    %342 = vector.load %arg2[%c6_252, %c0_253, %c0_254] : memref<9x8x256xf32, #tpu.memory_space<vmem>>, vector<1x8x256xf32>
    %343 = vector.shape_cast %342 : vector<1x8x256xf32> to vector<8x256xf32>
    %344 = arith.mulf %341, %343 : vector<8x256xf32>
    %345 = arith.truncf %344 : vector<8x256xf32> to vector<8x256xbf16>
    %c240_i32_255 = arith.constant 240 : i32
    %346 = tpu.dynamic_rotate %310 by %c240_i32_255 dim 1 : vector<8x256xf32>, i32 -> vector<8x256xf32>
    %c7_256 = arith.constant 7 : index
    %c0_257 = arith.constant 0 : index
    %c0_258 = arith.constant 0 : index
    %347 = vector.load %arg2[%c7_256, %c0_257, %c0_258] : memref<9x8x256xf32, #tpu.memory_space<vmem>>, vector<1x8x256xf32>
    %348 = vector.shape_cast %347 : vector<1x8x256xf32> to vector<8x256xf32>
    %349 = arith.mulf %346, %348 : vector<8x256xf32>
    %350 = arith.truncf %349 : vector<8x256xf32> to vector<8x256xbf16>
    %c239_i32_259 = arith.constant 239 : i32
    %351 = tpu.dynamic_rotate %310 by %c239_i32_259 dim 1 : vector<8x256xf32>, i32 -> vector<8x256xf32>
    %c8_260 = arith.constant 8 : index
    %c0_261 = arith.constant 0 : index
    %c0_262 = arith.constant 0 : index
    %352 = vector.load %arg2[%c8_260, %c0_261, %c0_262] : memref<9x8x256xf32, #tpu.memory_space<vmem>>, vector<1x8x256xf32>
    %353 = vector.shape_cast %352 : vector<1x8x256xf32> to vector<8x256xf32>
    %354 = arith.mulf %351, %353 : vector<8x256xf32>
    %355 = arith.truncf %354 : vector<8x256xf32> to vector<8x256xbf16>
    %356 = tpu.concatenate %319, %324, %329, %334, %335, %340, %345, %350, %355 in 0 : vector<8x256xbf16>, vector<8x256xbf16>, vector<8x256xbf16>, vector<8x256xbf16>, vector<8x256xbf16>, vector<8x256xbf16>, vector<8x256xbf16>, vector<8x256xbf16>, vector<8x256xbf16> -> vector<72x256xbf16>
    %cst_263 = arith.constant dense<0.000000e+00> : vector<8x256xf32>
    %357 = tpu.matmul %312, %356, %cst_263 {dimension_numbers = #tpu.dot_dimension_numbers<[1], [0], [0], [1], [0, 0, 1, 1], [], []>} : vector<8x72xbf16>, vector<72x256xbf16>, vector<8x256xf32> -> vector<8x256xf32>
    %358 = vector.broadcast %314 : vector<8x1xf32> to vector<8x256xf32>
    %359 = arith.addf %357, %358 : vector<8x256xf32>
    %cst_264 = arith.constant 0.000000e+00 : f32
    %360 = vector.broadcast %cst_264 : f32 to vector<8x256xf32>
    %361 = arith.maximumf %359, %360 : vector<8x256xf32>
    %c7_265 = arith.constant 7 : index
    %c0_266 = arith.constant 0 : index
    %c0_267 = arith.constant 0 : index
    %362 = vector.load %arg3[%c7_265, %c0_266, %c0_267] : memref<8x8x72xbf16, #tpu.memory_space<vmem>>, vector<1x8x72xbf16>
    %363 = vector.shape_cast %362 : vector<1x8x72xbf16> to vector<8x72xbf16>
    %c7_268 = arith.constant 7 : index
    %c0_269 = arith.constant 0 : index
    %c0_270 = arith.constant 0 : index
    %364 = vector.load %arg4[%c7_268, %c0_269, %c0_270] : memref<8x8x1xf32, #tpu.memory_space<vmem>>, vector<1x8x1xf32>
    %365 = vector.shape_cast %364 : vector<1x8x1xf32> to vector<8x1xf32>
    %c17_i32_271 = arith.constant 17 : i32
    %366 = tpu.dynamic_rotate %361 by %c17_i32_271 dim 1 : vector<8x256xf32>, i32 -> vector<8x256xf32>
    %c0_272 = arith.constant 0 : index
    %c0_273 = arith.constant 0 : index
    %c0_274 = arith.constant 0 : index
    %367 = vector.load %arg2[%c0_272, %c0_273, %c0_274] : memref<9x8x256xf32, #tpu.memory_space<vmem>>, vector<1x8x256xf32>
    %368 = vector.shape_cast %367 : vector<1x8x256xf32> to vector<8x256xf32>
    %369 = arith.mulf %366, %368 : vector<8x256xf32>
    %370 = arith.truncf %369 : vector<8x256xf32> to vector<8x256xbf16>
    %c16_i32_275 = arith.constant 16 : i32
    %371 = tpu.dynamic_rotate %361 by %c16_i32_275 dim 1 : vector<8x256xf32>, i32 -> vector<8x256xf32>
    %c1_276 = arith.constant 1 : index
    %c0_277 = arith.constant 0 : index
    %c0_278 = arith.constant 0 : index
    %372 = vector.load %arg2[%c1_276, %c0_277, %c0_278] : memref<9x8x256xf32, #tpu.memory_space<vmem>>, vector<1x8x256xf32>
    %373 = vector.shape_cast %372 : vector<1x8x256xf32> to vector<8x256xf32>
    %374 = arith.mulf %371, %373 : vector<8x256xf32>
    %375 = arith.truncf %374 : vector<8x256xf32> to vector<8x256xbf16>
    %c15_i32_279 = arith.constant 15 : i32
    %376 = tpu.dynamic_rotate %361 by %c15_i32_279 dim 1 : vector<8x256xf32>, i32 -> vector<8x256xf32>
    %c2_280 = arith.constant 2 : index
    %c0_281 = arith.constant 0 : index
    %c0_282 = arith.constant 0 : index
    %377 = vector.load %arg2[%c2_280, %c0_281, %c0_282] : memref<9x8x256xf32, #tpu.memory_space<vmem>>, vector<1x8x256xf32>
    %378 = vector.shape_cast %377 : vector<1x8x256xf32> to vector<8x256xf32>
    %379 = arith.mulf %376, %378 : vector<8x256xf32>
    %380 = arith.truncf %379 : vector<8x256xf32> to vector<8x256xbf16>
    %c1_i32_283 = arith.constant 1 : i32
    %381 = tpu.dynamic_rotate %361 by %c1_i32_283 dim 1 : vector<8x256xf32>, i32 -> vector<8x256xf32>
    %c3_284 = arith.constant 3 : index
    %c0_285 = arith.constant 0 : index
    %c0_286 = arith.constant 0 : index
    %382 = vector.load %arg2[%c3_284, %c0_285, %c0_286] : memref<9x8x256xf32, #tpu.memory_space<vmem>>, vector<1x8x256xf32>
    %383 = vector.shape_cast %382 : vector<1x8x256xf32> to vector<8x256xf32>
    %384 = arith.mulf %381, %383 : vector<8x256xf32>
    %385 = arith.truncf %384 : vector<8x256xf32> to vector<8x256xbf16>
    %386 = arith.truncf %361 : vector<8x256xf32> to vector<8x256xbf16>
    %c255_i32_287 = arith.constant 255 : i32
    %387 = tpu.dynamic_rotate %361 by %c255_i32_287 dim 1 : vector<8x256xf32>, i32 -> vector<8x256xf32>
    %c5_288 = arith.constant 5 : index
    %c0_289 = arith.constant 0 : index
    %c0_290 = arith.constant 0 : index
    %388 = vector.load %arg2[%c5_288, %c0_289, %c0_290] : memref<9x8x256xf32, #tpu.memory_space<vmem>>, vector<1x8x256xf32>
    %389 = vector.shape_cast %388 : vector<1x8x256xf32> to vector<8x256xf32>
    %390 = arith.mulf %387, %389 : vector<8x256xf32>
    %391 = arith.truncf %390 : vector<8x256xf32> to vector<8x256xbf16>
    %c241_i32_291 = arith.constant 241 : i32
    %392 = tpu.dynamic_rotate %361 by %c241_i32_291 dim 1 : vector<8x256xf32>, i32 -> vector<8x256xf32>
    %c6_292 = arith.constant 6 : index
    %c0_293 = arith.constant 0 : index
    %c0_294 = arith.constant 0 : index
    %393 = vector.load %arg2[%c6_292, %c0_293, %c0_294] : memref<9x8x256xf32, #tpu.memory_space<vmem>>, vector<1x8x256xf32>
    %394 = vector.shape_cast %393 : vector<1x8x256xf32> to vector<8x256xf32>
    %395 = arith.mulf %392, %394 : vector<8x256xf32>
    %396 = arith.truncf %395 : vector<8x256xf32> to vector<8x256xbf16>
    %c240_i32_295 = arith.constant 240 : i32
    %397 = tpu.dynamic_rotate %361 by %c240_i32_295 dim 1 : vector<8x256xf32>, i32 -> vector<8x256xf32>
    %c7_296 = arith.constant 7 : index
    %c0_297 = arith.constant 0 : index
    %c0_298 = arith.constant 0 : index
    %398 = vector.load %arg2[%c7_296, %c0_297, %c0_298] : memref<9x8x256xf32, #tpu.memory_space<vmem>>, vector<1x8x256xf32>
    %399 = vector.shape_cast %398 : vector<1x8x256xf32> to vector<8x256xf32>
    %400 = arith.mulf %397, %399 : vector<8x256xf32>
    %401 = arith.truncf %400 : vector<8x256xf32> to vector<8x256xbf16>
    %c239_i32_299 = arith.constant 239 : i32
    %402 = tpu.dynamic_rotate %361 by %c239_i32_299 dim 1 : vector<8x256xf32>, i32 -> vector<8x256xf32>
    %c8_300 = arith.constant 8 : index
    %c0_301 = arith.constant 0 : index
    %c0_302 = arith.constant 0 : index
    %403 = vector.load %arg2[%c8_300, %c0_301, %c0_302] : memref<9x8x256xf32, #tpu.memory_space<vmem>>, vector<1x8x256xf32>
    %404 = vector.shape_cast %403 : vector<1x8x256xf32> to vector<8x256xf32>
    %405 = arith.mulf %402, %404 : vector<8x256xf32>
    %406 = arith.truncf %405 : vector<8x256xf32> to vector<8x256xbf16>
    %407 = tpu.concatenate %370, %375, %380, %385, %386, %391, %396, %401, %406 in 0 : vector<8x256xbf16>, vector<8x256xbf16>, vector<8x256xbf16>, vector<8x256xbf16>, vector<8x256xbf16>, vector<8x256xbf16>, vector<8x256xbf16>, vector<8x256xbf16>, vector<8x256xbf16> -> vector<72x256xbf16>
    %cst_303 = arith.constant dense<0.000000e+00> : vector<8x256xf32>
    %408 = tpu.matmul %363, %407, %cst_303 {dimension_numbers = #tpu.dot_dimension_numbers<[1], [0], [0], [1], [0, 0, 1, 1], [], []>} : vector<8x72xbf16>, vector<72x256xbf16>, vector<8x256xf32> -> vector<8x256xf32>
    %409 = vector.broadcast %365 : vector<8x1xf32> to vector<8x256xf32>
    %410 = arith.addf %408, %409 : vector<8x256xf32>
    %411 = arith.addf %410, %310 : vector<8x256xf32>
    %cst_304 = arith.constant 0.000000e+00 : f32
    %412 = vector.broadcast %cst_304 : f32 to vector<8x256xf32>
    %413 = arith.maximumf %411, %412 : vector<8x256xf32>
    %c0_305 = arith.constant 0 : index
    %c0_306 = arith.constant 0 : index
    %414 = vector.load %arg5[%c0_305, %c0_306] : memref<1x72xbf16, #tpu.memory_space<vmem>>, vector<1x72xbf16>
    %c0_307 = arith.constant 0 : index
    %c0_308 = arith.constant 0 : index
    %415 = vector.load %arg6[%c0_307, %c0_308] : memref<1x1xf32, #tpu.memory_space<vmem>>, vector<1x1xf32>
    %c17_i32_309 = arith.constant 17 : i32
    %416 = tpu.dynamic_rotate %413 by %c17_i32_309 dim 1 : vector<8x256xf32>, i32 -> vector<8x256xf32>
    %c0_310 = arith.constant 0 : index
    %c0_311 = arith.constant 0 : index
    %c0_312 = arith.constant 0 : index
    %417 = vector.load %arg2[%c0_310, %c0_311, %c0_312] : memref<9x8x256xf32, #tpu.memory_space<vmem>>, vector<1x8x256xf32>
    %418 = vector.shape_cast %417 : vector<1x8x256xf32> to vector<8x256xf32>
    %419 = arith.mulf %416, %418 : vector<8x256xf32>
    %420 = arith.truncf %419 : vector<8x256xf32> to vector<8x256xbf16>
    %c16_i32_313 = arith.constant 16 : i32
    %421 = tpu.dynamic_rotate %413 by %c16_i32_313 dim 1 : vector<8x256xf32>, i32 -> vector<8x256xf32>
    %c1_314 = arith.constant 1 : index
    %c0_315 = arith.constant 0 : index
    %c0_316 = arith.constant 0 : index
    %422 = vector.load %arg2[%c1_314, %c0_315, %c0_316] : memref<9x8x256xf32, #tpu.memory_space<vmem>>, vector<1x8x256xf32>
    %423 = vector.shape_cast %422 : vector<1x8x256xf32> to vector<8x256xf32>
    %424 = arith.mulf %421, %423 : vector<8x256xf32>
    %425 = arith.truncf %424 : vector<8x256xf32> to vector<8x256xbf16>
    %c15_i32_317 = arith.constant 15 : i32
    %426 = tpu.dynamic_rotate %413 by %c15_i32_317 dim 1 : vector<8x256xf32>, i32 -> vector<8x256xf32>
    %c2_318 = arith.constant 2 : index
    %c0_319 = arith.constant 0 : index
    %c0_320 = arith.constant 0 : index
    %427 = vector.load %arg2[%c2_318, %c0_319, %c0_320] : memref<9x8x256xf32, #tpu.memory_space<vmem>>, vector<1x8x256xf32>
    %428 = vector.shape_cast %427 : vector<1x8x256xf32> to vector<8x256xf32>
    %429 = arith.mulf %426, %428 : vector<8x256xf32>
    %430 = arith.truncf %429 : vector<8x256xf32> to vector<8x256xbf16>
    %c1_i32_321 = arith.constant 1 : i32
    %431 = tpu.dynamic_rotate %413 by %c1_i32_321 dim 1 : vector<8x256xf32>, i32 -> vector<8x256xf32>
    %c3_322 = arith.constant 3 : index
    %c0_323 = arith.constant 0 : index
    %c0_324 = arith.constant 0 : index
    %432 = vector.load %arg2[%c3_322, %c0_323, %c0_324] : memref<9x8x256xf32, #tpu.memory_space<vmem>>, vector<1x8x256xf32>
    %433 = vector.shape_cast %432 : vector<1x8x256xf32> to vector<8x256xf32>
    %434 = arith.mulf %431, %433 : vector<8x256xf32>
    %435 = arith.truncf %434 : vector<8x256xf32> to vector<8x256xbf16>
    %436 = arith.truncf %413 : vector<8x256xf32> to vector<8x256xbf16>
    %c255_i32_325 = arith.constant 255 : i32
    %437 = tpu.dynamic_rotate %413 by %c255_i32_325 dim 1 : vector<8x256xf32>, i32 -> vector<8x256xf32>
    %c5_326 = arith.constant 5 : index
    %c0_327 = arith.constant 0 : index
    %c0_328 = arith.constant 0 : index
    %438 = vector.load %arg2[%c5_326, %c0_327, %c0_328] : memref<9x8x256xf32, #tpu.memory_space<vmem>>, vector<1x8x256xf32>
    %439 = vector.shape_cast %438 : vector<1x8x256xf32> to vector<8x256xf32>
    %440 = arith.mulf %437, %439 : vector<8x256xf32>
    %441 = arith.truncf %440 : vector<8x256xf32> to vector<8x256xbf16>
    %c241_i32_329 = arith.constant 241 : i32
    %442 = tpu.dynamic_rotate %413 by %c241_i32_329 dim 1 : vector<8x256xf32>, i32 -> vector<8x256xf32>
    %c6_330 = arith.constant 6 : index
    %c0_331 = arith.constant 0 : index
    %c0_332 = arith.constant 0 : index
    %443 = vector.load %arg2[%c6_330, %c0_331, %c0_332] : memref<9x8x256xf32, #tpu.memory_space<vmem>>, vector<1x8x256xf32>
    %444 = vector.shape_cast %443 : vector<1x8x256xf32> to vector<8x256xf32>
    %445 = arith.mulf %442, %444 : vector<8x256xf32>
    %446 = arith.truncf %445 : vector<8x256xf32> to vector<8x256xbf16>
    %c240_i32_333 = arith.constant 240 : i32
    %447 = tpu.dynamic_rotate %413 by %c240_i32_333 dim 1 : vector<8x256xf32>, i32 -> vector<8x256xf32>
    %c7_334 = arith.constant 7 : index
    %c0_335 = arith.constant 0 : index
    %c0_336 = arith.constant 0 : index
    %448 = vector.load %arg2[%c7_334, %c0_335, %c0_336] : memref<9x8x256xf32, #tpu.memory_space<vmem>>, vector<1x8x256xf32>
    %449 = vector.shape_cast %448 : vector<1x8x256xf32> to vector<8x256xf32>
    %450 = arith.mulf %447, %449 : vector<8x256xf32>
    %451 = arith.truncf %450 : vector<8x256xf32> to vector<8x256xbf16>
    %c239_i32_337 = arith.constant 239 : i32
    %452 = tpu.dynamic_rotate %413 by %c239_i32_337 dim 1 : vector<8x256xf32>, i32 -> vector<8x256xf32>
    %c8_338 = arith.constant 8 : index
    %c0_339 = arith.constant 0 : index
    %c0_340 = arith.constant 0 : index
    %453 = vector.load %arg2[%c8_338, %c0_339, %c0_340] : memref<9x8x256xf32, #tpu.memory_space<vmem>>, vector<1x8x256xf32>
    %454 = vector.shape_cast %453 : vector<1x8x256xf32> to vector<8x256xf32>
    %455 = arith.mulf %452, %454 : vector<8x256xf32>
    %456 = arith.truncf %455 : vector<8x256xf32> to vector<8x256xbf16>
    %457 = tpu.concatenate %420, %425, %430, %435, %436, %441, %446, %451, %456 in 0 : vector<8x256xbf16>, vector<8x256xbf16>, vector<8x256xbf16>, vector<8x256xbf16>, vector<8x256xbf16>, vector<8x256xbf16>, vector<8x256xbf16>, vector<8x256xbf16>, vector<8x256xbf16> -> vector<72x256xbf16>
    %cst_341 = arith.constant dense<0.000000e+00> : vector<1x256xf32>
    %458 = tpu.matmul %414, %457, %cst_341 {dimension_numbers = #tpu.dot_dimension_numbers<[1], [0], [0], [1], [0, 0, 1, 1], [], []>} : vector<1x72xbf16>, vector<72x256xbf16>, vector<1x256xf32> -> vector<1x256xf32>
    %459 = vector.broadcast %415 : vector<1x1xf32> to vector<1x256xf32>
    %460 = arith.addf %458, %459 : vector<1x256xf32>
    %461 = arith.negf %460 : vector<1x256xf32>
    %462 = math.exp %461 : vector<1x256xf32>
    %cst_342 = arith.constant 1.000000e+00 : f32
    %463 = vector.broadcast %cst_342 : f32 to vector<1x256xf32>
    %464 = arith.addf %463, %462 : vector<1x256xf32>
    %465 = arith.divf %463, %464 : vector<1x256xf32>
    %c0_343 = arith.constant 0 : index
    %c0_344 = arith.constant 0 : index
    %c0_345 = arith.constant 0 : index
    %466 = vector.load %arg7[%c0_343, %c0_344, %c0_345] : memref<1x1x256xf32, #tpu.memory_space<vmem>>, vector<1x1x256xf32>
    %467 = vector.shape_cast %466 : vector<1x1x256xf32> to vector<1x256xf32>
    %468 = vector.shape_cast %465 : vector<1x256xf32> to vector<1x1x256xf32>
    tpu.vector_store %arg7[%c0_343, %c0_344, %c0_345], %468 {strides = array<i32>} : memref<1x1x256xf32, #tpu.memory_space<vmem>>, vector<1x1x256xf32>,
    return
  }
  func.func @transform_0(%arg0: i32) -> (i32, i32, i32) {
    %c0_i32 = arith.constant 0 : i32
    %c0_i32_0 = arith.constant 0 : i32
    %c0_i32_1 = arith.constant 0 : i32
    return %arg0, %c0_i32, %c0_i32_0 : i32, i32, i32
  }
  func.func @transform_1(%arg0: i32) -> (i32, i32, i32) {
    %c0_i32 = arith.constant 0 : i32
    %c0_i32_0 = arith.constant 0 : i32
    %c0_i32_1 = arith.constant 0 : i32
    %c0_i32_2 = arith.constant 0 : i32
    return %c0_i32, %c0_i32_0, %c0_i32_1 : i32, i32, i32
  }
  func.func @transform_2(%arg0: i32) -> (i32, i32, i32) {
    %c0_i32 = arith.constant 0 : i32
    %c0_i32_0 = arith.constant 0 : i32
    %c0_i32_1 = arith.constant 0 : i32
    %c0_i32_2 = arith.constant 0 : i32
    return %c0_i32, %c0_i32_0, %c0_i32_1 : i32, i32, i32
  }
  func.func @transform_3(%arg0: i32) -> (i32, i32, i32) {
    %c0_i32 = arith.constant 0 : i32
    %c0_i32_0 = arith.constant 0 : i32
    %c0_i32_1 = arith.constant 0 : i32
    %c0_i32_2 = arith.constant 0 : i32
    return %c0_i32, %c0_i32_0, %c0_i32_1 : i32, i32, i32
  }
  func.func @transform_4(%arg0: i32) -> (i32, i32) {
    %c0_i32 = arith.constant 0 : i32
    %c0_i32_0 = arith.constant 0 : i32
    %c0_i32_1 = arith.constant 0 : i32
    return %c0_i32, %c0_i32_0 : i32, i32
  }
  func.func @transform_5(%arg0: i32) -> (i32, i32) {
    %c0_i32 = arith.constant 0 : i32
    %c0_i32_0 = arith.constant 0 : i32
    %c0_i32_1 = arith.constant 0 : i32
    return %c0_i32, %c0_i32_0 : i32, i32
  }
  func.func @transform_6(%arg0: i32) -> (i32, i32, i32) {
    %c0_i32 = arith.constant 0 : i32
    %c0_i32_0 = arith.constant 0 : i32
    %c0_i32_1 = arith.constant 0 : i32
    return %arg0, %c0_i32, %c0_i32_0 : i32, i32, i32
  }
}

</mosaic_0001>

<bundles_post_ra>
// kernel: attention_branch.1
= control target key start
LH: loop header
LB: loop body
LE: loop exit
PB: predicated region body
PF: predicated region fallthrough
CT: control target
= control target key end

     0   :  { %s2262_s23 = smov 0   ;;  %s3417_s0 = inlined_call_operand.vmem [shape: f32[2,8,256], index: 0, kind: input, shape index: {}]   ;;  %s3418_s1 = inlined_call_operand.vmem [shape: f32[9,8,256], index: 1, kind: input, shape index: {}]   ;;  %s3419_s2 = inlined_call_operand.vmem [shape: bf16[8,8,72], index: 2, kind: input, shape index: {}]   ;;  %s3420_s3 = inlined_call_operand.vmem [shape: f32[8,8,1], index: 3, kind: input, shape index: {}]   ;;  %s3421_s4 = inlined_call_operand.vmem [shape: bf16[1,72], index: 4, kind: input, shape index: {}]   ;;  %s3422_s5 = inlined_call_operand.<no memory space> [shape: f32[1,1], index: 5, kind: input, shape index: {}]   ;;  %s3423_s6 = inlined_call_operand.vmem [shape: f32[2,1,256], index: 6, kind: output, shape index: {}]  }
   0x1   :  { %v11_v0 = vstv %s3422_s5 }
   0x2   :  { %12 = vst [vmem:[#allocation2] sm:$0x1] %v11_v0 }
   0x3 LB: > { %s2103_s24 = sadd.s32 4294967295, %s2212_s23   ;;  %p2107_p0 = scmp.ge.s32.totalorder %s2212_s23, 1  ;;  %s2212_s23 = sphi %s2262_s23, %s18_s23  }
   0x4   : > { %p214_p1 = scmp.lt.s32.totalorder %s2212_s23, 3 }
   0x6   : > { %p215_p2 = pnand %p2107_p0, %p214_p1 }
   0x7   : > { %p243_p3 = scmp.lt.s32.totalorder (!%p215_p2), %s2103_s24, 1  ;;  %s2214_s28 = smov (!%p215_p2), 17   ;;  %v2220_v3 = vmov (!%p215_p2), 0   ;;  %v256_v4 = vld [vmem:[%s3420_s3] sm:$0xff] (!%p215_p2)  ;;  %v261_v5 = vlaneseq (!%p215_p2)  ;;  %v2332_v10 = vld [vmem:[%s3418_s1 + $0x8] sm:$0xff] (!%p215_p2)  ;;  %v2337_v11 = vld [vmem:[%s3418_s1 + $0x10] sm:$0xff] (!%p215_p2) }
   0x8   : > { %218 = sbr.rel (%p215_p2) target bundleno = 3391 (0xd3f), region = 44  ;;  %s2215_s29 = smov (!%p215_p2), 16   ;;  %468 = vmatprep.mubr.bf16.mxu0 (!%p215_p2), %v2220_v3  ;;  %2180 = vset.pattern.permute.xlu0 (!%p215_p2), %v2220_v3  ;;  %v2326_v9 = vld [vmem:[%s3418_s1] sm:$0xff] (!%p215_p2)  ;;  %v2342_v12 = vld [vmem:[%s3418_s1 + $0x18] sm:$0xff] (!%p215_p2)  ;;  %v2360_v23 = vld [vmem:[%s3418_s1 + $0x30] sm:$0xff] (!%p215_p2)  ;;  %vm388_vm4 = vcmask (!%p215_p2), 1043456  }
   0x9   : > { %s2216_s30 = smov (!%p215_p2), 1   ;;  %s2217_s7 = smov (!%p215_p2), 15   ;;  %659 = vmatprep.mubr.bf16.mxu1 (!%p215_p2), %v2220_v3  ;;  %2181 = vset.pattern.permute.xlu1 (!%p215_p2), %v2220_v3  ;;  %v2320_v6 = vand.u32 (!%p215_p2), 127, %v261_v5  ;;  %v2365_v24 = vld [vmem:[%s3418_s1 + $0x38] sm:$0xff] (!%p215_p2)  ;;  %v2377_v37 = vld [vmem:[%s3418_s1 + $0x20] sm:$0xff] (!%p215_p2)  ;;  %v2382_v38 = vld [vmem:[%s3418_s1 + $0x28] sm:$0xff] (!%p215_p2) }
   0xa   : > { %s2218_s8 = smov (!%p215_p2), 127   ;;  %s2219_s9 = smov (!%p215_p2), 112   ;;  %v2396_v49 = vld [vmem:[%s3418_s1 + $0x50] sm:$0xff] (!%p215_p2)  ;;  %v2401_v50 = vld [vmem:[%s3418_s1 + $0x58] sm:$0xff] (!%p215_p2)  ;;  %vm426_vm9 = vcmask (!%p215_p2), 588800   ;;  %vm2047_vm10 = vcmp.lt.s32.totalorder (!%p215_p2), %v261_v5, 256 }
   0xb   : > { %s2221_s10 = smov (!%p215_p2), 113   ;;  %s2222_s11 = smov (!%p215_p2), 111   ;;  %vm263_vm0 = vcmp.lt.s32.totalorder (!%p215_p2), %v2320_v6, 17  ;;  %vm276_vm1 = vcmp.lt.s32.totalorder (!%p215_p2), %v2320_v6, 16  ;;  %vm304_vm2 = vcmp.lt.s32.totalorder (!%p215_p2), %v2320_v6, 1  ;;  %vm290_vm3 = vcmp.lt.s32.totalorder (!%p215_p2), %v2320_v6, 15 }
   0xc   : > { %vm320_vm5 = vcmp.lt.s32.totalorder (!%p215_p2), %v2320_v6, 127  ;;  %vm348_vm6 = vcmp.lt.s32.totalorder (!%p215_p2), %v2320_v6, 112  ;;  %v2415_v63 = vld [vmem:[%s3418_s1 + $0x70] sm:$0xff] (!%p215_p2)  ;;  %v2420_v0 = vld [vmem:[%s3418_s1 + $0x78] sm:$0xff] (!%p215_p2)  ;;  %vm334_vm7 = vcmp.lt.s32.totalorder (!%p215_p2), %v2320_v6, 113  ;;  %vm362_vm8 = vcmp.lt.s32.totalorder (!%p215_p2), %v2320_v6, 111 }
   0xd   : > { %v1824_v6 = vld [vmem:[%s3421_s4] sm:$0x1] (!%p215_p2) }
   0xf   : > { %s3425_s24 = smov (!%p243_p3, %s2103_s24), 1 }
  0x10   : > { %s2161_s5 = sshll.u32 %s3425_s24, 4 }
  0x11   : > { %s247_s27 = scalar_lea.vmem %s3417_s0, %s2161_s5 }
  0x12   : > { %v2276_v1 = vld [vmem:[%s247_s27] sm:$0xff]  ;;  %v2282_v2 = vld [vmem:[%s247_s27 + $0x8] sm:$0xff] }
  0x13   : > { %257 = vrot.lane.b32.xlu1 %v2276_v1, %s2214_s28  ;;  %272 = vrot.lane.b32.xlu0 %v2276_v1, %s2215_s29 }
  0x17   : > { %259 = vrot.lane.b32.xlu1 %v2282_v2, %s2214_s28  ;;  %274 = vrot.lane.b32.xlu0 %v2282_v2, %s2215_s29 }
  0x1b   : > { %302 = vrot.lane.b32.xlu1 %v2282_v2, %s2216_s30  ;;  %300 = vrot.lane.b32.xlu0 %v2276_v1, %s2216_s30 }
  0x1f   : > { %288 = vrot.lane.b32.xlu1 %v2282_v2, %s2217_s7  ;;  %286 = vrot.lane.b32.xlu0 %v2276_v1, %s2217_s7 }
  0x23   : > { %318 = vrot.lane.b32.xlu1 %v2282_v2, %s2218_s8  ;;  %316 = vrot.lane.b32.xlu0 %v2276_v1, %s2218_s8 }
  0x27   : > { %346 = vrot.lane.b32.xlu1 %v2282_v2, %s2219_s9  ;;  %344 = vrot.lane.b32.xlu0 %v2276_v1, %s2219_s9 }
  0x2b   : > { %332 = vrot.lane.b32.xlu1 %v2282_v2, %s2221_s10  ;;  %330 = vrot.lane.b32.xlu0 %v2276_v1, %s2221_s10 }
  0x2f   : > { %360 = vrot.lane.b32.xlu1 %v2282_v2, %s2222_s11  ;;  %358 = vrot.lane.b32.xlu0 %v2276_v1, %s2222_s11 }
  0x33   : > { %423 = vperm.xlu0 %2180, %v256_v4  }
  0x85   : > { %v258_v7 = vpop.permute.xlu1 %257  ;;  %v273_v8 = vpop.permute.xlu0 %272 }
  0x89   : > { %v260_v13 = vpop.permute.xlu1 %259  ;;  %v275_v14 = vpop.permute.xlu0 %274 }
  0x8a   : > { %v264_v15 = vsel %vm263_vm0, %v258_v7, %v260_v13  ;;  %v265_v16 = vsel %vm263_vm0, %v260_v13, %v258_v7  ;;  %v277_v17 = vsel %vm276_vm1, %v273_v8, %v275_v14  ;;  %v278_v18 = vsel %vm276_vm1, %v275_v14, %v273_v8 }
  0x8b   : > { %v268_v19 = vmul.f32 %v2326_v9, %v265_v16  ;;  %v269_v20 = vmul.f32 %v2332_v10, %v264_v15  ;;  %v282_v21 = vmul.f32 %v2337_v11, %v278_v18  ;;  %v283_v22 = vmul.f32 %v2342_v12, %v277_v17 }
  0x8c   : > { %v315_v14 = vpack.c.bf16 %v2282_v2, %v2282_v2  ;;  %v314_v15 = vpack.c.bf16 %v2276_v1, %v2276_v1 }
  0x8d   : > { %v284_v25 = vpack.c.bf16 %v282_v21, %v282_v21  ;;  %v303_v26 = vpop.permute.xlu1 %302  ;;  %v301_v27 = vpop.permute.xlu0 %300  ;;  %v285_v28 = vpack.c.bf16 %v283_v22, %v283_v22  ;;  %v271_v31 = vpack.c.bf16 %v269_v20, %v269_v20  ;;  %v270_v32 = vpack.c.bf16 %v268_v19, %v268_v19  ;;  %v2436_v22 = vld [vmem:[%s3418_s1 + $0x60] sm:$0xff] }
  0x8e   : > { %v305_v29 = vsel %vm304_vm2, %v301_v27, %v303_v26  ;;  %v306_v30 = vsel %vm304_vm2, %v303_v26, %v301_v27 }
  0x8f   : > { %v310_v33 = vmul.f32 %v2360_v23, %v306_v30  ;;  %v311_v34 = vmul.f32 %v2365_v24, %v305_v29  ;;  %v375_v35 = vrot.slane %v285_v28, 4  ;;  %v374_v36 = vrot.slane %v284_v25, 4  ;;  %v2441_v25 = vld [vmem:[%s3418_s1 + $0x68] sm:$0xff] }
  0x91   : > { %v312_v39 = vpack.c.bf16 %v310_v33, %v310_v33  ;;  %v313_v40 = vpack.c.bf16 %v311_v34, %v311_v34  ;;  %v289_v41 = vpop.permute.xlu1 %288  ;;  %v287_v42 = vpop.permute.xlu0 %286  ;;  %v395_v43 = vsel %vm388_vm4, %v271_v31, %v375_v35  ;;  %v391_v44 = vsel %vm388_vm4, %v270_v32, %v374_v36  ;;  %v2455_v36 = vld [vmem:[%s3418_s1 + $0x88] sm:$0xff] }
  0x92   : > { %v291_v45 = vsel %vm290_vm3, %v287_v42, %v289_v41  ;;  %v292_v46 = vsel %vm290_vm3, %v289_v41, %v287_v42  ;;  %436 = vmatprep.subr.bf16.mxu0 %v395_v43 }
  0x93   : > { %v296_v47 = vmul.f32 %v2377_v37, %v292_v46  ;;  %v297_v48 = vmul.f32 %v2382_v38, %v291_v45  ;;  %437 = vmatpush1.bf16.msra.mxu0 %v391_v44  ;;  %v378_v51 = vrot.slane %v312_v39, 4  ;;  %v379_v52 = vrot.slane %v313_v40, 4  ;;  %v2460_v39 = vld [vmem:[%s3418_s1 + $0x80] sm:$0xff] }
  0x95   : > { %v298_v53 = vpack.c.bf16 %v296_v47, %v296_v47  ;;  %v299_v54 = vpack.c.bf16 %v297_v48, %v297_v48  ;;  %v319_v55 = vpop.permute.xlu1 %318  ;;  %v317_v56 = vpop.permute.xlu0 %316 }
  0x96   : > { %v321_v57 = vsel %vm320_vm5, %v317_v56, %v319_v55  ;;  %v322_v58 = vsel %vm320_vm5, %v319_v55, %v317_v56 }
  0x97   : > { %v326_v59 = vmul.f32 %v2396_v49, %v321_v57  ;;  %v327_v60 = vmul.f32 %v2401_v50, %v322_v58  ;;  %v403_v61 = vsel %vm388_vm4, %v299_v54, %v379_v52  ;;  %v399_v62 = vsel %vm388_vm4, %v298_v53, %v378_v51  ;;  %v255_v57 = vld [vmem:[%s3419_s2] sm:$0xf] }
  0x98   : > { %438 = vmatprep.subr.bf16.mxu0 %v403_v61 }
  0x99   : > { %v328_v4 = vpack.c.bf16 %v326_v59, %v326_v59  ;;  %v329_v7 = vpack.c.bf16 %v327_v60, %v327_v60  ;;  %v347_v8 = vpop.permute.xlu1 %346  ;;  %439 = vmatpush1.bf16.msra.mxu0 %v399_v62  ;;  %v345_v13 = vpop.permute.xlu0 %344 }
  0x9a   : > { %v349_v16 = vsel %vm348_vm6, %v345_v13, %v347_v8  ;;  %v350_v17 = vsel %vm348_vm6, %v347_v8, %v345_v13 }
  0x9b   : > { %v382_v18 = vrot.slane %v328_v4, 4  ;;  %v383_v19 = vrot.slane %v329_v7, 4  ;;  %v354_v20 = vmul.f32 %v2415_v63, %v349_v16  ;;  %v355_v21 = vmul.f32 %v2420_v0, %v350_v17 }
  0x9d   : > { %v356_v26 = vpack.c.bf16 %v354_v20, %v354_v20  ;;  %v357_v27 = vpack.c.bf16 %v355_v21, %v355_v21  ;;  %v333_v28 = vpop.permute.xlu1 %332  ;;  %v331_v29 = vpop.permute.xlu0 %330  ;;  %v411_v30 = vsel %vm388_vm4, %v315_v14, %v383_v19  ;;  %v407_v31 = vsel %vm388_vm4, %v314_v15, %v382_v18  ;;  %v2128_v14 = vld [vmem:[%s3420_s3 + $0x8] sm:$0xff] }
  0x9e   : > { %v335_v32 = vsel %vm334_vm7, %v331_v29, %v333_v28  ;;  %v336_v33 = vsel %vm334_vm7, %v333_v28, %v331_v29  ;;  %440 = vmatprep.subr.bf16.mxu0 %v411_v30 }
  0x9f   : > { %v340_v34 = vmul.f32 %v2436_v22, %v335_v32  ;;  %v341_v35 = vmul.f32 %v2441_v25, %v336_v33  ;;  %441 = vmatpush1.bf16.msra.mxu0 %v407_v31  ;;  %v386_v40 = vrot.slane %v356_v26, 4  ;;  %v387_v41 = vrot.slane %v357_v27, 4 }
  0xa1   : > { %v342_v42 = vpack.c.bf16 %v340_v34, %v340_v34  ;;  %v343_v43 = vpack.c.bf16 %v341_v35, %v341_v35  ;;  %v361_v44 = vpop.permute.xlu1 %360  ;;  %v359_v45 = vpop.permute.xlu0 %358 }
  0xa2   : > { %v363_v46 = vsel %vm362_vm8, %v359_v45, %v361_v44  ;;  %v364_v47 = vsel %vm362_vm8, %v361_v44, %v359_v45 }
  0xa3   : > { %v369_v48 = vmul.f32 %v2455_v36, %v364_v47  ;;  %v419_v51 = vsel %vm388_vm4, %v343_v43, %v387_v41  ;;  %v415_v52 = vsel %vm388_vm4, %v342_v42, %v386_v40  ;;  %v368_v53 = vmul.f32 %v2460_v39, %v363_v46 }
  0xa4   : > { %442 = vmatprep.subr.bf16.mxu0 %v419_v51 }
  0xa5   : > { %v371_v54 = vpack.c.bf16 %v369_v48, %v369_v48  ;;  %443 = vmatpush1.bf16.msra.mxu0 %v415_v52  ;;  %v370_v55 = vpack.c.bf16 %v368_v53, %v368_v53 }
  0xa7   : > { %2125 = vmatprep.subr.msk.bf16.mxu0 %vm388_vm4, %v371_v54  ;;  %v431_v56 = vsel %vm388_vm4, %v370_v55, 0 }
  0xa9   : > { %445 = vmatpush1.bf16.msra.mxu0 %v431_v56 }
  0xac   : > { %2126 = vmatmul.mubr.msk.bf16.vlgmr.msra.gmra.mrb[0].mxu0 %vm426_vm9, %v255_v57 }
  0xad   : > { %852 = vmatprep.mubr.bf16.mxu0 %v2220_v3 }
  0xb2   : > { %v424_v58 = vpop.permute.xlu0 %423 }
 0x17f   : > { %v470_v59 = vpop.f32.mrb[0].mxu0 }
 0x180   : > { %v471_v60 = vadd.f32 %v470_v59, %v424_v58  ;;  %v472_v61 = vpop.f32.mrb[1].mxu0 }
 0x181   : > { %v474_v62 = vpop.f32.mrb[2].mxu0  ;;  %v473_v7 = vadd.f32 %v472_v61, %v424_v58 }
 0x182   : > { %v2477_v4 = vmax.f32 %v471_v60, 0.0  ;;  %v475_v8 = vpop.f32.mrb[3].mxu0 }
 0x183   : > { %v2483_v13 = vmax.f32 %v473_v7, 0.0 }
 0x184   : > { %483 = vrot.lane.b32.xlu0 %v2477_v4, %s2214_s28  ;;  %493 = vrot.lane.b32.xlu1 %v2477_v4, %s2215_s29 }
 0x188   : > { %513 = vrot.lane.b32.xlu0 %v2477_v4, %s2216_s30  ;;  %495 = vrot.lane.b32.xlu1 %v2483_v13, %s2215_s29 }
 0x18c   : > { %503 = vrot.lane.b32.xlu0 %v2477_v4, %s2217_s7  ;;  %485 = vrot.lane.b32.xlu1 %v2483_v13, %s2214_s28 }
 0x190   : > { %525 = vrot.lane.b32.xlu0 %v2477_v4, %s2218_s8  ;;  %515 = vrot.lane.b32.xlu1 %v2483_v13, %s2216_s30 }
 0x194   : > { %545 = vrot.lane.b32.xlu0 %v2477_v4, %s2219_s9  ;;  %505 = vrot.lane.b32.xlu1 %v2483_v13, %s2217_s7 }
 0x198   : > { %535 = vrot.lane.b32.xlu0 %v2477_v4, %s2221_s10  ;;  %527 = vrot.lane.b32.xlu1 %v2483_v13, %s2218_s8 }
 0x19c   : > { %555 = vrot.lane.b32.xlu0 %v2477_v4, %s2222_s11  ;;  %547 = vrot.lane.b32.xlu1 %v2483_v13, %s2219_s9 }
 0x1a0   : > { %615 = vperm.xlu0 %2180, %v2128_v14   ;;  %537 = vrot.lane.b32.xlu1 %v2483_v13, %s2221_s10 }
 0x1a4   : > { %557 = vrot.lane.b32.xlu1 %v2483_v13, %s2222_s11 }
 0x1f6   : > { %v484_v15 = vpop.permute.xlu0 %483  ;;  %v494_v16 = vpop.permute.xlu1 %493 }
 0x1fa   : > { %v514_v17 = vpop.permute.xlu0 %513  ;;  %v496_v18 = vpop.permute.xlu1 %495 }
 0x1fb   : > { %v497_v19 = vsel %vm276_vm1, %v494_v16, %v496_v18  ;;  %v498_v20 = vsel %vm276_vm1, %v496_v18, %v494_v16 }
 0x1fc   : > { %v499_v21 = vmul.f32 %v2337_v11, %v498_v20  ;;  %v500_v26 = vmul.f32 %v2342_v12, %v497_v19 }
 0x1fe   : > { %v501_v27 = vpack.c.bf16 %v499_v21, %v499_v21  ;;  %v504_v28 = vpop.permute.xlu0 %503  ;;  %v486_v29 = vpop.permute.xlu1 %485  ;;  %v502_v30 = vpack.c.bf16 %v500_v26, %v500_v26 }
 0x1ff   : > { %v487_v31 = vsel %vm263_vm0, %v484_v15, %v486_v29  ;;  %v488_v32 = vsel %vm263_vm0, %v486_v29, %v484_v15 }
 0x200   : > { %v489_v33 = vmul.f32 %v488_v32, %v2326_v9  ;;  %v490_v34 = vmul.f32 %v487_v31, %v2332_v10  ;;  %v568_v41 = vrot.slane %v502_v30, 4  ;;  %v567_v43 = vrot.slane %v501_v27, 4 }
 0x201   : > { %v524_v30 = vpack.c.bf16 %v2483_v13, %v2483_v13  ;;  %v523_v31 = vpack.c.bf16 %v2477_v4, %v2477_v4 }
 0x202   : > { %v516_v35 = vpop.permute.xlu1 %515  ;;  %v492_v40 = vpack.c.bf16 %v490_v34, %v490_v34  ;;  %v491_v42 = vpack.c.bf16 %v489_v33, %v489_v33  ;;  %v526_v46 = vpop.permute.xlu0 %525 }
 0x203   : > { %v517_v44 = vsel %vm304_vm2, %v514_v17, %v516_v35  ;;  %v518_v45 = vsel %vm304_vm2, %v516_v35, %v514_v17 }
 0x204   : > { %v519_v47 = vmul.f32 %v2360_v23, %v518_v45  ;;  %v520_v48 = vmul.f32 %v2365_v24, %v517_v44  ;;  %v587_v51 = vsel %vm388_vm4, %v492_v40, %v568_v41  ;;  %v583_v52 = vsel %vm388_vm4, %v491_v42, %v567_v43 }
 0x205   : > { %627 = vmatprep.subr.bf16.mxu1 %v587_v51 }
 0x206   : > { %v521_v53 = vpack.c.bf16 %v519_v47, %v519_v47  ;;  %v522_v54 = vpack.c.bf16 %v520_v48, %v520_v48  ;;  %628 = vmatpush1.bf16.msra.mxu1 %v583_v52  ;;  %v506_v55 = vpop.permute.xlu1 %505  ;;  %v546_v62 = vpop.permute.xlu0 %545 }
 0x207   : > { %v507_v56 = vsel %vm290_vm3, %v504_v28, %v506_v55  ;;  %v508_v57 = vsel %vm290_vm3, %v506_v55, %v504_v28 }
 0x208   : > { %v509_v58 = vmul.f32 %v2377_v37, %v508_v57  ;;  %v510_v59 = vmul.f32 %v2382_v38, %v507_v56  ;;  %v571_v60 = vrot.slane %v521_v53, 4  ;;  %v572_v61 = vrot.slane %v522_v54, 4 }
 0x20a   : > { %v511_v7 = vpack.c.bf16 %v509_v58, %v509_v58  ;;  %v512_v8 = vpack.c.bf16 %v510_v59, %v510_v59  ;;  %v528_v14 = vpop.permute.xlu1 %527  ;;  %v536_v32 = vpop.permute.xlu0 %535 }
 0x20b   : > { %v529_v15 = vsel %vm320_vm5, %v526_v46, %v528_v14  ;;  %v530_v16 = vsel %vm320_vm5, %v528_v14, %v526_v46  ;;  %v2127_v14 = vld [vmem:[%s3419_s2 + $0x4] sm:$0xf] }
 0x20c   : > { %v531_v17 = vmul.f32 %v2396_v49, %v529_v15  ;;  %v532_v18 = vmul.f32 %v2401_v50, %v530_v16  ;;  %v595_v19 = vsel %vm388_vm4, %v512_v8, %v572_v61  ;;  %v591_v20 = vsel %vm388_vm4, %v511_v7, %v571_v60 }
 0x20d   : > { %629 = vmatprep.subr.bf16.mxu1 %v595_v19 }
 0x20e   : > { %v533_v21 = vpack.c.bf16 %v531_v17, %v531_v17  ;;  %v534_v26 = vpack.c.bf16 %v532_v18, %v532_v18  ;;  %630 = vmatpush1.bf16.msra.mxu1 %v591_v20  ;;  %v548_v27 = vpop.permute.xlu1 %547  ;;  %v556_v48 = vpop.permute.xlu0 %555 }
 0x20f   : > { %v549_v28 = vsel %vm348_vm6, %v546_v62, %v548_v27  ;;  %v550_v29 = vsel %vm348_vm6, %v548_v27, %v546_v62 }
 0x210   : > { %v575_v33 = vrot.slane %v533_v21, 4  ;;  %v576_v34 = vrot.slane %v534_v26, 4  ;;  %v551_v35 = vmul.f32 %v2415_v63, %v549_v28  ;;  %v552_v40 = vmul.f32 %v2420_v0, %v550_v29 }
 0x212   : > { %v553_v41 = vpack.c.bf16 %v551_v35, %v551_v35  ;;  %v554_v42 = vpack.c.bf16 %v552_v40, %v552_v40  ;;  %v538_v43 = vpop.permute.xlu1 %537  ;;  %v603_v44 = vsel %vm388_vm4, %v524_v30, %v576_v34  ;;  %v599_v45 = vsel %vm388_vm4, %v523_v31, %v575_v33 }
 0x213   : > { %v539_v13 = vsel %vm334_vm7, %v536_v32, %v538_v43  ;;  %v540_v4 = vsel %vm334_vm7, %v538_v43, %v536_v32  ;;  %631 = vmatprep.subr.bf16.mxu1 %v603_v44 }
 0x214   : > { %v541_v46 = vmul.f32 %v2436_v22, %v539_v13  ;;  %v542_v47 = vmul.f32 %v2441_v25, %v540_v4  ;;  %632 = vmatpush1.bf16.msra.mxu1 %v599_v45  ;;  %v579_v51 = vrot.slane %v553_v41, 4  ;;  %v580_v52 = vrot.slane %v554_v42, 4 }
 0x216   : > { %v543_v53 = vpack.c.bf16 %v541_v46, %v541_v46  ;;  %v544_v54 = vpack.c.bf16 %v542_v47, %v542_v47  ;;  %v558_v55 = vpop.permute.xlu1 %557 }
 0x217   : > { %v559_v56 = vsel %vm362_vm8, %v556_v48, %v558_v55  ;;  %v560_v57 = vsel %vm362_vm8, %v558_v55, %v556_v48 }
 0x218   : > { %v562_v58 = vmul.f32 %v2455_v36, %v560_v57  ;;  %v611_v59 = vsel %vm388_vm4, %v544_v54, %v580_v52  ;;  %v607_v60 = vsel %vm388_vm4, %v543_v53, %v579_v51  ;;  %v561_v61 = vmul.f32 %v2460_v39, %v559_v56 }
 0x219   : > { %633 = vmatprep.subr.bf16.mxu1 %v611_v59 }
 0x21a   : > { %v564_v62 = vpack.c.bf16 %v562_v58, %v562_v58  ;;  %634 = vmatpush1.bf16.msra.mxu1 %v607_v60  ;;  %v563_v7 = vpack.c.bf16 %v561_v61, %v561_v61 }
 0x21c   : > { %2129 = vmatprep.subr.msk.bf16.mxu1 %vm388_vm4, %v564_v62  ;;  %v622_v8 = vsel %vm388_vm4, %v563_v7, 0 }
 0x21e   : > { %636 = vmatpush1.bf16.msra.mxu1 %v622_v8 }
 0x21f   : > { %v616_v15 = vpop.permute.xlu0 %615 }
 0x221   : > { %2130 = vmatmul.mubr.msk.bf16.vlgmr.msra.gmra.mrb[0].mxu1 %vm426_vm9, %v2127_v14 }
 0x222   : > { %1043 = vmatprep.mubr.bf16.mxu1 %v2220_v3 }
 0x2f4   : > { %v661_v16 = vpop.f32.mrb[0].mxu1 }
 0x2f5   : > { %v662_v17 = vadd.f32 %v661_v16, %v616_v15  ;;  %v663_v18 = vpop.f32.mrb[1].mxu1 }
 0x2f6   : > { %v664_v19 = vadd.f32 %v663_v18, %v616_v15  ;;  %v665_v20 = vpop.f32.mrb[2].mxu1 }
 0x2f7   : > { %v668_v21 = vadd.f32 %v662_v17, %v2276_v1  ;;  %v666_v26 = vpop.f32.mrb[3].mxu1  ;;  %v2132_v1 = vld [vmem:[%s3420_s3 + $0x10] sm:$0xff] }
 0x2f8   : > { %v669_v27 = vadd.f32 %v664_v19, %v2282_v2 }
 0x2f9   : > { %v2585_v28 = vmax.f32 %v668_v21, 0.0 }
 0x2fa   : > { %v2587_v29 = vmax.f32 %v669_v27, 0.0 }
 0x2fb   : > { %686 = vrot.lane.b32.xlu1 %v2585_v28, %s2215_s29 }
 0x2fc   : > { %688 = vrot.lane.b32.xlu0 %v2587_v29, %s2215_s29 }
 0x2ff   : > { %676 = vrot.lane.b32.xlu1 %v2585_v28, %s2214_s28 }
 0x300   : > { %678 = vrot.lane.b32.xlu0 %v2587_v29, %s2214_s28 }
 0x303   : > { %706 = vrot.lane.b32.xlu1 %v2585_v28, %s2216_s30 }
 0x304   : > { %708 = vrot.lane.b32.xlu0 %v2587_v29, %s2216_s30 }
 0x307   : > { %696 = vrot.lane.b32.xlu1 %v2585_v28, %s2217_s7 }
 0x308   : > { %698 = vrot.lane.b32.xlu0 %v2587_v29, %s2217_s7 }
 0x30b   : > { %718 = vrot.lane.b32.xlu1 %v2585_v28, %s2218_s8 }
 0x30c   : > { %720 = vrot.lane.b32.xlu0 %v2587_v29, %s2218_s8 }
 0x30f   : > { %738 = vrot.lane.b32.xlu1 %v2585_v28, %s2219_s9 }
 0x310   : > { %740 = vrot.lane.b32.xlu0 %v2587_v29, %s2219_s9 }
 0x313   : > { %728 = vrot.lane.b32.xlu1 %v2585_v28, %s2221_s10 }
 0x314   : > { %730 = vrot.lane.b32.xlu0 %v2587_v29, %s2221_s10 }
 0x317   : > { %748 = vrot.lane.b32.xlu1 %v2585_v28, %s2222_s11 }
 0x318   : > { %750 = vrot.lane.b32.xlu0 %v2587_v29, %s2222_s11 }
 0x31b   : > { %808 = vperm.xlu1 %2181, %v2132_v1  }
 0x36d   : > { %v687_v2 = vpop.permute.xlu1 %686 }
 0x36e   : > { %v689_v30 = vpop.permute.xlu0 %688 }
 0x36f   : > { %v690_v31 = vsel %vm276_vm1, %v687_v2, %v689_v30  ;;  %v691_v32 = vsel %vm276_vm1, %v689_v30, %v687_v2 }
 0x370   : > { %v692_v33 = vmul.f32 %v2337_v11, %v691_v32  ;;  %v693_v34 = vmul.f32 %v2342_v12, %v690_v31 }
 0x371   : > { %v677_v35 = vpop.permute.xlu1 %676 }
 0x372   : > { %v694_v40 = vpack.c.bf16 %v692_v33, %v692_v33  ;;  %v695_v41 = vpack.c.bf16 %v693_v34, %v693_v34  ;;  %v679_v42 = vpop.permute.xlu0 %678 }
 0x373   : > { %v680_v43 = vsel %vm263_vm0, %v677_v35, %v679_v42  ;;  %v681_v44 = vsel %vm263_vm0, %v679_v42, %v677_v35  ;;  %v717_v42 = vpack.c.bf16 %v2587_v29, %v2587_v29 }
 0x374   : > { %v682_v45 = vmul.f32 %v681_v44, %v2326_v9  ;;  %v683_v13 = vmul.f32 %v680_v43, %v2332_v10  ;;  %v760_v46 = vrot.slane %v694_v40, 4  ;;  %v761_v47 = vrot.slane %v695_v41, 4 }
 0x375   : > { %v707_v4 = vpop.permute.xlu1 %706  ;;  %v716_v43 = vpack.c.bf16 %v2585_v28, %v2585_v28 }
 0x376   : > { %v684_v48 = vpack.c.bf16 %v682_v45, %v682_v45  ;;  %v685_v51 = vpack.c.bf16 %v683_v13, %v683_v13  ;;  %v709_v52 = vpop.permute.xlu0 %708 }
 0x377   : > { %v710_v53 = vsel %vm304_vm2, %v707_v4, %v709_v52  ;;  %v711_v54 = vsel %vm304_vm2, %v709_v52, %v707_v4 }
 0x378   : > { %v712_v55 = vmul.f32 %v2360_v23, %v711_v54  ;;  %v713_v56 = vmul.f32 %v2365_v24, %v710_v53  ;;  %v780_v57 = vsel %vm388_vm4, %v685_v51, %v761_v47  ;;  %v776_v58 = vsel %vm388_vm4, %v684_v48, %v760_v46 }
 0x379   : > { %820 = vmatprep.subr.bf16.mxu0 %v780_v57  ;;  %v697_v59 = vpop.permute.xlu1 %696 }
 0x37a   : > { %v714_v60 = vpack.c.bf16 %v712_v55, %v712_v55  ;;  %v715_v61 = vpack.c.bf16 %v713_v56, %v713_v56  ;;  %v699_v62 = vpop.permute.xlu0 %698  ;;  %821 = vmatpush1.bf16.msra.mxu0 %v776_v58 }
 0x37b   : > { %v700_v7 = vsel %vm290_vm3, %v697_v59, %v699_v62  ;;  %v701_v8 = vsel %vm290_vm3, %v699_v62, %v697_v59 }
 0x37c   : > { %v702_v14 = vmul.f32 %v2377_v37, %v701_v8  ;;  %v703_v15 = vmul.f32 %v2382_v38, %v700_v7  ;;  %v764_v17 = vrot.slane %v714_v60, 4  ;;  %v765_v18 = vrot.slane %v715_v61, 4 }
 0x37d   : > { %v719_v16 = vpop.permute.xlu1 %718 }
 0x37e   : > { %v704_v19 = vpack.c.bf16 %v702_v14, %v702_v14  ;;  %v705_v20 = vpack.c.bf16 %v703_v15, %v703_v15  ;;  %v721_v21 = vpop.permute.xlu0 %720 }
 0x37f   : > { %v722_v26 = vsel %vm320_vm5, %v719_v16, %v721_v21  ;;  %v723_v27 = vsel %vm320_vm5, %v721_v21, %v719_v16 }
 0x380   : > { %v724_v1 = vmul.f32 %v2396_v49, %v722_v26  ;;  %v725_v2 = vmul.f32 %v2401_v50, %v723_v27  ;;  %v788_v30 = vsel %vm388_vm4, %v705_v20, %v765_v18  ;;  %v784_v31 = vsel %vm388_vm4, %v704_v19, %v764_v17  ;;  %v2131_v26 = vld [vmem:[%s3419_s2 + $0x8] sm:$0xf] }
 0x381   : > { %822 = vmatprep.subr.bf16.mxu0 %v788_v30  ;;  %v739_v32 = vpop.permute.xlu1 %738 }
 0x382   : > { %v726_v33 = vpack.c.bf16 %v724_v1, %v724_v1  ;;  %v727_v34 = vpack.c.bf16 %v725_v2, %v725_v2  ;;  %v741_v35 = vpop.permute.xlu0 %740  ;;  %823 = vmatpush1.bf16.msra.mxu0 %v784_v31 }
 0x383   : > { %v742_v40 = vsel %vm348_vm6, %v739_v32, %v741_v35  ;;  %v743_v41 = vsel %vm348_vm6, %v741_v35, %v739_v32 }
 0x384   : > { %v768_v44 = vrot.slane %v726_v33, 4  ;;  %v769_v45 = vrot.slane %v727_v34, 4  ;;  %v744_v13 = vmul.f32 %v2415_v63, %v742_v40  ;;  %v745_v4 = vmul.f32 %v2420_v0, %v743_v41  ;;  %v2136_v40 = vld [vmem:[%s3420_s3 + $0x18] sm:$0xff] }
 0x385   : > { %v729_v46 = vpop.permute.xlu1 %728 }
 0x386   : > { %v746_v47 = vpack.c.bf16 %v744_v13, %v744_v13  ;;  %v747_v48 = vpack.c.bf16 %v745_v4, %v745_v4  ;;  %v731_v51 = vpop.permute.xlu0 %730  ;;  %v796_v52 = vsel %vm388_vm4, %v717_v42, %v769_v45  ;;  %v792_v53 = vsel %vm388_vm4, %v716_v43, %v768_v44 }
 0x387   : > { %v732_v54 = vsel %vm334_vm7, %v729_v46, %v731_v51  ;;  %v733_v55 = vsel %vm334_vm7, %v731_v51, %v729_v46  ;;  %824 = vmatprep.subr.bf16.mxu0 %v796_v52 }
 0x388   : > { %v734_v56 = vmul.f32 %v2436_v22, %v732_v54  ;;  %v735_v57 = vmul.f32 %v2441_v25, %v733_v55  ;;  %825 = vmatpush1.bf16.msra.mxu0 %v792_v53  ;;  %v772_v59 = vrot.slane %v746_v47, 4  ;;  %v773_v60 = vrot.slane %v747_v48, 4 }
 0x389   : > { %v749_v58 = vpop.permute.xlu1 %748 }
 0x38a   : > { %v736_v61 = vpack.c.bf16 %v734_v56, %v734_v56  ;;  %v737_v62 = vpack.c.bf16 %v735_v57, %v735_v57  ;;  %v751_v7 = vpop.permute.xlu0 %750 }
 0x38b   : > { %v752_v8 = vsel %vm362_vm8, %v749_v58, %v751_v7  ;;  %v753_v14 = vsel %vm362_vm8, %v751_v7, %v749_v58 }
 0x38c   : > { %v754_v15 = vmul.f32 %v2460_v39, %v752_v8  ;;  %v755_v16 = vmul.f32 %v2455_v36, %v753_v14  ;;  %v804_v17 = vsel %vm388_vm4, %v737_v62, %v773_v60  ;;  %v800_v18 = vsel %vm388_vm4, %v736_v61, %v772_v59 }
 0x38d   : > { %826 = vmatprep.subr.bf16.mxu0 %v804_v17 }
 0x38e   : > { %v756_v19 = vpack.c.bf16 %v754_v15, %v754_v15  ;;  %v757_v20 = vpack.c.bf16 %v755_v16, %v755_v16  ;;  %827 = vmatpush1.bf16.msra.mxu0 %v800_v18 }
 0x390   : > { %2133 = vmatprep.subr.msk.bf16.mxu0 %vm388_vm4, %v757_v20  ;;  %v815_v21 = vsel %vm388_vm4, %v756_v19, 0 }
 0x392   : > { %829 = vmatpush1.bf16.msra.mxu0 %v815_v21 }
 0x395   : > { %2134 = vmatmul.mubr.msk.bf16.vlgmr.msra.gmra.mrb[4].mxu0 %vm426_vm9, %v2131_v26 }
 0x396   : > { %1236 = vmatprep.mubr.bf16.mxu0 %v2220_v3 }
 0x39a   : > { %v809_v27 = vpop.permute.xlu1 %808 }
 0x468   : > { %v854_v1 = vpop.f32.mrb[4].mxu0 }
 0x469   : > { %v855_v2 = vadd.f32 %v854_v1, %v809_v27  ;;  %v856_v30 = vpop.f32.mrb[5].mxu0 }
 0x46a   : > { %v857_v31 = vadd.f32 %v856_v30, %v809_v27  ;;  %v858_v32 = vpop.f32.mrb[6].mxu0 }
 0x46b   : > { %v2691_v33 = vmax.f32 %v855_v2, 0.0  ;;  %v859_v34 = vpop.f32.mrb[7].mxu0 }
 0x46c   : > { %v2693_v35 = vmax.f32 %v857_v31, 0.0 }
 0x46d   : > { %877 = vrot.lane.b32.xlu0 %v2691_v33, %s2215_s29 }
 0x46e   : > { %879 = vrot.lane.b32.xlu1 %v2693_v35, %s2215_s29 }
 0x471   : > { %867 = vrot.lane.b32.xlu0 %v2691_v33, %s2214_s28 }
 0x472   : > { %869 = vrot.lane.b32.xlu1 %v2693_v35, %s2214_s28 }
 0x475   : > { %897 = vrot.lane.b32.xlu0 %v2691_v33, %s2216_s30 }
 0x476   : > { %899 = vrot.lane.b32.xlu1 %v2693_v35, %s2216_s30 }
 0x479   : > { %887 = vrot.lane.b32.xlu0 %v2691_v33, %s2217_s7 }
 0x47a   : > { %889 = vrot.lane.b32.xlu1 %v2693_v35, %s2217_s7 }
 0x47d   : > { %909 = vrot.lane.b32.xlu0 %v2691_v33, %s2218_s8 }
 0x47e   : > { %911 = vrot.lane.b32.xlu1 %v2693_v35, %s2218_s8 }
 0x481   : > { %929 = vrot.lane.b32.xlu0 %v2691_v33, %s2219_s9 }
 0x482   : > { %931 = vrot.lane.b32.xlu1 %v2693_v35, %s2219_s9 }
 0x485   : > { %919 = vrot.lane.b32.xlu0 %v2691_v33, %s2221_s10 }
 0x486   : > { %921 = vrot.lane.b32.xlu1 %v2693_v35, %s2221_s10 }
 0x489   : > { %939 = vrot.lane.b32.xlu0 %v2691_v33, %s2222_s11 }
 0x48a   : > { %941 = vrot.lane.b32.xlu1 %v2693_v35, %s2222_s11 }
 0x48d   : > { %999 = vperm.xlu0 %2180, %v2136_v40  }
 0x4df   : > { %v878_v41 = vpop.permute.xlu0 %877 }
 0x4e0   : > { %v880_v42 = vpop.permute.xlu1 %879 }
 0x4e1   : > { %v881_v43 = vsel %vm276_vm1, %v878_v41, %v880_v42  ;;  %v882_v44 = vsel %vm276_vm1, %v880_v42, %v878_v41 }
 0x4e2   : > { %v883_v45 = vmul.f32 %v2337_v11, %v882_v44  ;;  %v884_v13 = vmul.f32 %v2342_v12, %v881_v43 }
 0x4e3   : > { %v868_v4 = vpop.permute.xlu0 %867 }
 0x4e4   : > { %v885_v46 = vpack.c.bf16 %v883_v45, %v883_v45  ;;  %v886_v47 = vpack.c.bf16 %v884_v13, %v884_v13  ;;  %v870_v48 = vpop.permute.xlu1 %869 }
 0x4e5   : > { %v871_v51 = vsel %vm263_vm0, %v868_v4, %v870_v48  ;;  %v872_v52 = vsel %vm263_vm0, %v870_v48, %v868_v4 }
 0x4e6   : > { %v873_v53 = vmul.f32 %v872_v52, %v2326_v9  ;;  %v874_v54 = vmul.f32 %v871_v51, %v2332_v10  ;;  %v951_v56 = vrot.slane %v885_v46, 4  ;;  %v952_v57 = vrot.slane %v886_v47, 4 }
 0x4e7   : > { %v898_v55 = vpop.permute.xlu0 %897 }
 0x4e8   : > { %v875_v11 = vpack.c.bf16 %v873_v53, %v873_v53  ;;  %v876_v58 = vpack.c.bf16 %v874_v54, %v874_v54  ;;  %v900_v12 = vpop.permute.xlu1 %899 }
 0x4e9   : > { %v901_v59 = vsel %vm304_vm2, %v898_v55, %v900_v12  ;;  %v902_v60 = vsel %vm304_vm2, %v900_v12, %v898_v55 }
 0x4ea   : > { %v903_v61 = vmul.f32 %v2360_v23, %v902_v60  ;;  %v904_v62 = vmul.f32 %v2365_v24, %v901_v59  ;;  %v971_v9 = vsel %vm388_vm4, %v876_v58, %v952_v57  ;;  %v967_v10 = vsel %vm388_vm4, %v875_v11, %v951_v56 }
 0x4eb   : > { %1011 = vmatprep.subr.bf16.mxu1 %v971_v9  ;;  %v888_v7 = vpop.permute.xlu0 %887 }
 0x4ec   : > { %v905_v8 = vpack.c.bf16 %v903_v61, %v903_v61  ;;  %v906_v14 = vpack.c.bf16 %v904_v62, %v904_v62  ;;  %v890_v15 = vpop.permute.xlu1 %889  ;;  %1012 = vmatpush1.bf16.msra.mxu1 %v967_v10 }
 0x4ed   : > { %v891_v16 = vsel %vm290_vm3, %v888_v7, %v890_v15  ;;  %v892_v17 = vsel %vm290_vm3, %v890_v15, %v888_v7 }
 0x4ee   : > { %v893_v23 = vmul.f32 %v2377_v37, %v892_v17  ;;  %v894_v24 = vmul.f32 %v2382_v38, %v891_v16  ;;  %v955_v19 = vrot.slane %v905_v8, 4  ;;  %v956_v20 = vrot.slane %v906_v14, 4  ;;  %v2135_v14 = vld [vmem:[%s3419_s2 + $0xc] sm:$0xf] }
 0x4ef   : > { %v910_v18 = vpop.permute.xlu0 %909 }
 0x4f0   : > { %v895_v21 = vpack.c.bf16 %v893_v23, %v893_v23  ;;  %v896_v26 = vpack.c.bf16 %v894_v24, %v894_v24  ;;  %v912_v27 = vpop.permute.xlu1 %911 }
 0x4f1   : > { %v913_v1 = vsel %vm320_vm5, %v910_v18, %v912_v27  ;;  %v914_v2 = vsel %vm320_vm5, %v912_v27, %v910_v18 }
 0x4f2   : > { %v915_v30 = vmul.f32 %v2396_v49, %v913_v1  ;;  %v916_v31 = vmul.f32 %v2401_v50, %v914_v2  ;;  %v979_v37 = vsel %vm388_vm4, %v896_v26, %v956_v20  ;;  %v975_v38 = vsel %vm388_vm4, %v895_v21, %v955_v19 }
 0x4f3   : > { %1013 = vmatprep.subr.bf16.mxu1 %v979_v37  ;;  %v930_v32 = vpop.permute.xlu0 %929  ;;  %v908_v49 = vpack.c.bf16 %v2693_v35, %v2693_v35  ;;  %v907_v50 = vpack.c.bf16 %v2691_v33, %v2691_v33 }
 0x4f4   : > { %v917_v34 = vpack.c.bf16 %v915_v30, %v915_v30  ;;  %v918_v40 = vpack.c.bf16 %v916_v31, %v916_v31  ;;  %v932_v41 = vpop.permute.xlu1 %931  ;;  %1014 = vmatpush1.bf16.msra.mxu1 %v975_v38  ;;  %v2845_v31 = vld [vmem:[%s3418_s1 + $0x10] sm:$0xff]  ;;  %v2851_v38 = vld [vmem:[%s3418_s1 + $0x18] sm:$0xff] }
 0x4f5   : > { %v933_v42 = vsel %vm348_vm6, %v930_v32, %v932_v41  ;;  %v934_v43 = vsel %vm348_vm6, %v932_v41, %v930_v32 }
 0x4f6   : > { %v959_v44 = vrot.slane %v917_v34, 4  ;;  %v960_v45 = vrot.slane %v918_v40, 4  ;;  %v935_v13 = vmul.f32 %v2415_v63, %v933_v42  ;;  %v936_v4 = vmul.f32 %v2420_v0, %v934_v43 }
 0x4f7   : > { %v920_v46 = vpop.permute.xlu0 %919 }
 0x4f8   : > { %v937_v47 = vpack.c.bf16 %v935_v13, %v935_v13  ;;  %v938_v48 = vpack.c.bf16 %v936_v4, %v936_v4  ;;  %v922_v51 = vpop.permute.xlu1 %921  ;;  %v987_v52 = vsel %vm388_vm4, %v908_v49, %v960_v45  ;;  %v983_v53 = vsel %vm388_vm4, %v907_v50, %v959_v44  ;;  %v2861_v50 = vld [vmem:[%s3418_s1] sm:$0xff]  ;;  %v2867_v45 = vld [vmem:[%s3418_s1 + $0x8] sm:$0xff] }
 0x4f9   : > { %v923_v35 = vsel %vm334_vm7, %v920_v46, %v922_v51  ;;  %v924_v33 = vsel %vm334_vm7, %v922_v51, %v920_v46  ;;  %1015 = vmatprep.subr.bf16.mxu1 %v987_v52 }
 0x4fa   : > { %v925_v54 = vmul.f32 %v2436_v22, %v923_v35  ;;  %v926_v63 = vmul.f32 %v2441_v25, %v924_v33  ;;  %1016 = vmatpush1.bf16.msra.mxu1 %v983_v53  ;;  %v963_v55 = vrot.slane %v937_v47, 4  ;;  %v964_v56 = vrot.slane %v938_v48, 4  ;;  %v2877_v33 = vld [vmem:[%s3418_s1 + $0x30] sm:$0xff] }
 0x4fb   : > { %v940_v0 = vpop.permute.xlu0 %939 }
 0x4fc   : > { %v927_v57 = vpack.c.bf16 %v925_v54, %v925_v54  ;;  %v928_v11 = vpack.c.bf16 %v926_v63, %v926_v63  ;;  %v942_v58 = vpop.permute.xlu1 %941  ;;  %v2883_v63 = vld [vmem:[%s3418_s1 + $0x38] sm:$0xff] }
 0x4fd   : > { %v943_v12 = vsel %vm362_vm8, %v940_v0, %v942_v58  ;;  %v944_v59 = vsel %vm362_vm8, %v942_v58, %v940_v0 }
 0x4fe   : > { %v945_v60 = vmul.f32 %v2460_v39, %v943_v12  ;;  %v946_v61 = vmul.f32 %v2455_v36, %v944_v59  ;;  %v995_v62 = vsel %vm388_vm4, %v928_v11, %v964_v56  ;;  %v991_v9 = vsel %vm388_vm4, %v927_v57, %v963_v55 }
 0x4ff   : > { %1017 = vmatprep.subr.bf16.mxu1 %v995_v62 }
 0x500   : > { %v947_v10 = vpack.c.bf16 %v945_v60, %v945_v60  ;;  %v948_v7 = vpack.c.bf16 %v946_v61, %v946_v61  ;;  %1018 = vmatpush1.bf16.msra.mxu1 %v991_v9  ;;  %v2895_v61 = vld [vmem:[%s3418_s1 + $0x20] sm:$0xff]  ;;  %v2901_v9 = vld [vmem:[%s3418_s1 + $0x28] sm:$0xff] }
 0x502   : > { %2137 = vmatprep.subr.msk.bf16.mxu1 %vm388_vm4, %v948_v7  ;;  %v1006_v8 = vsel %vm388_vm4, %v947_v10, 0 }
 0x504   : > { %1020 = vmatpush1.bf16.msra.mxu1 %v1006_v8 }
 0x507   : > { %2138 = vmatmul.mubr.msk.bf16.vlgmr.msra.gmra.mrb[4].mxu1 %vm426_vm9, %v2135_v14 }
 0x508   : > { %1427 = vmatprep.mubr.bf16.mxu1 %v2220_v3 }
 0x50c   : > { %v1000_v15 = vpop.permute.xlu0 %999 }
 0x5da   : > { %v1045_v16 = vpop.f32.mrb[4].mxu1 }
 0x5db   : > { %v1046_v17 = vadd.f32 %v1045_v16, %v1000_v15  ;;  %v1047_v23 = vpop.f32.mrb[5].mxu1 }
 0x5dc   : > { %v1048_v24 = vadd.f32 %v1047_v23, %v1000_v15  ;;  %v1049_v18 = vpop.f32.mrb[6].mxu1 }
 0x5dd   : > { %v1052_v19 = vadd.f32 %v1046_v17, %v2585_v28  ;;  %v1050_v20 = vpop.f32.mrb[7].mxu1  ;;  %v2140_v28 = vld [vmem:[%s3420_s3 + $0x20] sm:$0xff]  ;;  %v2911_v18 = vld [vmem:[%s3418_s1 + $0x50] sm:$0xff] }
 0x5de   : > { %v1053_v21 = vadd.f32 %v1048_v24, %v2587_v29  ;;  %v2917_v20 = vld [vmem:[%s3418_s1 + $0x58] sm:$0xff] }
 0x5df   : > { %v2799_v26 = vmax.f32 %v1052_v19, 0.0 }
 0x5e0   : > { %v2801_v27 = vmax.f32 %v1053_v21, 0.0 }
 0x5e1   : > { %1070 = vrot.lane.b32.xlu1 %v2799_v26, %s2215_s29 }
 0x5e2   : > { %1072 = vrot.lane.b32.xlu0 %v2801_v27, %s2215_s29 }
 0x5e5   : > { %1060 = vrot.lane.b32.xlu1 %v2799_v26, %s2214_s28 }
 0x5e6   : > { %1062 = vrot.lane.b32.xlu0 %v2801_v27, %s2214_s28 }
 0x5e9   : > { %1090 = vrot.lane.b32.xlu1 %v2799_v26, %s2216_s30 }
 0x5ea   : > { %1092 = vrot.lane.b32.xlu0 %v2801_v27, %s2216_s30 }
 0x5ed   : > { %1080 = vrot.lane.b32.xlu1 %v2799_v26, %s2217_s7 }
 0x5ee   : > { %1082 = vrot.lane.b32.xlu0 %v2801_v27, %s2217_s7 }
 0x5f1   : > { %1102 = vrot.lane.b32.xlu1 %v2799_v26, %s2218_s8 }
 0x5f2   : > { %1104 = vrot.lane.b32.xlu0 %v2801_v27, %s2218_s8 }
 0x5f5   : > { %1122 = vrot.lane.b32.xlu1 %v2799_v26, %s2219_s9 }
 0x5f6   : > { %1124 = vrot.lane.b32.xlu0 %v2801_v27, %s2219_s9 }
 0x5f9   : > { %1112 = vrot.lane.b32.xlu1 %v2799_v26, %s2221_s10 }
 0x5fa   : > { %1114 = vrot.lane.b32.xlu0 %v2801_v27, %s2221_s10 }
 0x5fd   : > { %1132 = vrot.lane.b32.xlu1 %v2799_v26, %s2222_s11 }
 0x5fe   : > { %1134 = vrot.lane.b32.xlu0 %v2801_v27, %s2222_s11 }
 0x601   : > { %1192 = vperm.xlu1 %2181, %v2140_v28  }
 0x653   : > { %v1071_v29 = vpop.permute.xlu1 %1070 }
 0x654   : > { %v1073_v1 = vpop.permute.xlu0 %1072 }
 0x655   : > { %v1074_v2 = vsel %vm276_vm1, %v1071_v29, %v1073_v1  ;;  %v1075_v30 = vsel %vm276_vm1, %v1073_v1, %v1071_v29 }
 0x656   : > { %v1076_v37 = vmul.f32 %v2845_v31, %v1075_v30  ;;  %v1077_v32 = vmul.f32 %v2851_v38, %v1074_v2 }
 0x657   : > { %v1061_v34 = vpop.permute.xlu1 %1060 }
 0x658   : > { %v1078_v40 = vpack.c.bf16 %v1076_v37, %v1076_v37  ;;  %v1079_v41 = vpack.c.bf16 %v1077_v32, %v1077_v32  ;;  %v1063_v42 = vpop.permute.xlu0 %1062 }
 0x659   : > { %v1064_v43 = vsel %vm263_vm0, %v1061_v34, %v1063_v42  ;;  %v1065_v49 = vsel %vm263_vm0, %v1063_v42, %v1061_v34 }
 0x65a   : > { %v1066_v44 = vmul.f32 %v2861_v50, %v1065_v49  ;;  %v1067_v13 = vmul.f32 %v2867_v45, %v1064_v43  ;;  %v1144_v46 = vrot.slane %v1078_v40, 4  ;;  %v1145_v47 = vrot.slane %v1079_v41, 4  ;;  %v2933_v49 = vld [vmem:[%s3418_s1 + $0x70] sm:$0xff] }
 0x65b   : > { %v1091_v4 = vpop.permute.xlu1 %1090  ;;  %v1101_v40 = vpack.c.bf16 %v2801_v27, %v2801_v27  ;;  %v1100_v41 = vpack.c.bf16 %v2799_v26, %v2799_v26 }
 0x65c   : > { %v1068_v48 = vpack.c.bf16 %v1066_v44, %v1066_v44  ;;  %v1069_v51 = vpack.c.bf16 %v1067_v13, %v1067_v13  ;;  %v1093_v52 = vpop.permute.xlu0 %1092  ;;  %v2939_v13 = vld [vmem:[%s3418_s1 + $0x78] sm:$0xff] }
 0x65d   : > { %v1094_v53 = vsel %vm304_vm2, %v1091_v4, %v1093_v52  ;;  %v1095_v35 = vsel %vm304_vm2, %v1093_v52, %v1091_v4 }
 0x65e   : > { %v1096_v54 = vmul.f32 %v2877_v33, %v1095_v35  ;;  %v1097_v0 = vmul.f32 %v2883_v63, %v1094_v53  ;;  %v1164_v55 = vsel %vm388_vm4, %v1069_v51, %v1145_v47  ;;  %v1160_v56 = vsel %vm388_vm4, %v1068_v48, %v1144_v46 }
 0x65f   : > { %1204 = vmatprep.subr.bf16.mxu0 %v1164_v55  ;;  %v1081_v57 = vpop.permute.xlu1 %1080 }
 0x660   : > { %v1098_v11 = vpack.c.bf16 %v1096_v54, %v1096_v54  ;;  %v1099_v58 = vpack.c.bf16 %v1097_v0, %v1097_v0  ;;  %v1083_v12 = vpop.permute.xlu0 %1082  ;;  %1205 = vmatpush1.bf16.msra.mxu0 %v1160_v56 }
 0x661   : > { %v1084_v59 = vsel %vm290_vm3, %v1081_v57, %v1083_v12  ;;  %v1085_v60 = vsel %vm290_vm3, %v1083_v12, %v1081_v57 }
 0x662   : > { %v1086_v62 = vmul.f32 %v2895_v61, %v1085_v60  ;;  %v1087_v10 = vmul.f32 %v2901_v9, %v1084_v59  ;;  %v1148_v8 = vrot.slane %v1098_v11, 4  ;;  %v1149_v14 = vrot.slane %v1099_v58, 4 }
 0x663   : > { %v1103_v7 = vpop.permute.xlu1 %1102 }
 0x664   : > { %v1088_v15 = vpack.c.bf16 %v1086_v62, %v1086_v62  ;;  %v1089_v16 = vpack.c.bf16 %v1087_v10, %v1087_v10  ;;  %v1105_v17 = vpop.permute.xlu0 %1104 }
 0x665   : > { %v1106_v23 = vsel %vm320_vm5, %v1103_v7, %v1105_v17  ;;  %v1107_v24 = vsel %vm320_vm5, %v1105_v17, %v1103_v7 }
 0x666   : > { %v1108_v19 = vmul.f32 %v2911_v18, %v1106_v23  ;;  %v1109_v21 = vmul.f32 %v2917_v20, %v1107_v24  ;;  %v1172_v28 = vsel %vm388_vm4, %v1089_v16, %v1149_v14  ;;  %v1168_v29 = vsel %vm388_vm4, %v1088_v15, %v1148_v8  ;;  %v2139_v16 = vld [vmem:[%s3419_s2 + $0x10] sm:$0xf] }
 0x667   : > { %1206 = vmatprep.subr.bf16.mxu0 %v1172_v28  ;;  %v1123_v1 = vpop.permute.xlu1 %1122 }
 0x668   : > { %v1110_v2 = vpack.c.bf16 %v1108_v19, %v1108_v19  ;;  %v1111_v30 = vpack.c.bf16 %v1109_v21, %v1109_v21  ;;  %v1125_v37 = vpop.permute.xlu0 %1124  ;;  %1207 = vmatpush1.bf16.msra.mxu0 %v1168_v29 }
 0x669   : > { %v1126_v32 = vsel %vm348_vm6, %v1123_v1, %v1125_v37  ;;  %v1127_v34 = vsel %vm348_vm6, %v1125_v37, %v1123_v1  ;;  %v2144_v1 = vld [vmem:[%s3420_s3 + $0x28] sm:$0xff] }
 0x66a   : > { %v1152_v42 = vrot.slane %v1110_v2, 4  ;;  %v1153_v43 = vrot.slane %v1111_v30, 4  ;;  %v1128_v44 = vmul.f32 %v2933_v49, %v1126_v32  ;;  %v1129_v4 = vmul.f32 %v2939_v13, %v1127_v34 }
 0x66b   : > { %v1113_v46 = vpop.permute.xlu1 %1112 }
 0x66c   : > { %v1130_v47 = vpack.c.bf16 %v1128_v44, %v1128_v44  ;;  %v1131_v48 = vpack.c.bf16 %v1129_v4, %v1129_v4  ;;  %v1115_v51 = vpop.permute.xlu0 %1114  ;;  %v1180_v52 = vsel %vm388_vm4, %v1101_v40, %v1153_v43  ;;  %v1176_v53 = vsel %vm388_vm4, %v1100_v41, %v1152_v42 }
 0x66d   : > { %v1116_v35 = vsel %vm334_vm7, %v1113_v46, %v1115_v51  ;;  %v1117_v54 = vsel %vm334_vm7, %v1115_v51, %v1113_v46  ;;  %1208 = vmatprep.subr.bf16.mxu0 %v1180_v52 }
 0x66e   : > { %v1118_v0 = vmul.f32 %v2436_v22, %v1116_v35  ;;  %v1119_v55 = vmul.f32 %v2441_v25, %v1117_v54  ;;  %1209 = vmatpush1.bf16.msra.mxu0 %v1176_v53  ;;  %v1156_v57 = vrot.slane %v1130_v47, 4  ;;  %v1157_v11 = vrot.slane %v1131_v48, 4 }
 0x66f   : > { %v1133_v56 = vpop.permute.xlu1 %1132 }
 0x670   : > { %v1120_v58 = vpack.c.bf16 %v1118_v0, %v1118_v0  ;;  %v1121_v12 = vpack.c.bf16 %v1119_v55, %v1119_v55  ;;  %v1135_v59 = vpop.permute.xlu0 %1134 }
 0x671   : > { %v1136_v60 = vsel %vm362_vm8, %v1133_v56, %v1135_v59  ;;  %v1137_v62 = vsel %vm362_vm8, %v1135_v59, %v1133_v56 }
 0x672   : > { %v1138_v10 = vmul.f32 %v2460_v39, %v1136_v60  ;;  %v1139_v7 = vmul.f32 %v2455_v36, %v1137_v62  ;;  %v1188_v22 = vsel %vm388_vm4, %v1121_v12, %v1157_v11  ;;  %v1184_v25 = vsel %vm388_vm4, %v1120_v58, %v1156_v57 }
 0x673   : > { %1210 = vmatprep.subr.bf16.mxu0 %v1188_v22 }
 0x674   : > { %v1140_v8 = vpack.c.bf16 %v1138_v10, %v1138_v10  ;;  %v1141_v14 = vpack.c.bf16 %v1139_v7, %v1139_v7  ;;  %1211 = vmatpush1.bf16.msra.mxu0 %v1184_v25 }
 0x676   : > { %2141 = vmatprep.subr.msk.bf16.mxu0 %vm388_vm4, %v1141_v14  ;;  %v1199_v15 = vsel %vm388_vm4, %v1140_v8, 0 }
 0x678   : > { %1213 = vmatpush1.bf16.msra.mxu0 %v1199_v15 }
 0x67b   : > { %2142 = vmatmul.mubr.msk.bf16.vlgmr.msra.gmra.mrb[8].mxu0 %vm426_vm9, %v2139_v16 }
 0x67c   : > { %1620 = vmatprep.mubr.bf16.mxu0 %v2220_v3 }
 0x680   : > { %v1193_v36 = vpop.permute.xlu1 %1192 }
 0x74e   : > { %v1238_v39 = vpop.f32.mrb[8].mxu0 }
 0x74f   : > { %v1239_v17 = vadd.f32 %v1238_v39, %v1193_v36  ;;  %v1240_v23 = vpop.f32.mrb[9].mxu0 }
 0x750   : > { %v1241_v24 = vadd.f32 %v1240_v23, %v1193_v36  ;;  %v1242_v19 = vpop.f32.mrb[10].mxu0 }
 0x751   : > { %v2965_v21 = vmax.f32 %v1239_v17, 0.0  ;;  %v1243_v28 = vpop.f32.mrb[11].mxu0 }
 0x752   : > { %v2967_v29 = vmax.f32 %v1241_v24, 0.0 }
 0x753   : > { %1261 = vrot.lane.b32.xlu0 %v2965_v21, %s2215_s29 }
 0x754   : > { %1263 = vrot.lane.b32.xlu1 %v2967_v29, %s2215_s29 }
 0x757   : > { %1251 = vrot.lane.b32.xlu0 %v2965_v21, %s2214_s28 }
 0x758   : > { %1253 = vrot.lane.b32.xlu1 %v2967_v29, %s2214_s28 }
 0x75b   : > { %1281 = vrot.lane.b32.xlu0 %v2965_v21, %s2216_s30 }
 0x75c   : > { %1283 = vrot.lane.b32.xlu1 %v2967_v29, %s2216_s30 }
 0x75f   : > { %1271 = vrot.lane.b32.xlu0 %v2965_v21, %s2217_s7 }
 0x760   : > { %1273 = vrot.lane.b32.xlu1 %v2967_v29, %s2217_s7 }
 0x763   : > { %1293 = vrot.lane.b32.xlu0 %v2965_v21, %s2218_s8 }
 0x764   : > { %1295 = vrot.lane.b32.xlu1 %v2967_v29, %s2218_s8 }
 0x767   : > { %1313 = vrot.lane.b32.xlu0 %v2965_v21, %s2219_s9 }
 0x768   : > { %1315 = vrot.lane.b32.xlu1 %v2967_v29, %s2219_s9 }
 0x76b   : > { %1303 = vrot.lane.b32.xlu0 %v2965_v21, %s2221_s10 }
 0x76c   : > { %1305 = vrot.lane.b32.xlu1 %v2967_v29, %s2221_s10 }
 0x76f   : > { %1323 = vrot.lane.b32.xlu0 %v2965_v21, %s2222_s11 }
 0x770   : > { %1325 = vrot.lane.b32.xlu1 %v2967_v29, %s2222_s11 }
 0x773   : > { %1383 = vperm.xlu0 %2180, %v2144_v1  }
 0x7c5   : > { %v1262_v2 = vpop.permute.xlu0 %1261 }
 0x7c6   : > { %v1264_v30 = vpop.permute.xlu1 %1263 }
 0x7c7   : > { %v1265_v37 = vsel %vm276_vm1, %v1262_v2, %v1264_v30  ;;  %v1266_v32 = vsel %vm276_vm1, %v1264_v30, %v1262_v2 }
 0x7c8   : > { %v1267_v34 = vmul.f32 %v2845_v31, %v1266_v32  ;;  %v1268_v40 = vmul.f32 %v2851_v38, %v1265_v37 }
 0x7c9   : > { %v1252_v41 = vpop.permute.xlu0 %1251 }
 0x7ca   : > { %v1269_v42 = vpack.c.bf16 %v1267_v34, %v1267_v34  ;;  %v1270_v43 = vpack.c.bf16 %v1268_v40, %v1268_v40  ;;  %v1254_v44 = vpop.permute.xlu1 %1253 }
 0x7cb   : > { %v1255_v4 = vsel %vm263_vm0, %v1252_v41, %v1254_v44  ;;  %v1256_v46 = vsel %vm263_vm0, %v1254_v44, %v1252_v41 }
 0x7cc   : > { %v1257_v47 = vmul.f32 %v2861_v50, %v1256_v46  ;;  %v1258_v48 = vmul.f32 %v2867_v45, %v1255_v4  ;;  %v1335_v52 = vrot.slane %v1269_v42, 4  ;;  %v1336_v53 = vrot.slane %v1270_v43, 4 }
 0x7cd   : > { %v1282_v51 = vpop.permute.xlu0 %1281  ;;  %v1292_v42 = vpack.c.bf16 %v2967_v29, %v2967_v29  ;;  %v1291_v43 = vpack.c.bf16 %v2965_v21, %v2965_v21 }
 0x7ce   : > { %v1259_v35 = vpack.c.bf16 %v1257_v47, %v1257_v47  ;;  %v1260_v54 = vpack.c.bf16 %v1258_v48, %v1258_v48  ;;  %v1284_v0 = vpop.permute.xlu1 %1283 }
 0x7cf   : > { %v1285_v55 = vsel %vm304_vm2, %v1282_v51, %v1284_v0  ;;  %v1286_v56 = vsel %vm304_vm2, %v1284_v0, %v1282_v51  ;;  %v3057_v0 = vld [vmem:[%s3418_s1 + $0x60] sm:$0xff] }
 0x7d0   : > { %v1287_v57 = vmul.f32 %v2877_v33, %v1286_v56  ;;  %v1288_v11 = vmul.f32 %v2883_v63, %v1285_v55  ;;  %v1355_v58 = vsel %vm388_vm4, %v1260_v54, %v1336_v53  ;;  %v1351_v12 = vsel %vm388_vm4, %v1259_v35, %v1335_v52  ;;  %v3063_v56 = vld [vmem:[%s3418_s1 + $0x68] sm:$0xff] }
 0x7d1   : > { %1395 = vmatprep.subr.bf16.mxu1 %v1355_v58  ;;  %v1272_v59 = vpop.permute.xlu0 %1271 }
 0x7d2   : > { %v1289_v60 = vpack.c.bf16 %v1287_v57, %v1287_v57  ;;  %v1290_v62 = vpack.c.bf16 %v1288_v11, %v1288_v11  ;;  %v1274_v10 = vpop.permute.xlu1 %1273  ;;  %1396 = vmatpush1.bf16.msra.mxu1 %v1351_v12 }
 0x7d3   : > { %v1275_v7 = vsel %vm290_vm3, %v1272_v59, %v1274_v10  ;;  %v1276_v22 = vsel %vm290_vm3, %v1274_v10, %v1272_v59 }
 0x7d4   : > { %v1277_v25 = vmul.f32 %v2895_v61, %v1276_v22  ;;  %v1278_v8 = vmul.f32 %v2901_v9, %v1275_v7  ;;  %v1339_v15 = vrot.slane %v1289_v60, 4  ;;  %v1340_v16 = vrot.slane %v1290_v62, 4  ;;  %v3073_v22 = vld [vmem:[%s3418_s1 + $0x80] sm:$0xff] }
 0x7d5   : > { %v1294_v14 = vpop.permute.xlu0 %1293 }
 0x7d6   : > { %v1279_v36 = vpack.c.bf16 %v1277_v25, %v1277_v25  ;;  %v1280_v39 = vpack.c.bf16 %v1278_v8, %v1278_v8  ;;  %v1296_v17 = vpop.permute.xlu1 %1295  ;;  %v3079_v8 = vld [vmem:[%s3418_s1 + $0x88] sm:$0xff] }
 0x7d7   : > { %v1297_v23 = vsel %vm320_vm5, %v1294_v14, %v1296_v17  ;;  %v1298_v24 = vsel %vm320_vm5, %v1296_v17, %v1294_v14 }
 0x7d8   : > { %v1299_v19 = vmul.f32 %v2911_v18, %v1297_v23  ;;  %v1300_v28 = vmul.f32 %v2917_v20, %v1298_v24  ;;  %v1363_v1 = vsel %vm388_vm4, %v1280_v39, %v1340_v16  ;;  %v1359_v2 = vsel %vm388_vm4, %v1279_v36, %v1339_v15  ;;  %v2143_v23 = vld [vmem:[%s3419_s2 + $0x14] sm:$0xf] }
 0x7d9   : > { %1397 = vmatprep.subr.bf16.mxu1 %v1363_v1  ;;  %v1314_v30 = vpop.permute.xlu0 %1313 }
 0x7da   : > { %v1301_v37 = vpack.c.bf16 %v1299_v19, %v1299_v19  ;;  %v1302_v32 = vpack.c.bf16 %v1300_v28, %v1300_v28  ;;  %v1316_v34 = vpop.permute.xlu1 %1315  ;;  %1398 = vmatpush1.bf16.msra.mxu1 %v1359_v2 }
 0x7db   : > { %v1317_v40 = vsel %vm348_vm6, %v1314_v30, %v1316_v34  ;;  %v1318_v41 = vsel %vm348_vm6, %v1316_v34, %v1314_v30 }
 0x7dc   : > { %v1343_v44 = vrot.slane %v1301_v37, 4  ;;  %v1344_v4 = vrot.slane %v1302_v32, 4  ;;  %v1319_v46 = vmul.f32 %v2933_v49, %v1317_v40  ;;  %v1320_v47 = vmul.f32 %v2939_v13, %v1318_v41 }
 0x7dd   : > { %v1304_v48 = vpop.permute.xlu0 %1303 }
 0x7de   : > { %v1321_v51 = vpack.c.bf16 %v1319_v46, %v1319_v46  ;;  %v1322_v52 = vpack.c.bf16 %v1320_v47, %v1320_v47  ;;  %v1306_v53 = vpop.permute.xlu1 %1305  ;;  %v1371_v35 = vsel %vm388_vm4, %v1292_v42, %v1344_v4  ;;  %v1367_v54 = vsel %vm388_vm4, %v1291_v43, %v1343_v44 }
 0x7df   : > { %v1307_v29 = vsel %vm334_vm7, %v1304_v48, %v1306_v53  ;;  %v1308_v21 = vsel %vm334_vm7, %v1306_v53, %v1304_v48  ;;  %1399 = vmatprep.subr.bf16.mxu1 %v1371_v35 }
 0x7e0   : > { %v1309_v55 = vmul.f32 %v3057_v0, %v1307_v29  ;;  %v1310_v57 = vmul.f32 %v3063_v56, %v1308_v21  ;;  %1400 = vmatpush1.bf16.msra.mxu1 %v1367_v54  ;;  %v1347_v58 = vrot.slane %v1321_v51, 4  ;;  %v1348_v12 = vrot.slane %v1322_v52, 4 }
 0x7e1   : > { %v1324_v11 = vpop.permute.xlu0 %1323 }
 0x7e2   : > { %v1311_v59 = vpack.c.bf16 %v1309_v55, %v1309_v55  ;;  %v1312_v60 = vpack.c.bf16 %v1310_v57, %v1310_v57  ;;  %v1326_v62 = vpop.permute.xlu1 %1325 }
 0x7e3   : > { %v1327_v10 = vsel %vm362_vm8, %v1324_v11, %v1326_v62  ;;  %v1328_v7 = vsel %vm362_vm8, %v1326_v62, %v1324_v11 }
 0x7e4   : > { %v1329_v25 = vmul.f32 %v3073_v22, %v1327_v10  ;;  %v1330_v14 = vmul.f32 %v3079_v8, %v1328_v7  ;;  %v1379_v15 = vsel %vm388_vm4, %v1312_v60, %v1348_v12  ;;  %v1375_v16 = vsel %vm388_vm4, %v1311_v59, %v1347_v58 }
 0x7e5   : > { %1401 = vmatprep.subr.bf16.mxu1 %v1379_v15 }
 0x7e6   : > { %v1331_v36 = vpack.c.bf16 %v1329_v25, %v1329_v25  ;;  %v1332_v39 = vpack.c.bf16 %v1330_v14, %v1330_v14  ;;  %1402 = vmatpush1.bf16.msra.mxu1 %v1375_v16 }
 0x7e8   : > { %2145 = vmatprep.subr.msk.bf16.mxu1 %vm388_vm4, %v1332_v39  ;;  %v1390_v17 = vsel %vm388_vm4, %v1331_v36, 0 }
 0x7ea   : > { %1404 = vmatpush1.bf16.msra.mxu1 %v1390_v17 }
 0x7ed   : > { %2146 = vmatmul.mubr.msk.bf16.vlgmr.msra.gmra.mrb[8].mxu1 %vm426_vm9, %v2143_v23 }
 0x7ee   : > { %1811 = vmatprep.mubr.bf16.mxu1 %v2220_v3 }
 0x7f2   : > { %v1384_v24 = vpop.permute.xlu0 %1383 }
 0x8c0   : > { %v1429_v19 = vpop.f32.mrb[8].mxu1 }
 0x8c1   : > { %v1430_v28 = vadd.f32 %v1429_v19, %v1384_v24  ;;  %v1431_v1 = vpop.f32.mrb[9].mxu1 }
 0x8c2   : > { %v1432_v2 = vadd.f32 %v1431_v1, %v1384_v24  ;;  %v1433_v30 = vpop.f32.mrb[10].mxu1 }
 0x8c3   : > { %v1436_v37 = vadd.f32 %v1430_v28, %v2799_v26  ;;  %v1434_v32 = vpop.f32.mrb[11].mxu1  ;;  %v2148_v26 = vld [vmem:[%s3420_s3 + $0x30] sm:$0xff] }
 0x8c4   : > { %v1437_v34 = vadd.f32 %v1432_v2, %v2801_v27 }
 0x8c5   : > { %v3093_v40 = vmax.f32 %v1436_v37, 0.0 }
 0x8c6   : > { %v3095_v41 = vmax.f32 %v1437_v34, 0.0 }
 0x8c7   : > { %1454 = vrot.lane.b32.xlu1 %v3093_v40, %s2215_s29 }
 0x8c8   : > { %1456 = vrot.lane.b32.xlu0 %v3095_v41, %s2215_s29 }
 0x8cb   : > { %1444 = vrot.lane.b32.xlu1 %v3093_v40, %s2214_s28 }
 0x8cc   : > { %1446 = vrot.lane.b32.xlu0 %v3095_v41, %s2214_s28 }
 0x8cf   : > { %1474 = vrot.lane.b32.xlu1 %v3093_v40, %s2216_s30 }
 0x8d0   : > { %1476 = vrot.lane.b32.xlu0 %v3095_v41, %s2216_s30 }
 0x8d3   : > { %1464 = vrot.lane.b32.xlu1 %v3093_v40, %s2217_s7 }
 0x8d4   : > { %1466 = vrot.lane.b32.xlu0 %v3095_v41, %s2217_s7 }
 0x8d7   : > { %1486 = vrot.lane.b32.xlu1 %v3093_v40, %s2218_s8 }
 0x8d8   : > { %1488 = vrot.lane.b32.xlu0 %v3095_v41, %s2218_s8 }
 0x8db   : > { %1506 = vrot.lane.b32.xlu1 %v3093_v40, %s2219_s9 }
 0x8dc   : > { %1508 = vrot.lane.b32.xlu0 %v3095_v41, %s2219_s9 }
 0x8df   : > { %1496 = vrot.lane.b32.xlu1 %v3093_v40, %s2221_s10 }
 0x8e0   : > { %1498 = vrot.lane.b32.xlu0 %v3095_v41, %s2221_s10 }
 0x8e3   : > { %1516 = vrot.lane.b32.xlu1 %v3093_v40, %s2222_s11 }
 0x8e4   : > { %1518 = vrot.lane.b32.xlu0 %v3095_v41, %s2222_s11 }
 0x8e7   : > { %1576 = vperm.xlu1 %2181, %v2148_v26  }
 0x939   : > { %v1455_v27 = vpop.permute.xlu1 %1454 }
 0x93a   : > { %v1457_v42 = vpop.permute.xlu0 %1456 }
 0x93b   : > { %v1458_v43 = vsel %vm276_vm1, %v1455_v27, %v1457_v42  ;;  %v1459_v44 = vsel %vm276_vm1, %v1457_v42, %v1455_v27 }
 0x93c   : > { %v1460_v4 = vmul.f32 %v2845_v31, %v1459_v44  ;;  %v1461_v46 = vmul.f32 %v2851_v38, %v1458_v43 }
 0x93d   : > { %v1445_v47 = vpop.permute.xlu1 %1444 }
 0x93e   : > { %v1462_v48 = vpack.c.bf16 %v1460_v4, %v1460_v4  ;;  %v1463_v51 = vpack.c.bf16 %v1461_v46, %v1461_v46  ;;  %v1447_v52 = vpop.permute.xlu0 %1446 }
 0x93f   : > { %v1448_v53 = vsel %vm263_vm0, %v1445_v47, %v1447_v52  ;;  %v1449_v35 = vsel %vm263_vm0, %v1447_v52, %v1445_v47  ;;  %v1485_v52 = vpack.c.bf16 %v3095_v41, %v3095_v41 }
 0x940   : > { %v1450_v54 = vmul.f32 %v2861_v50, %v1449_v35  ;;  %v1451_v29 = vmul.f32 %v2867_v45, %v1448_v53  ;;  %v1528_v55 = vrot.slane %v1462_v48, 4  ;;  %v1529_v57 = vrot.slane %v1463_v51, 4 }
 0x941   : > { %v1475_v21 = vpop.permute.xlu1 %1474  ;;  %v1484_v53 = vpack.c.bf16 %v3093_v40, %v3093_v40 }
 0x942   : > { %v1452_v11 = vpack.c.bf16 %v1450_v54, %v1450_v54  ;;  %v1453_v58 = vpack.c.bf16 %v1451_v29, %v1451_v29  ;;  %v1477_v12 = vpop.permute.xlu0 %1476 }
 0x943   : > { %v1478_v59 = vsel %vm304_vm2, %v1475_v21, %v1477_v12  ;;  %v1479_v60 = vsel %vm304_vm2, %v1477_v12, %v1475_v21 }
 0x944   : > { %v1480_v62 = vmul.f32 %v2877_v33, %v1479_v60  ;;  %v1481_v10 = vmul.f32 %v2883_v63, %v1478_v59  ;;  %v1548_v7 = vsel %vm388_vm4, %v1453_v58, %v1529_v57  ;;  %v1544_v25 = vsel %vm388_vm4, %v1452_v11, %v1528_v55 }
 0x945   : > { %1588 = vmatprep.subr.bf16.mxu0 %v1548_v7  ;;  %v1465_v14 = vpop.permute.xlu1 %1464 }
 0x946   : > { %v1482_v15 = vpack.c.bf16 %v1480_v62, %v1480_v62  ;;  %v1483_v16 = vpack.c.bf16 %v1481_v10, %v1481_v10  ;;  %v1467_v36 = vpop.permute.xlu0 %1466  ;;  %1589 = vmatpush1.bf16.msra.mxu0 %v1544_v25 }
 0x947   : > { %v1468_v39 = vsel %vm290_vm3, %v1465_v14, %v1467_v36  ;;  %v1469_v17 = vsel %vm290_vm3, %v1467_v36, %v1465_v14 }
 0x948   : > { %v1470_v23 = vmul.f32 %v2895_v61, %v1469_v17  ;;  %v1471_v24 = vmul.f32 %v2901_v9, %v1468_v39  ;;  %v1532_v28 = vrot.slane %v1482_v15, 4  ;;  %v1533_v1 = vrot.slane %v1483_v16, 4 }
 0x949   : > { %v1487_v19 = vpop.permute.xlu1 %1486 }
 0x94a   : > { %v1472_v2 = vpack.c.bf16 %v1470_v23, %v1470_v23  ;;  %v1473_v30 = vpack.c.bf16 %v1471_v24, %v1471_v24  ;;  %v1489_v37 = vpop.permute.xlu0 %1488 }
 0x94b   : > { %v1490_v32 = vsel %vm320_vm5, %v1487_v19, %v1489_v37  ;;  %v1491_v34 = vsel %vm320_vm5, %v1489_v37, %v1487_v19 }
 0x94c   : > { %v1492_v26 = vmul.f32 %v2911_v18, %v1490_v32  ;;  %v1493_v27 = vmul.f32 %v2917_v20, %v1491_v34  ;;  %v1556_v42 = vsel %vm388_vm4, %v1473_v30, %v1533_v1  ;;  %v1552_v43 = vsel %vm388_vm4, %v1472_v2, %v1532_v28  ;;  %v2147_v32 = vld [vmem:[%s3419_s2 + $0x18] sm:$0xf] }
 0x94d   : > { %1590 = vmatprep.subr.bf16.mxu0 %v1556_v42  ;;  %v1507_v44 = vpop.permute.xlu1 %1506 }
 0x94e   : > { %v1494_v4 = vpack.c.bf16 %v1492_v26, %v1492_v26  ;;  %v1495_v46 = vpack.c.bf16 %v1493_v27, %v1493_v27  ;;  %v1509_v47 = vpop.permute.xlu0 %1508  ;;  %1591 = vmatpush1.bf16.msra.mxu0 %v1552_v43 }
 0x94f   : > { %v1510_v48 = vsel %vm348_vm6, %v1507_v44, %v1509_v47  ;;  %v1511_v51 = vsel %vm348_vm6, %v1509_v47, %v1507_v44 }
 0x950   : > { %v1536_v35 = vrot.slane %v1494_v4, 4  ;;  %v1537_v54 = vrot.slane %v1495_v46, 4  ;;  %v1512_v29 = vmul.f32 %v2933_v49, %v1510_v48  ;;  %v1513_v21 = vmul.f32 %v2939_v13, %v1511_v51 }
 0x951   : > { %v1497_v55 = vpop.permute.xlu1 %1496 }
 0x952   : > { %v1514_v57 = vpack.c.bf16 %v1512_v29, %v1512_v29  ;;  %v1515_v11 = vpack.c.bf16 %v1513_v21, %v1513_v21  ;;  %v1499_v58 = vpop.permute.xlu0 %1498  ;;  %v1564_v12 = vsel %vm388_vm4, %v1485_v52, %v1537_v54  ;;  %v1560_v59 = vsel %vm388_vm4, %v1484_v53, %v1536_v35 }
 0x953   : > { %v1500_v60 = vsel %vm334_vm7, %v1497_v55, %v1499_v58  ;;  %v1501_v62 = vsel %vm334_vm7, %v1499_v58, %v1497_v55  ;;  %1592 = vmatprep.subr.bf16.mxu0 %v1564_v12 }
 0x954   : > { %v1502_v10 = vmul.f32 %v3057_v0, %v1500_v60  ;;  %v1503_v7 = vmul.f32 %v3063_v56, %v1501_v62  ;;  %1593 = vmatpush1.bf16.msra.mxu0 %v1560_v59  ;;  %v1540_v14 = vrot.slane %v1514_v57, 4  ;;  %v1541_v15 = vrot.slane %v1515_v11, 4 }
 0x955   : > { %v1517_v25 = vpop.permute.xlu1 %1516 }
 0x956   : > { %v1504_v16 = vpack.c.bf16 %v1502_v10, %v1502_v10  ;;  %v1505_v36 = vpack.c.bf16 %v1503_v7, %v1503_v7  ;;  %v1519_v39 = vpop.permute.xlu0 %1518 }
 0x957   : > { %v1520_v17 = vsel %vm362_vm8, %v1517_v25, %v1519_v39  ;;  %v1521_v23 = vsel %vm362_vm8, %v1519_v39, %v1517_v25 }
 0x958   : > { %v1522_v24 = vmul.f32 %v3073_v22, %v1520_v17  ;;  %v1523_v19 = vmul.f32 %v3079_v8, %v1521_v23  ;;  %v1572_v28 = vsel %vm388_vm4, %v1505_v36, %v1541_v15  ;;  %v1568_v1 = vsel %vm388_vm4, %v1504_v16, %v1540_v14 }
 0x959   : > { %1594 = vmatprep.subr.bf16.mxu0 %v1572_v28 }
 0x95a   : > { %v1524_v2 = vpack.c.bf16 %v1522_v24, %v1522_v24  ;;  %v1525_v30 = vpack.c.bf16 %v1523_v19, %v1523_v19  ;;  %1595 = vmatpush1.bf16.msra.mxu0 %v1568_v1 }
 0x95c   : > { %2149 = vmatprep.subr.msk.bf16.mxu0 %vm388_vm4, %v1525_v30  ;;  %v1583_v37 = vsel %vm388_vm4, %v1524_v2, 0 }
 0x95e   : > { %1597 = vmatpush1.bf16.msra.mxu0 %v1583_v37 }
 0x961   : > { %2150 = vmatmul.mubr.msk.bf16.vlgmr.msra.gmra.mrb[12].mxu0 %vm426_vm9, %v2147_v32 }
 0x962   : > { %2006 = vmatprep.mubr.bf16.mxu0 %v2220_v3  ;;  %v2152_v3 = vld [vmem:[%s3420_s3 + $0x38] sm:$0xff] }
 0x966   : > { %v1577_v34 = vpop.permute.xlu1 %1576 }
 0xa34   : > { %v1622_v26 = vpop.f32.mrb[12].mxu0 }
 0xa35   : > { %v1623_v27 = vadd.f32 %v1622_v26, %v1577_v34  ;;  %v1624_v42 = vpop.f32.mrb[13].mxu0 }
 0xa36   : > { %v1625_v43 = vadd.f32 %v1624_v42, %v1577_v34  ;;  %v1626_v44 = vpop.f32.mrb[14].mxu0 }
 0xa37   : > { %v3199_v4 = vmax.f32 %v1623_v27, 0.0  ;;  %v1627_v46 = vpop.f32.mrb[15].mxu0 }
 0xa38   : > { %v3201_v47 = vmax.f32 %v1625_v43, 0.0 }
 0xa39   : > { %1645 = vrot.lane.b32.xlu0 %v3199_v4, %s2215_s29 }
 0xa3a   : > { %1647 = vrot.lane.b32.xlu1 %v3201_v47, %s2215_s29 }
 0xa3d   : > { %1635 = vrot.lane.b32.xlu0 %v3199_v4, %s2214_s28 }
 0xa3e   : > { %1637 = vrot.lane.b32.xlu1 %v3201_v47, %s2214_s28 }
 0xa41   : > { %1665 = vrot.lane.b32.xlu0 %v3199_v4, %s2216_s30 }
 0xa42   : > { %1667 = vrot.lane.b32.xlu1 %v3201_v47, %s2216_s30 }
 0xa45   : > { %1655 = vrot.lane.b32.xlu0 %v3199_v4, %s2217_s7 }
 0xa46   : > { %1657 = vrot.lane.b32.xlu1 %v3201_v47, %s2217_s7 }
 0xa49   : > { %1677 = vrot.lane.b32.xlu0 %v3199_v4, %s2218_s8 }
 0xa4a   : > { %1679 = vrot.lane.b32.xlu1 %v3201_v47, %s2218_s8 }
 0xa4d   : > { %1697 = vrot.lane.b32.xlu0 %v3199_v4, %s2219_s9 }
 0xa4e   : > { %1699 = vrot.lane.b32.xlu1 %v3201_v47, %s2219_s9 }
 0xa51   : > { %1687 = vrot.lane.b32.xlu0 %v3199_v4, %s2221_s10 }
 0xa52   : > { %1689 = vrot.lane.b32.xlu1 %v3201_v47, %s2221_s10 }
 0xa55   : > { %1707 = vrot.lane.b32.xlu0 %v3199_v4, %s2222_s11 }
 0xa56   : > { %1709 = vrot.lane.b32.xlu1 %v3201_v47, %s2222_s11 }
 0xa59   : > { %1767 = vperm.xlu0 %2180, %v2152_v3  }
 0xaab   : > { %v1646_v48 = vpop.permute.xlu0 %1645 }
 0xaac   : > { %v1648_v51 = vpop.permute.xlu1 %1647 }
 0xaad   : > { %v1649_v52 = vsel %vm276_vm1, %v1646_v48, %v1648_v51  ;;  %v1650_v53 = vsel %vm276_vm1, %v1648_v51, %v1646_v48 }
 0xaae   : > { %v1651_v35 = vmul.f32 %v2845_v31, %v1650_v53  ;;  %v1652_v54 = vmul.f32 %v2851_v38, %v1649_v52 }
 0xaaf   : > { %v1636_v29 = vpop.permute.xlu0 %1635 }
 0xab0   : > { %v1653_v21 = vpack.c.bf16 %v1651_v35, %v1651_v35  ;;  %v1654_v55 = vpack.c.bf16 %v1652_v54, %v1652_v54  ;;  %v1638_v57 = vpop.permute.xlu1 %1637 }
 0xab1   : > { %v1639_v11 = vsel %vm263_vm0, %v1636_v29, %v1638_v57  ;;  %v1640_v58 = vsel %vm263_vm0, %v1638_v57, %v1636_v29 }
 0xab2   : > { %v1641_v12 = vmul.f32 %v2861_v50, %v1640_v58  ;;  %v1642_v59 = vmul.f32 %v2867_v45, %v1639_v11  ;;  %v1719_v62 = vrot.slane %v1653_v21, 4  ;;  %v1720_v10 = vrot.slane %v1654_v55, 4 }
 0xab3   : > { %v1666_v60 = vpop.permute.xlu0 %1665  ;;  %v1676_v11 = vpack.c.bf16 %v3201_v47, %v3201_v47  ;;  %v1675_v58 = vpack.c.bf16 %v3199_v4, %v3199_v4 }
 0xab4   : > { %v1643_v7 = vpack.c.bf16 %v1641_v12, %v1641_v12  ;;  %v1644_v25 = vpack.c.bf16 %v1642_v59, %v1642_v59  ;;  %v1668_v14 = vpop.permute.xlu1 %1667 }
 0xab5   : > { %v1669_v15 = vsel %vm304_vm2, %v1666_v60, %v1668_v14  ;;  %v1670_v16 = vsel %vm304_vm2, %v1668_v14, %v1666_v60 }
 0xab6   : > { %v1671_v36 = vmul.f32 %v2877_v33, %v1670_v16  ;;  %v1672_v39 = vmul.f32 %v2883_v63, %v1669_v15  ;;  %v1739_v17 = vsel %vm388_vm4, %v1644_v25, %v1720_v10  ;;  %v1735_v23 = vsel %vm388_vm4, %v1643_v7, %v1719_v62 }
 0xab7   : > { %1779 = vmatprep.subr.bf16.mxu1 %v1739_v17  ;;  %v1656_v24 = vpop.permute.xlu0 %1655 }
 0xab8   : > { %v1673_v19 = vpack.c.bf16 %v1671_v36, %v1671_v36  ;;  %v1674_v28 = vpack.c.bf16 %v1672_v39, %v1672_v39  ;;  %v1658_v1 = vpop.permute.xlu1 %1657  ;;  %1780 = vmatpush1.bf16.msra.mxu1 %v1735_v23 }
 0xab9   : > { %v1659_v2 = vsel %vm290_vm3, %v1656_v24, %v1658_v1  ;;  %v1660_v30 = vsel %vm290_vm3, %v1658_v1, %v1656_v24 }
 0xaba   : > { %v1661_v37 = vmul.f32 %v2895_v61, %v1660_v30  ;;  %v1662_v32 = vmul.f32 %v2901_v9, %v1659_v2  ;;  %v1723_v26 = vrot.slane %v1673_v19, 4  ;;  %v1724_v27 = vrot.slane %v1674_v28, 4 }
 0xabb   : > { %v1678_v34 = vpop.permute.xlu0 %1677 }
 0xabc   : > { %v1663_v42 = vpack.c.bf16 %v1661_v37, %v1661_v37  ;;  %v1664_v43 = vpack.c.bf16 %v1662_v32, %v1662_v32  ;;  %v1680_v44 = vpop.permute.xlu1 %1679 }
 0xabd   : > { %v1681_v46 = vsel %vm320_vm5, %v1678_v34, %v1680_v44  ;;  %v1682_v3 = vsel %vm320_vm5, %v1680_v44, %v1678_v34  ;;  %v2151_v44 = vld [vmem:[%s3419_s2 + $0x1c] sm:$0xf] }
 0xabe   : > { %v1683_v48 = vmul.f32 %v2911_v18, %v1681_v46  ;;  %v1684_v51 = vmul.f32 %v2917_v20, %v1682_v3  ;;  %v1747_v52 = vsel %vm388_vm4, %v1664_v43, %v1724_v27  ;;  %v1743_v53 = vsel %vm388_vm4, %v1663_v42, %v1723_v26 }
 0xabf   : > { %1781 = vmatprep.subr.bf16.mxu1 %v1747_v52  ;;  %v1698_v35 = vpop.permute.xlu0 %1697 }
 0xac0   : > { %v1685_v54 = vpack.c.bf16 %v1683_v48, %v1683_v48  ;;  %v1686_v29 = vpack.c.bf16 %v1684_v51, %v1684_v51  ;;  %v1700_v21 = vpop.permute.xlu1 %1699  ;;  %1782 = vmatpush1.bf16.msra.mxu1 %v1743_v53 }
 0xac1   : > { %v1701_v55 = vsel %vm348_vm6, %v1698_v35, %v1700_v21  ;;  %v1702_v57 = vsel %vm348_vm6, %v1700_v21, %v1698_v35 }
 0xac2   : > { %v1727_v12 = vrot.slane %v1685_v54, 4  ;;  %v1728_v59 = vrot.slane %v1686_v29, 4  ;;  %v1703_v60 = vmul.f32 %v2933_v49, %v1701_v55  ;;  %v1704_v62 = vmul.f32 %v2939_v13, %v1702_v57 }
 0xac3   : > { %v1688_v10 = vpop.permute.xlu0 %1687 }
 0xac4   : > { %v1705_v7 = vpack.c.bf16 %v1703_v60, %v1703_v60  ;;  %v1706_v25 = vpack.c.bf16 %v1704_v62, %v1704_v62  ;;  %v1690_v14 = vpop.permute.xlu1 %1689  ;;  %v1755_v15 = vsel %vm388_vm4, %v1676_v11, %v1728_v59  ;;  %v1751_v16 = vsel %vm388_vm4, %v1675_v58, %v1727_v12 }
 0xac5   : > { %v1691_v47 = vsel %vm334_vm7, %v1688_v10, %v1690_v14  ;;  %v1692_v4 = vsel %vm334_vm7, %v1690_v14, %v1688_v10  ;;  %1783 = vmatprep.subr.bf16.mxu1 %v1755_v15 }
 0xac6   : > { %v1693_v36 = vmul.f32 %v3057_v0, %v1691_v47  ;;  %v1694_v39 = vmul.f32 %v3063_v56, %v1692_v4  ;;  %1784 = vmatpush1.bf16.msra.mxu1 %v1751_v16  ;;  %v1731_v23 = vrot.slane %v1705_v7, 4  ;;  %v1732_v24 = vrot.slane %v1706_v25, 4 }
 0xac7   : > { %v1708_v17 = vpop.permute.xlu0 %1707 }
 0xac8   : > { %v1695_v19 = vpack.c.bf16 %v1693_v36, %v1693_v36  ;;  %v1696_v28 = vpack.c.bf16 %v1694_v39, %v1694_v39  ;;  %v1710_v1 = vpop.permute.xlu1 %1709 }
 0xac9   : > { %v1711_v2 = vsel %vm362_vm8, %v1708_v17, %v1710_v1  ;;  %v1712_v30 = vsel %vm362_vm8, %v1710_v1, %v1708_v17 }
 0xaca   : > { %v1713_v37 = vmul.f32 %v3073_v22, %v1711_v2  ;;  %v1714_v32 = vmul.f32 %v3079_v8, %v1712_v30  ;;  %v1763_v34 = vsel %vm388_vm4, %v1696_v28, %v1732_v24  ;;  %v1759_v26 = vsel %vm388_vm4, %v1695_v19, %v1731_v23 }
 0xacb   : > { %1785 = vmatprep.subr.bf16.mxu1 %v1763_v34 }
 0xacc   : > { %v1715_v27 = vpack.c.bf16 %v1713_v37, %v1713_v37  ;;  %v1716_v42 = vpack.c.bf16 %v1714_v32, %v1714_v32  ;;  %1786 = vmatpush1.bf16.msra.mxu1 %v1759_v26 }
 0xace   : > { %2153 = vmatprep.subr.msk.bf16.mxu1 %vm388_vm4, %v1716_v42  ;;  %v1774_v43 = vsel %vm388_vm4, %v1715_v27, 0 }
 0xad0   : > { %1788 = vmatpush1.bf16.msra.mxu1 %v1774_v43 }
 0xad3   : > { %2154 = vmatmul.mubr.msk.bf16.vlgmr.msra.gmra.mrb[12].mxu1 %vm426_vm9, %v2151_v44 }
 0xad8   : > { %v1768_v46 = vpop.permute.xlu0 %1767 }
 0xba6   : > { %v1813_v3 = vpop.f32.mrb[12].mxu1 }
 0xba7   : > { %v1814_v48 = vadd.f32 %v1813_v3, %v1768_v46  ;;  %v1815_v51 = vpop.f32.mrb[13].mxu1 }
 0xba8   : > { %v1816_v52 = vadd.f32 %v1815_v51, %v1768_v46  ;;  %v1817_v53 = vpop.f32.mrb[14].mxu1 }
 0xba9   : > { %v1820_v35 = vadd.f32 %v1814_v48, %v3093_v40  ;;  %v1818_v54 = vpop.f32.mrb[15].mxu1  ;;  %v1825_v40 = vld [vmem:[#allocation2] sm:$0x1] }
 0xbaa   : > { %v1821_v29 = vadd.f32 %v1816_v52, %v3095_v41 }
 0xbab   : > { %v3306_v21 = vmax.f32 %v1820_v35, 0.0 }
 0xbac   : > { %v3308_v55 = vmax.f32 %v1821_v29, 0.0 }
 0xbad   : > { %1836 = vrot.lane.b32.xlu1 %v3306_v21, %s2215_s29 }
 0xbae   : > { %1838 = vrot.lane.b32.xlu0 %v3308_v55, %s2215_s29 }
 0xbb1   : > { %1826 = vrot.lane.b32.xlu1 %v3306_v21, %s2214_s28 }
 0xbb2   : > { %1828 = vrot.lane.b32.xlu0 %v3308_v55, %s2214_s28 }
 0xbb5   : > { %1856 = vrot.lane.b32.xlu1 %v3306_v21, %s2216_s30 }
 0xbb6   : > { %1858 = vrot.lane.b32.xlu0 %v3308_v55, %s2216_s30  ;;  %s2110_s30 = sshll.u32 %s3425_s24, 1 }
 0xbb9   : > { %1846 = vrot.lane.b32.xlu1 %v3306_v21, %s2217_s7 }
 0xbba   : > { %1848 = vrot.lane.b32.xlu0 %v3308_v55, %s2217_s7 }
 0xbbd   : > { %1868 = vrot.lane.b32.xlu1 %v3306_v21, %s2218_s8 }
 0xbbe   : > { %1870 = vrot.lane.b32.xlu0 %v3308_v55, %s2218_s8 }
 0xbc1   : > { %1888 = vrot.lane.b32.xlu1 %v3306_v21, %s2219_s9 }
 0xbc2   : > { %1890 = vrot.lane.b32.xlu0 %v3308_v55, %s2219_s9  ;;  %s251_s9 = scalar_lea.vmem %s3423_s6, %s2110_s30 }
 0xbc5   : > { %1878 = vrot.lane.b32.xlu1 %v3306_v21, %s2221_s10 }
 0xbc6   : > { %1880 = vrot.lane.b32.xlu0 %v3308_v55, %s2221_s10 }
 0xbc9   : > { %1898 = vrot.lane.b32.xlu1 %v3306_v21, %s2222_s11 }
 0xbca   : > { %1900 = vrot.lane.b32.xlu0 %v3308_v55, %s2222_s11 }
 0xbcd   : > { %1958 = vperm.xlu1 %2181, %v1825_v40  }
 0xc1f   : > { %v1837_v41 = vpop.permute.xlu1 %1836 }
 0xc20   : > { %v1839_v57 = vpop.permute.xlu0 %1838 }
 0xc21   : > { %v1840_v11 = vsel %vm276_vm1, %v1837_v41, %v1839_v57  ;;  %v1841_v58 = vsel %vm276_vm1, %v1839_v57, %v1837_v41 }
 0xc22   : > { %v1842_v12 = vmul.f32 %v2845_v31, %v1841_v58  ;;  %v1843_v59 = vmul.f32 %v2851_v38, %v1840_v11 }
 0xc23   : > { %v1827_v60 = vpop.permute.xlu1 %1826 }
 0xc24   : > { %v1844_v62 = vpack.c.bf16 %v1842_v12, %v1842_v12  ;;  %v1845_v10 = vpack.c.bf16 %v1843_v59, %v1843_v59  ;;  %v1829_v7 = vpop.permute.xlu0 %1828 }
 0xc25   : > { %v1830_v25 = vsel %vm263_vm0, %v1827_v60, %v1829_v7  ;;  %v1831_v14 = vsel %vm263_vm0, %v1829_v7, %v1827_v60 }
 0xc26   : > { %v1832_v15 = vmul.f32 %v2861_v50, %v1831_v14  ;;  %v1833_v16 = vmul.f32 %v2867_v45, %v1830_v25  ;;  %v1910_v4 = vrot.slane %v1844_v62, 4  ;;  %v1911_v36 = vrot.slane %v1845_v10, 4 }
 0xc27   : > { %v1857_v47 = vpop.permute.xlu1 %1856 }
 0xc28   : > { %v1834_v31 = vpack.c.bf16 %v1832_v15, %v1832_v15  ;;  %v1835_v39 = vpack.c.bf16 %v1833_v16, %v1833_v16  ;;  %v1859_v38 = vpop.permute.xlu0 %1858 }
 0xc29   : > { %v1860_v17 = vsel %vm304_vm2, %v1857_v47, %v1859_v38  ;;  %v1861_v23 = vsel %vm304_vm2, %v1859_v38, %v1857_v47 }
 0xc2a   : > { %v1862_v24 = vmul.f32 %v2877_v33, %v1861_v23  ;;  %v1863_v19 = vmul.f32 %v2883_v63, %v1860_v17  ;;  %v1930_v50 = vsel %vm388_vm4, %v1835_v39, %v1911_v36  ;;  %v1926_v45 = vsel %vm388_vm4, %v1834_v31, %v1910_v4 }
 0xc2b   : > { %1974 = vmatprep.subr.bf16.mxu0 %v1930_v50  ;;  %v1847_v28 = vpop.permute.xlu1 %1846 }
 0xc2c   : > { %v1864_v1 = vpack.c.bf16 %v1862_v24, %v1862_v24  ;;  %v1865_v2 = vpack.c.bf16 %v1863_v19, %v1863_v19  ;;  %v1849_v30 = vpop.permute.xlu0 %1848  ;;  %1975 = vmatpush1.bf16.msra.mxu0 %v1926_v45 }
 0xc2d   : > { %v1850_v37 = vsel %vm290_vm3, %v1847_v28, %v1849_v30  ;;  %v1851_v32 = vsel %vm290_vm3, %v1849_v30, %v1847_v28 }
 0xc2e   : > { %v1852_v33 = vmul.f32 %v2895_v61, %v1851_v32  ;;  %v1853_v63 = vmul.f32 %v2901_v9, %v1850_v37  ;;  %v1914_v26 = vrot.slane %v1864_v1, 4  ;;  %v1915_v27 = vrot.slane %v1865_v2, 4 }
 0xc2f   : > { %v1869_v34 = vpop.permute.xlu1 %1868 }
 0xc30   : > { %v1854_v42 = vpack.c.bf16 %v1852_v33, %v1852_v33  ;;  %v1855_v43 = vpack.c.bf16 %v1853_v63, %v1853_v63  ;;  %v1871_v44 = vpop.permute.xlu0 %1870 }
 0xc31   : > { %v1872_v46 = vsel %vm320_vm5, %v1869_v34, %v1871_v44  ;;  %v1873_v3 = vsel %vm320_vm5, %v1871_v44, %v1869_v34 }
 0xc32   : > { %v1874_v48 = vmul.f32 %v2911_v18, %v1872_v46  ;;  %v1875_v51 = vmul.f32 %v2917_v20, %v1873_v3  ;;  %v1938_v61 = vsel %vm388_vm4, %v1855_v43, %v1915_v27  ;;  %v1934_v9 = vsel %vm388_vm4, %v1854_v42, %v1914_v26 }
 0xc33   : > { %1976 = vmatprep.subr.bf16.mxu0 %v1938_v61  ;;  %v1889_v52 = vpop.permute.xlu1 %1888  ;;  %v1867_v18 = vpack.c.bf16 %v3308_v55, %v3308_v55  ;;  %v1866_v20 = vpack.c.bf16 %v3306_v21, %v3306_v21  ;;  %v2223_v42 = vmov 1966171168  }
 0xc34   : > { %v1876_v53 = vpack.c.bf16 %v1874_v48, %v1874_v48  ;;  %v1877_v35 = vpack.c.bf16 %v1875_v51, %v1875_v51  ;;  %v1891_v54 = vpop.permute.xlu0 %1890  ;;  %1977 = vmatpush1.bf16.msra.mxu0 %v1934_v9  ;;  %v2031_v43 = vunpack.c.l.s4 %v2223_v42 }
 0xc35   : > { %v1892_v29 = vsel %vm348_vm6, %v1889_v52, %v1891_v54  ;;  %v1893_v40 = vsel %vm348_vm6, %v1891_v54, %v1889_v52 }
 0xc36   : > { %v1918_v41 = vrot.slane %v1876_v53, 4  ;;  %v1919_v57 = vrot.slane %v1877_v35, 4  ;;  %v1894_v11 = vmul.f32 %v2933_v49, %v1892_v29  ;;  %v1895_v58 = vmul.f32 %v2939_v13, %v1893_v40 }
 0xc37   : > { %v1879_v12 = vpop.permute.xlu1 %1878  ;;  %v2032_v44 = vunpack.c.0.s8 %v2031_v43 }
 0xc38   : > { %v1896_v59 = vpack.c.bf16 %v1894_v11, %v1894_v11  ;;  %v1897_v60 = vpack.c.bf16 %v1895_v58, %v1895_v58  ;;  %v1881_v62 = vpop.permute.xlu0 %1880  ;;  %v1946_v10 = vsel %vm388_vm4, %v1867_v18, %v1919_v57  ;;  %v1942_v7 = vsel %vm388_vm4, %v1866_v20, %v1918_v41 }
 0xc39   : > { %v1882_v55 = vsel %vm334_vm7, %v1879_v12, %v1881_v62  ;;  %v1883_v21 = vsel %vm334_vm7, %v1881_v62, %v1879_v12  ;;  %1978 = vmatprep.subr.bf16.mxu0 %v1946_v10 }
 0xc3a   : > { %v1884_v25 = vmul.f32 %v3057_v0, %v1882_v55  ;;  %v1885_v49 = vmul.f32 %v3063_v56, %v1883_v21  ;;  %1979 = vmatpush1.bf16.msra.mxu0 %v1942_v7  ;;  %v1922_v14 = vrot.slane %v1896_v59, 4  ;;  %v1923_v15 = vrot.slane %v1897_v60, 4 }
 0xc3b   : > { %v1899_v13 = vpop.permute.xlu1 %1898 }
 0xc3c   : > { %v1886_v16 = vpack.c.bf16 %v1884_v25, %v1884_v25  ;;  %v1887_v47 = vpack.c.bf16 %v1885_v49, %v1885_v49  ;;  %v1901_v4 = vpop.permute.xlu0 %1900 }
 0xc3d   : > { %v1902_v36 = vsel %vm362_vm8, %v1899_v13, %v1901_v4  ;;  %v1903_v31 = vsel %vm362_vm8, %v1901_v4, %v1899_v13 }
 0xc3e   : > { %v1904_v39 = vmul.f32 %v3073_v22, %v1902_v36  ;;  %v1905_v38 = vmul.f32 %v3079_v8, %v1903_v31  ;;  %v1954_v0 = vsel %vm388_vm4, %v1887_v47, %v1923_v15  ;;  %v1950_v56 = vsel %vm388_vm4, %v1886_v16, %v1922_v14 }
 0xc3f   : > { %1980 = vmatprep.subr.bf16.mxu0 %v1954_v0  ;;  %v1962_v22 = vshrl.u32 %v261_v5, 7 }
 0xc40   : > { %v1906_v17 = vpack.c.bf16 %v1904_v39, %v1904_v39  ;;  %v1907_v23 = vpack.c.bf16 %v1905_v38, %v1905_v38  ;;  %1981 = vmatpush1.bf16.msra.mxu0 %v1950_v56 }
 0xc41   : > { %v1963_v8 = vsub.s32 0, %v1962_v22  ;;  %v2035_v3 = vsub.s32 %v2032_v44, %v1962_v22 }
 0xc42   : > { %2155 = vmatprep.subr.msk.bf16.mxu0 %vm388_vm4, %v1907_v23  ;;  %v1969_v24 = vsel %vm388_vm4, %v1906_v17, 0 }
 0xc44   : > { %1983 = vmatpush1.bf16.msra.mxu0 %v1969_v24 }
 0xc47   : > { %2156 = vmatmul.mubr.msk.bf16.vlgmr.msra.gmra.mrb[16].mxu0 %vm426_vm9, %v1824_v6 }
 0xc4c   : > { %v1959_v19 = vpop.permute.xlu1 %1958 }
 0xc4d   : > { %v1964_v50 = vrot.slane %v1959_v19, %v1963_v8 }
 0xd1a   : > { %v2008_v45 = vpop.f32.mrb[16].mxu0 }
 0xd1b   : > { %v2009_v28 = vadd.f32 %v2008_v45, %v1964_v50  ;;  %v2010_v1 = vpop.f32.mrb[17].mxu0 }
 0xd1c   : > { %v2011_v2 = vadd.f32 %v2010_v1, %v1964_v50  ;;  %v2012_v30 = vpop.f32.mrb[18].mxu0 }
 0xd1d   : > { %v2157_v37 = vmul.f32 -1.442695, %v2009_v28  ;;  %v2013_v32 = vpop.f32.mrb[19].mxu0 }
 0xd1e   : > { %v2158_v33 = vmul.f32 -1.442695, %v2011_v2 }
 0xd1f   : > { %2182 = vpow2.f32 %v2157_v37 }
 0xd20   : > { %2184 = vpow2.f32 %v2158_v33 }
 0xd29   : > { %v2183_v63 = vpop.eup %2182 }
 0xd2a   : > { %v2185_v34 = vpop.eup %2184  ;;  %v2021_v26 = vadd.f32 1.0, %v2183_v63 }
 0xd2b   : > { %v2022_v27 = vadd.f32 1.0, %v2185_v34 }
 0xd2c   : > { %2186 = vrcp.f32 %v2021_v26 }
 0xd2d   : > { %2188 = vrcp.f32 %v2022_v27 }
 0xd36   : > { %v2187_v46 = vpop.eup %2186 }
 0xd37   : > { %v2189_v48 = vpop.eup %2188 }
 0xd38   : > { %v2029_v51 = vcombine.low %v2187_v46, %v2189_v48 }
 0xd3a   : > { %v2036_v61 = vrot.slane %v2029_v51, %v2035_v3 }
 0xd3c   : > { %v2043_v9 = vrot.slane %v2036_v61, %v2035_v3 }
 0xd3e   : > { %2049 = vst.msk [vmem:[%s251_s9] sm:$0x3] %vm2047_vm10, %v2043_v9 }
 0xd3f PF: > { %s18_s23 = sadd.s32 1, %s2212_s23  }
 0xd40   : > { %p15_p4 = scmp.ge.s32.totalorder %s18_s23, 4  }
 0xd42   :  { %17 = sbr.rel (!%p15_p4) target bundleno = 3 (0x3), region = 95 }

</bundles_post_ra>
